<compile_context>
chip_gen: v5e
topology: v5e:2x2
jax: 0.10.0
libtpu: 0.0.40
codegen_flags: <defaults>
</compile_context>

<pallas_src>
import jax
import jax.numpy as jnp
from jax.experimental import pallas as pl
from jax.experimental.pallas import tpu as pltpu


def _softmax_ch(x):
    """Softmax along axis 0 (the channel axis) of a [C, TN] array."""
    m = jnp.max(x, axis=0, keepdims=True)
    e = jnp.exp(x - m)
    return e / jnp.sum(e, axis=0, keepdims=True)


def _fe_kernel(g_ref, f_ref, gn_ref, fn_ref, o_ref):
    # Per-tile (channel-major, npoint on lanes):
    #   g_ref  [C, TN]      f_ref  [D, TN]
    #   gn_ref [C, K, TN]   fn_ref [D, K, TN]
    #   o_ref  [OUT, K, TN]
    f32 = jnp.float32
    g = g_ref[...].astype(f32)       # [C, TN]
    f = f_ref[...].astype(f32)       # [D, TN]
    gn = gn_ref[...].astype(f32)     # [C, K, TN]
    fn = fn_ref[...].astype(f32)     # [D, K, TN]

    C, K, TN = gn.shape
    D = fn.shape[0]
    base = 3 * C + 1                 # start of the pf2 block in the channel axis
    odt = o_ref.dtype

    # ---- single pass over the D feature channels -------------------------
    # Accumulate   abs_sum = sum_d |f_d - fn_d|   (drives the exp weight)
    #              sq_sum  = sum_d (f_d - fn_d)^2 (feature part of df)
    # and store the 'pf' (broadcast f) and 'pf1' (f - fn) channels directly,
    # so no [D, K, TN] temporaries are ever materialized.
    abs_sum = jnp.zeros((K, TN), f32)
    sq_sum = jnp.zeros((K, TN), f32)
    for d in range(D):                                   # D is small & static
        fd = jnp.broadcast_to(f[d][None, :], (K, TN))    # [K, TN]
        diff = fd - fn[d]                                # [K, TN]  (= f - fn)
        abs_sum = abs_sum + jnp.abs(diff)
        sq_sum = sq_sum + diff * diff
        o_ref[base + D + C + d: base + D + C + d + 1] = fd[None].astype(odt)
        o_ref[base + 2 * D + 2 * C + d: base + 2 * D + 2 * C + d + 1] = (
            diff[None].astype(odt))
    o_ref[base: base + D] = fn.astype(odt)               # fn channels of pf2

    # ---- cal_feature_dis: gn_w = gn * exp(-mean_D |f - fn|) ----
    w = jnp.exp(abs_sum * (-1.0 / D))                    # [K, TN]
    gn_w = gn * w[None, :, :]                            # [C, K, TN]

    # ---- avg_g: gd = |softmax(mean_K gn_w) - softmax(g)| along channels ----
    g_avg = jnp.sum(gn_w, axis=1) * (1.0 / K)            # [C, TN]
    gd = jnp.abs(_softmax_ch(g_avg) - _softmax_ch(g))    # [C, TN]

    # ---- geometry distances ----
    pg = jnp.broadcast_to(g[:, None, :], (C, K, TN))     # hoisted, stored twice
    pg1 = pg - gn_w                                      # [C, K, TN]
    dg = jnp.sqrt(jnp.sum(pg1 * pg1, axis=0))            # [K, TN]

    pf1_g = g - gd                                       # [C, TN] (constant over K)
    df = jnp.sqrt(sq_sum + jnp.sum(pf1_g * pf1_g, axis=0)[None, :])  # [K, TN]

    # ---- pg2 = [gn_w | pg | pg1 | dg]  -> 3C + 1 channels ----
    o_ref[0:C] = gn_w.astype(odt)
    o_ref[C:2 * C] = pg.astype(odt)
    o_ref[2 * C:3 * C] = pg1.astype(odt)
    o_ref[3 * C:3 * C + 1] = dg[None].astype(odt)

    # ---- remaining pf2 channels = [.. | gd | .. | g | .. | g-gd | df] ----
    for c in range(C):                                   # C is tiny (3)
        o_ref[base + D + c: base + D + c + 1] = (
            jnp.broadcast_to(gd[c][None, None, :], (1, K, TN)).astype(odt))
        o_ref[base + 3 * D + 2 * C + c: base + 3 * D + 2 * C + c + 1] = (
            jnp.broadcast_to(pf1_g[c][None, None, :], (1, K, TN)).astype(odt))
    o_ref[base + 2 * D + C: base + 2 * D + 2 * C] = pg.astype(odt)
    o_ref[base + 3 * D + 3 * C: base + 3 * D + 3 * C + 1] = df[None].astype(odt)


def _pick_tile_n(n, b):
    """Largest lane tile (<= 2048) dividing n that keeps >= 2 total grid steps
    (so both v7x TensorCores get work) whenever possible."""
    divisors = [t for t in (2048, 1024, 512, 256, 128) if n % t == 0]
    if not divisors:
        return None  # caller pads n to a multiple of 128 first
    for t in divisors:
        if b * (n // t) >= 2:
            return t
    return divisors[0]


def feature_enhancement_channel_major(g_cm, f_cm, gn_cm, fn_cm, *, tile_n=None,
                                      out_dtype=None):
    """Channel-major entry point (preferred, lane-dense layout).

    g_cm [B, C, N], f_cm [B, D, N], gn_cm [B, C, K, N], fn_cm [B, D, K, N]
    -> out [B, OUT, K, N], channel order identical to the PyTorch concats.
    """
    B, C, N = g_cm.shape
    D = f_cm.shape[1]
    K = gn_cm.shape[2]
    OUT = (3 * C + 1) + (3 * (D + C) + 1)
    if out_dtype is None:
        out_dtype = jnp.result_type(g_cm.dtype, f_cm.dtype, gn_cm.dtype, fn_cm.dtype)

    # Keep the output lane axis a multiple of 128 (unmasked vst): pad on the
    # host if needed and slice the pad off afterwards.  Zero padding produces
    # finite values everywhere, so no NaNs leak into the valid region.
    pad = (-N) % 128
    if pad:
        g_cm = jnp.pad(g_cm, ((0, 0), (0, 0), (0, pad)))
        f_cm = jnp.pad(f_cm, ((0, 0), (0, 0), (0, pad)))
        gn_cm = jnp.pad(gn_cm, ((0, 0), (0, 0), (0, 0), (0, pad)))
        fn_cm = jnp.pad(fn_cm, ((0, 0), (0, 0), (0, 0), (0, pad)))
    Np = N + pad

    if tile_n is None:
        tile_n = _pick_tile_n(Np, B)
    assert tile_n is not None and Np % tile_n == 0 and tile_n % 128 == 0, (N, tile_n)

    grid = (B, Np // tile_n)

    # Right-sized VMEM limit: ~2x (double-buffered) input + output blocks plus
    # a few MiB of headroom for in-kernel temporaries.
    in_block_bytes = ((C + C * K) * tile_n * jnp.dtype(g_cm.dtype).itemsize
                      + (D + D * K) * tile_n * jnp.dtype(f_cm.dtype).itemsize)
    out_block_bytes = OUT * K * tile_n * jnp.dtype(out_dtype).itemsize
    vmem_limit = max(2 * (in_block_bytes + out_block_bytes) + (8 << 20), 16 << 20)

    out = pl.pallas_call(
        _fe_kernel,
        out_shape=jax.ShapeDtypeStruct((B, OUT, K, Np), out_dtype),
        grid_spec=pltpu.PrefetchScalarGridSpec(
            num_scalar_prefetch=0,
            grid=grid,
            in_specs=[
                # None in block_shape squeezes the batch dim out of the kernel refs.
                pl.BlockSpec((None, C, tile_n), lambda b, i: (b, 0, i)),
                pl.BlockSpec((None, D, tile_n), lambda b, i: (b, 0, i)),
                pl.BlockSpec((None, C, K, tile_n), lambda b, i: (b, 0, 0, i)),
                pl.BlockSpec((None, D, K, tile_n), lambda b, i: (b, 0, 0, i)),
            ],
            out_specs=pl.BlockSpec((None, OUT, K, tile_n), lambda b, i: (b, 0, 0, i)),
        ),
        compiler_params=pltpu.CompilerParams(
            dimension_semantics=("parallel", "parallel"),
            vmem_limit_bytes=int(vmem_limit),
        ),
    )(g_cm, f_cm, gn_cm, fn_cm)

    if pad:
        out = out[..., :N]
    return out


def feature_enhancement(g, f, gn, fn, *, tile_n=None):
    """Drop-in wrapper matching the PyTorch module's layouts.

    g [B, n, C], f [B, n, D], gn [B, n, k, C], fn [B, n, k, D]
    -> [B, n, k, (3C+1) + (3(D+C)+1)]

    NOTE: the final transpose re-streams the full 44-channel output through
    HBM in XLA; prefer feature_enhancement_channel_major in real pipelines.
    """
    g_cm = jnp.transpose(g, (0, 2, 1))
    f_cm = jnp.transpose(f, (0, 2, 1))
    gn_cm = jnp.transpose(gn, (0, 3, 2, 1))
    fn_cm = jnp.transpose(fn, (0, 3, 2, 1))
    out_cm = feature_enhancement_channel_major(g_cm, f_cm, gn_cm, fn_cm,
                                               tile_n=tile_n)
    return jnp.transpose(out_cm, (0, 3, 2, 1))


def feature_enhancement_ref(g, f, gn, fn):
    """Pure-JAX reference mirroring the PyTorch forward exactly."""
    d = jnp.abs(f[:, :, None, :] - fn)
    w = jnp.exp(-jnp.mean(d, axis=-1, keepdims=True))
    gn_w = gn * w
    g_avg = jnp.mean(gn_w, axis=2)
    gd = jnp.abs(jax.nn.softmax(g_avg, axis=-1) - jax.nn.softmax(g, axis=-1))
    gd = jnp.broadcast_to(gd[:, :, None, :], gn_w.shape)
    fn_c = jnp.concatenate([fn, gd], axis=-1)
    f_cat = jnp.concatenate([f, g], axis=-1)
    pg = jnp.broadcast_to(g[:, :, None, :], gn_w.shape)
    pf = jnp.broadcast_to(f_cat[:, :, None, :], fn_c.shape)
    pg1 = pg - gn_w
    pf1 = pf - fn_c
    dg = jnp.sqrt(jnp.sum(pg1 * pg1, axis=-1, keepdims=True))
    df = jnp.sqrt(jnp.sum(pf1 * pf1, axis=-1, keepdims=True))
    pg2 = jnp.concatenate([gn_w, pg, pg1, dg], axis=-1)
    pf2 = jnp.concatenate([fn_c, pf, pf1, df], axis=-1)
    return jnp.concatenate([pg2, pf2], axis=-1)


if __name__ == "__main__":
    # B=2 batches, npoint=1024 sampled points, nsample=8 neighbours,
    # C=3 xyz coords, D=8 feature channels.  tile_n auto-picks 1024 here
    # (grid = (2, 1) -> 2 steps, both TensorCores busy on v7x).
    B, npoint, nsample, C, D = 2, 1024, 8, 3, 8

    key = jax.random.PRNGKey(0)
    kg, kf, kgn, kfn = jax.random.split(key, 4)
    g = jax.random.normal(kg, (B, npoint, C), dtype=jnp.float32)
    f = jax.random.normal(kf, (B, npoint, D), dtype=jnp.float32)
    gn = jax.random.normal(kgn, (B, npoint, nsample, C), dtype=jnp.float32)
    fn = jax.random.normal(kfn, (B, npoint, nsample, D), dtype=jnp.float32)

    out = jax.block_until_ready(feature_enhancement(g, f, gn, fn))
    ref = jax.block_until_ready(feature_enhancement_ref(g, f, gn, fn))

    expected_dim = (3 * C + 1) + (3 * (D + C) + 1)
    assert out.shape == (B, npoint, nsample, expected_dim), out.shape
    assert jnp.allclose(out, ref, rtol=1e-5, atol=1e-5), "mismatch vs reference"

    print("KERNEL_OK")
</pallas_src>

<mosaic_0001>
module attributes {stable_mosaic.version = 11 : i64} {
  func.func @_fe_kernel(%arg0: i32, %arg1: i32, %arg2: memref<1x3x1024xf32, #tpu.memory_space<vmem>>, %arg3: memref<1x8x1024xf32, #tpu.memory_space<vmem>>, %arg4: memref<1x3x8x1024xf32, #tpu.memory_space<vmem>>, %arg5: memref<1x8x8x1024xf32, #tpu.memory_space<vmem>>, %arg6: memref<1x44x8x1024xf32, #tpu.memory_space<vmem>>) attributes {dimension_semantics = [#tpu.dimension_semantics<parallel>, #tpu.dimension_semantics<parallel>], iteration_bounds = array<i64: 2, 1>, scalar_prefetch = 0 : i64, scratch_operands = 0 : i64, tpu.core_type = #tpu.core_type<tc>, window_params = [{transform_indices = @transform_0, window_bounds = array<i64: 1, 3, 1024>}, {transform_indices = @transform_1, window_bounds = array<i64: 1, 8, 1024>}, {transform_indices = @transform_2, window_bounds = array<i64: 1, 3, 8, 1024>}, {transform_indices = @transform_3, window_bounds = array<i64: 1, 8, 8, 1024>}, {transform_indices = @transform_4, window_bounds = array<i64: 1, 44, 8, 1024>}]} {
    %c0 = arith.constant 0 : index
    %c0_0 = arith.constant 0 : index
    %c0_1 = arith.constant 0 : index
    %0 = vector.load %arg2[%c0, %c0_0, %c0_1] : memref<1x3x1024xf32, #tpu.memory_space<vmem>>, vector<1x3x1024xf32>
    %1 = vector.shape_cast %0 : vector<1x3x1024xf32> to vector<3x1024xf32>
    %c0_2 = arith.constant 0 : index
    %c0_3 = arith.constant 0 : index
    %c0_4 = arith.constant 0 : index
    %2 = vector.load %arg3[%c0_2, %c0_3, %c0_4] : memref<1x8x1024xf32, #tpu.memory_space<vmem>>, vector<1x8x1024xf32>
    %3 = vector.shape_cast %2 : vector<1x8x1024xf32> to vector<8x1024xf32>
    %c0_5 = arith.constant 0 : index
    %c0_6 = arith.constant 0 : index
    %c0_7 = arith.constant 0 : index
    %c0_8 = arith.constant 0 : index
    %4 = vector.load %arg4[%c0_5, %c0_6, %c0_7, %c0_8] : memref<1x3x8x1024xf32, #tpu.memory_space<vmem>>, vector<1x3x8x1024xf32>
    %5 = vector.shape_cast %4 : vector<1x3x8x1024xf32> to vector<3x8x1024xf32>
    %c0_9 = arith.constant 0 : index
    %c0_10 = arith.constant 0 : index
    %c0_11 = arith.constant 0 : index
    %c0_12 = arith.constant 0 : index
    %6 = vector.load %arg5[%c0_9, %c0_10, %c0_11, %c0_12] : memref<1x8x8x1024xf32, #tpu.memory_space<vmem>>, vector<1x8x8x1024xf32>
    %7 = vector.shape_cast %6 : vector<1x8x8x1024xf32> to vector<8x8x1024xf32>
    %cst = arith.constant 0.000000e+00 : f32
    %8 = vector.broadcast %cst : f32 to vector<8x1024xf32>
    %cst_13 = arith.constant 0.000000e+00 : f32
    %9 = vector.broadcast %cst_13 : f32 to vector<8x1024xf32>
    %10 = vector.extract_strided_slice %3 {offsets = [0, 0], sizes = [1, 1024], strides = [1, 1]} : vector<8x1024xf32> to vector<1x1024xf32>
    %11 = vector.shape_cast %10 : vector<1x1024xf32> to vector<1024xf32>
    %12 = vector.shape_cast %11 : vector<1024xf32> to vector<1x1024xf32>
    %13 = vector.shape_cast %12 : vector<1x1024xf32> to vector<1x1024xf32>
    %14 = vector.broadcast %13 : vector<1x1024xf32> to vector<8x1024xf32>
    %15 = vector.extract_strided_slice %7 {offsets = [0, 0, 0], sizes = [1, 8, 1024], strides = [1, 1, 1]} : vector<8x8x1024xf32> to vector<1x8x1024xf32>
    %16 = vector.shape_cast %15 : vector<1x8x1024xf32> to vector<8x1024xf32>
    %17 = arith.subf %14, %16 : vector<8x1024xf32>
    %18 = math.absf %17 : vector<8x1024xf32>
    %19 = arith.addf %8, %18 : vector<8x1024xf32>
    %20 = arith.mulf %17, %17 : vector<8x1024xf32>
    %21 = arith.addf %9, %20 : vector<8x1024xf32>
    %22 = vector.shape_cast %14 : vector<8x1024xf32> to vector<1x8x1024xf32>
    %c0_14 = arith.constant 0 : index
    %c21 = arith.constant 21 : index
    %c0_15 = arith.constant 0 : index
    %c0_16 = arith.constant 0 : index
    %23 = vector.load %arg6[%c0_14, %c21, %c0_15, %c0_16] : memref<1x44x8x1024xf32, #tpu.memory_space<vmem>>, vector<1x1x8x1024xf32>
    %24 = vector.shape_cast %23 : vector<1x1x8x1024xf32> to vector<1x8x1024xf32>
    %25 = vector.shape_cast %22 : vector<1x8x1024xf32> to vector<1x1x8x1024xf32>
    tpu.vector_store %arg6[%c0_14, %c21, %c0_15, %c0_16], %25 {strides = array<i32>} : memref<1x44x8x1024xf32, #tpu.memory_space<vmem>>, vector<1x1x8x1024xf32>,
    %26 = vector.shape_cast %17 : vector<8x1024xf32> to vector<1x8x1024xf32>
    %c0_17 = arith.constant 0 : index
    %c32 = arith.constant 32 : index
    %c0_18 = arith.constant 0 : index
    %c0_19 = arith.constant 0 : index
    %27 = vector.load %arg6[%c0_17, %c32, %c0_18, %c0_19] : memref<1x44x8x1024xf32, #tpu.memory_space<vmem>>, vector<1x1x8x1024xf32>
    %28 = vector.shape_cast %27 : vector<1x1x8x1024xf32> to vector<1x8x1024xf32>
    %29 = vector.shape_cast %26 : vector<1x8x1024xf32> to vector<1x1x8x1024xf32>
    tpu.vector_store %arg6[%c0_17, %c32, %c0_18, %c0_19], %29 {strides = array<i32>} : memref<1x44x8x1024xf32, #tpu.memory_space<vmem>>, vector<1x1x8x1024xf32>,
    %30 = vector.extract_strided_slice %3 {offsets = [1, 0], sizes = [1, 1024], strides = [1, 1]} : vector<8x1024xf32> to vector<1x1024xf32>
    %31 = vector.shape_cast %30 : vector<1x1024xf32> to vector<1024xf32>
    %32 = vector.shape_cast %31 : vector<1024xf32> to vector<1x1024xf32>
    %33 = vector.shape_cast %32 : vector<1x1024xf32> to vector<1x1024xf32>
    %34 = vector.broadcast %33 : vector<1x1024xf32> to vector<8x1024xf32>
    %35 = vector.extract_strided_slice %7 {offsets = [1, 0, 0], sizes = [1, 8, 1024], strides = [1, 1, 1]} : vector<8x8x1024xf32> to vector<1x8x1024xf32>
    %36 = vector.shape_cast %35 : vector<1x8x1024xf32> to vector<8x1024xf32>
    %37 = arith.subf %34, %36 : vector<8x1024xf32>
    %38 = math.absf %37 : vector<8x1024xf32>
    %39 = arith.addf %19, %38 : vector<8x1024xf32>
    %40 = arith.mulf %37, %37 : vector<8x1024xf32>
    %41 = arith.addf %21, %40 : vector<8x1024xf32>
    %42 = vector.shape_cast %34 : vector<8x1024xf32> to vector<1x8x1024xf32>
    %c0_20 = arith.constant 0 : index
    %c22 = arith.constant 22 : index
    %c0_21 = arith.constant 0 : index
    %c0_22 = arith.constant 0 : index
    %43 = vector.load %arg6[%c0_20, %c22, %c0_21, %c0_22] : memref<1x44x8x1024xf32, #tpu.memory_space<vmem>>, vector<1x1x8x1024xf32>
    %44 = vector.shape_cast %43 : vector<1x1x8x1024xf32> to vector<1x8x1024xf32>
    %45 = vector.shape_cast %42 : vector<1x8x1024xf32> to vector<1x1x8x1024xf32>
    tpu.vector_store %arg6[%c0_20, %c22, %c0_21, %c0_22], %45 {strides = array<i32>} : memref<1x44x8x1024xf32, #tpu.memory_space<vmem>>, vector<1x1x8x1024xf32>,
    %46 = vector.shape_cast %37 : vector<8x1024xf32> to vector<1x8x1024xf32>
    %c0_23 = arith.constant 0 : index
    %c33 = arith.constant 33 : index
    %c0_24 = arith.constant 0 : index
    %c0_25 = arith.constant 0 : index
    %47 = vector.load %arg6[%c0_23, %c33, %c0_24, %c0_25] : memref<1x44x8x1024xf32, #tpu.memory_space<vmem>>, vector<1x1x8x1024xf32>
    %48 = vector.shape_cast %47 : vector<1x1x8x1024xf32> to vector<1x8x1024xf32>
    %49 = vector.shape_cast %46 : vector<1x8x1024xf32> to vector<1x1x8x1024xf32>
    tpu.vector_store %arg6[%c0_23, %c33, %c0_24, %c0_25], %49 {strides = array<i32>} : memref<1x44x8x1024xf32, #tpu.memory_space<vmem>>, vector<1x1x8x1024xf32>,
    %50 = vector.extract_strided_slice %3 {offsets = [2, 0], sizes = [1, 1024], strides = [1, 1]} : vector<8x1024xf32> to vector<1x1024xf32>
    %51 = vector.shape_cast %50 : vector<1x1024xf32> to vector<1024xf32>
    %52 = vector.shape_cast %51 : vector<1024xf32> to vector<1x1024xf32>
    %53 = vector.shape_cast %52 : vector<1x1024xf32> to vector<1x1024xf32>
    %54 = vector.broadcast %53 : vector<1x1024xf32> to vector<8x1024xf32>
    %55 = vector.extract_strided_slice %7 {offsets = [2, 0, 0], sizes = [1, 8, 1024], strides = [1, 1, 1]} : vector<8x8x1024xf32> to vector<1x8x1024xf32>
    %56 = vector.shape_cast %55 : vector<1x8x1024xf32> to vector<8x1024xf32>
    %57 = arith.subf %54, %56 : vector<8x1024xf32>
    %58 = math.absf %57 : vector<8x1024xf32>
    %59 = arith.addf %39, %58 : vector<8x1024xf32>
    %60 = arith.mulf %57, %57 : vector<8x1024xf32>
    %61 = arith.addf %41, %60 : vector<8x1024xf32>
    %62 = vector.shape_cast %54 : vector<8x1024xf32> to vector<1x8x1024xf32>
    %c0_26 = arith.constant 0 : index
    %c23 = arith.constant 23 : index
    %c0_27 = arith.constant 0 : index
    %c0_28 = arith.constant 0 : index
    %63 = vector.load %arg6[%c0_26, %c23, %c0_27, %c0_28] : memref<1x44x8x1024xf32, #tpu.memory_space<vmem>>, vector<1x1x8x1024xf32>
    %64 = vector.shape_cast %63 : vector<1x1x8x1024xf32> to vector<1x8x1024xf32>
    %65 = vector.shape_cast %62 : vector<1x8x1024xf32> to vector<1x1x8x1024xf32>
    tpu.vector_store %arg6[%c0_26, %c23, %c0_27, %c0_28], %65 {strides = array<i32>} : memref<1x44x8x1024xf32, #tpu.memory_space<vmem>>, vector<1x1x8x1024xf32>,
    %66 = vector.shape_cast %57 : vector<8x1024xf32> to vector<1x8x1024xf32>
    %c0_29 = arith.constant 0 : index
    %c34 = arith.constant 34 : index
    %c0_30 = arith.constant 0 : index
    %c0_31 = arith.constant 0 : index
    %67 = vector.load %arg6[%c0_29, %c34, %c0_30, %c0_31] : memref<1x44x8x1024xf32, #tpu.memory_space<vmem>>, vector<1x1x8x1024xf32>
    %68 = vector.shape_cast %67 : vector<1x1x8x1024xf32> to vector<1x8x1024xf32>
    %69 = vector.shape_cast %66 : vector<1x8x1024xf32> to vector<1x1x8x1024xf32>
    tpu.vector_store %arg6[%c0_29, %c34, %c0_30, %c0_31], %69 {strides = array<i32>} : memref<1x44x8x1024xf32, #tpu.memory_space<vmem>>, vector<1x1x8x1024xf32>,
    %70 = vector.extract_strided_slice %3 {offsets = [3, 0], sizes = [1, 1024], strides = [1, 1]} : vector<8x1024xf32> to vector<1x1024xf32>
    %71 = vector.shape_cast %70 : vector<1x1024xf32> to vector<1024xf32>
    %72 = vector.shape_cast %71 : vector<1024xf32> to vector<1x1024xf32>
    %73 = vector.shape_cast %72 : vector<1x1024xf32> to vector<1x1024xf32>
    %74 = vector.broadcast %73 : vector<1x1024xf32> to vector<8x1024xf32>
    %75 = vector.extract_strided_slice %7 {offsets = [3, 0, 0], sizes = [1, 8, 1024], strides = [1, 1, 1]} : vector<8x8x1024xf32> to vector<1x8x1024xf32>
    %76 = vector.shape_cast %75 : vector<1x8x1024xf32> to vector<8x1024xf32>
    %77 = arith.subf %74, %76 : vector<8x1024xf32>
    %78 = math.absf %77 : vector<8x1024xf32>
    %79 = arith.addf %59, %78 : vector<8x1024xf32>
    %80 = arith.mulf %77, %77 : vector<8x1024xf32>
    %81 = arith.addf %61, %80 : vector<8x1024xf32>
    %82 = vector.shape_cast %74 : vector<8x1024xf32> to vector<1x8x1024xf32>
    %c0_32 = arith.constant 0 : index
    %c24 = arith.constant 24 : index
    %c0_33 = arith.constant 0 : index
    %c0_34 = arith.constant 0 : index
    %83 = vector.load %arg6[%c0_32, %c24, %c0_33, %c0_34] : memref<1x44x8x1024xf32, #tpu.memory_space<vmem>>, vector<1x1x8x1024xf32>
    %84 = vector.shape_cast %83 : vector<1x1x8x1024xf32> to vector<1x8x1024xf32>
    %85 = vector.shape_cast %82 : vector<1x8x1024xf32> to vector<1x1x8x1024xf32>
    tpu.vector_store %arg6[%c0_32, %c24, %c0_33, %c0_34], %85 {strides = array<i32>} : memref<1x44x8x1024xf32, #tpu.memory_space<vmem>>, vector<1x1x8x1024xf32>,
    %86 = vector.shape_cast %77 : vector<8x1024xf32> to vector<1x8x1024xf32>
    %c0_35 = arith.constant 0 : index
    %c35 = arith.constant 35 : index
    %c0_36 = arith.constant 0 : index
    %c0_37 = arith.constant 0 : index
    %87 = vector.load %arg6[%c0_35, %c35, %c0_36, %c0_37] : memref<1x44x8x1024xf32, #tpu.memory_space<vmem>>, vector<1x1x8x1024xf32>
    %88 = vector.shape_cast %87 : vector<1x1x8x1024xf32> to vector<1x8x1024xf32>
    %89 = vector.shape_cast %86 : vector<1x8x1024xf32> to vector<1x1x8x1024xf32>
    tpu.vector_store %arg6[%c0_35, %c35, %c0_36, %c0_37], %89 {strides = array<i32>} : memref<1x44x8x1024xf32, #tpu.memory_space<vmem>>, vector<1x1x8x1024xf32>,
    %90 = vector.extract_strided_slice %3 {offsets = [4, 0], sizes = [1, 1024], strides = [1, 1]} : vector<8x1024xf32> to vector<1x1024xf32>
    %91 = vector.shape_cast %90 : vector<1x1024xf32> to vector<1024xf32>
    %92 = vector.shape_cast %91 : vector<1024xf32> to vector<1x1024xf32>
    %93 = vector.shape_cast %92 : vector<1x1024xf32> to vector<1x1024xf32>
    %94 = vector.broadcast %93 : vector<1x1024xf32> to vector<8x1024xf32>
    %95 = vector.extract_strided_slice %7 {offsets = [4, 0, 0], sizes = [1, 8, 1024], strides = [1, 1, 1]} : vector<8x8x1024xf32> to vector<1x8x1024xf32>
    %96 = vector.shape_cast %95 : vector<1x8x1024xf32> to vector<8x1024xf32>
    %97 = arith.subf %94, %96 : vector<8x1024xf32>
    %98 = math.absf %97 : vector<8x1024xf32>
    %99 = arith.addf %79, %98 : vector<8x1024xf32>
    %100 = arith.mulf %97, %97 : vector<8x1024xf32>
    %101 = arith.addf %81, %100 : vector<8x1024xf32>
    %102 = vector.shape_cast %94 : vector<8x1024xf32> to vector<1x8x1024xf32>
    %c0_38 = arith.constant 0 : index
    %c25 = arith.constant 25 : index
    %c0_39 = arith.constant 0 : index
    %c0_40 = arith.constant 0 : index
    %103 = vector.load %arg6[%c0_38, %c25, %c0_39, %c0_40] : memref<1x44x8x1024xf32, #tpu.memory_space<vmem>>, vector<1x1x8x1024xf32>
    %104 = vector.shape_cast %103 : vector<1x1x8x1024xf32> to vector<1x8x1024xf32>
    %105 = vector.shape_cast %102 : vector<1x8x1024xf32> to vector<1x1x8x1024xf32>
    tpu.vector_store %arg6[%c0_38, %c25, %c0_39, %c0_40], %105 {strides = array<i32>} : memref<1x44x8x1024xf32, #tpu.memory_space<vmem>>, vector<1x1x8x1024xf32>,
    %106 = vector.shape_cast %97 : vector<8x1024xf32> to vector<1x8x1024xf32>
    %c0_41 = arith.constant 0 : index
    %c36 = arith.constant 36 : index
    %c0_42 = arith.constant 0 : index
    %c0_43 = arith.constant 0 : index
    %107 = vector.load %arg6[%c0_41, %c36, %c0_42, %c0_43] : memref<1x44x8x1024xf32, #tpu.memory_space<vmem>>, vector<1x1x8x1024xf32>
    %108 = vector.shape_cast %107 : vector<1x1x8x1024xf32> to vector<1x8x1024xf32>
    %109 = vector.shape_cast %106 : vector<1x8x1024xf32> to vector<1x1x8x1024xf32>
    tpu.vector_store %arg6[%c0_41, %c36, %c0_42, %c0_43], %109 {strides = array<i32>} : memref<1x44x8x1024xf32, #tpu.memory_space<vmem>>, vector<1x1x8x1024xf32>,
    %110 = vector.extract_strided_slice %3 {offsets = [5, 0], sizes = [1, 1024], strides = [1, 1]} : vector<8x1024xf32> to vector<1x1024xf32>
    %111 = vector.shape_cast %110 : vector<1x1024xf32> to vector<1024xf32>
    %112 = vector.shape_cast %111 : vector<1024xf32> to vector<1x1024xf32>
    %113 = vector.shape_cast %112 : vector<1x1024xf32> to vector<1x1024xf32>
    %114 = vector.broadcast %113 : vector<1x1024xf32> to vector<8x1024xf32>
    %115 = vector.extract_strided_slice %7 {offsets = [5, 0, 0], sizes = [1, 8, 1024], strides = [1, 1, 1]} : vector<8x8x1024xf32> to vector<1x8x1024xf32>
    %116 = vector.shape_cast %115 : vector<1x8x1024xf32> to vector<8x1024xf32>
    %117 = arith.subf %114, %116 : vector<8x1024xf32>
    %118 = math.absf %117 : vector<8x1024xf32>
    %119 = arith.addf %99, %118 : vector<8x1024xf32>
    %120 = arith.mulf %117, %117 : vector<8x1024xf32>
    %121 = arith.addf %101, %120 : vector<8x1024xf32>
    %122 = vector.shape_cast %114 : vector<8x1024xf32> to vector<1x8x1024xf32>
    %c0_44 = arith.constant 0 : index
    %c26 = arith.constant 26 : index
    %c0_45 = arith.constant 0 : index
    %c0_46 = arith.constant 0 : index
    %123 = vector.load %arg6[%c0_44, %c26, %c0_45, %c0_46] : memref<1x44x8x1024xf32, #tpu.memory_space<vmem>>, vector<1x1x8x1024xf32>
    %124 = vector.shape_cast %123 : vector<1x1x8x1024xf32> to vector<1x8x1024xf32>
    %125 = vector.shape_cast %122 : vector<1x8x1024xf32> to vector<1x1x8x1024xf32>
    tpu.vector_store %arg6[%c0_44, %c26, %c0_45, %c0_46], %125 {strides = array<i32>} : memref<1x44x8x1024xf32, #tpu.memory_space<vmem>>, vector<1x1x8x1024xf32>,
    %126 = vector.shape_cast %117 : vector<8x1024xf32> to vector<1x8x1024xf32>
    %c0_47 = arith.constant 0 : index
    %c37 = arith.constant 37 : index
    %c0_48 = arith.constant 0 : index
    %c0_49 = arith.constant 0 : index
    %127 = vector.load %arg6[%c0_47, %c37, %c0_48, %c0_49] : memref<1x44x8x1024xf32, #tpu.memory_space<vmem>>, vector<1x1x8x1024xf32>
    %128 = vector.shape_cast %127 : vector<1x1x8x1024xf32> to vector<1x8x1024xf32>
    %129 = vector.shape_cast %126 : vector<1x8x1024xf32> to vector<1x1x8x1024xf32>
    tpu.vector_store %arg6[%c0_47, %c37, %c0_48, %c0_49], %129 {strides = array<i32>} : memref<1x44x8x1024xf32, #tpu.memory_space<vmem>>, vector<1x1x8x1024xf32>,
    %130 = vector.extract_strided_slice %3 {offsets = [6, 0], sizes = [1, 1024], strides = [1, 1]} : vector<8x1024xf32> to vector<1x1024xf32>
    %131 = vector.shape_cast %130 : vector<1x1024xf32> to vector<1024xf32>
    %132 = vector.shape_cast %131 : vector<1024xf32> to vector<1x1024xf32>
    %133 = vector.shape_cast %132 : vector<1x1024xf32> to vector<1x1024xf32>
    %134 = vector.broadcast %133 : vector<1x1024xf32> to vector<8x1024xf32>
    %135 = vector.extract_strided_slice %7 {offsets = [6, 0, 0], sizes = [1, 8, 1024], strides = [1, 1, 1]} : vector<8x8x1024xf32> to vector<1x8x1024xf32>
    %136 = vector.shape_cast %135 : vector<1x8x1024xf32> to vector<8x1024xf32>
    %137 = arith.subf %134, %136 : vector<8x1024xf32>
    %138 = math.absf %137 : vector<8x1024xf32>
    %139 = arith.addf %119, %138 : vector<8x1024xf32>
    %140 = arith.mulf %137, %137 : vector<8x1024xf32>
    %141 = arith.addf %121, %140 : vector<8x1024xf32>
    %142 = vector.shape_cast %134 : vector<8x1024xf32> to vector<1x8x1024xf32>
    %c0_50 = arith.constant 0 : index
    %c27 = arith.constant 27 : index
    %c0_51 = arith.constant 0 : index
    %c0_52 = arith.constant 0 : index
    %143 = vector.load %arg6[%c0_50, %c27, %c0_51, %c0_52] : memref<1x44x8x1024xf32, #tpu.memory_space<vmem>>, vector<1x1x8x1024xf32>
    %144 = vector.shape_cast %143 : vector<1x1x8x1024xf32> to vector<1x8x1024xf32>
    %145 = vector.shape_cast %142 : vector<1x8x1024xf32> to vector<1x1x8x1024xf32>
    tpu.vector_store %arg6[%c0_50, %c27, %c0_51, %c0_52], %145 {strides = array<i32>} : memref<1x44x8x1024xf32, #tpu.memory_space<vmem>>, vector<1x1x8x1024xf32>,
    %146 = vector.shape_cast %137 : vector<8x1024xf32> to vector<1x8x1024xf32>
    %c0_53 = arith.constant 0 : index
    %c38 = arith.constant 38 : index
    %c0_54 = arith.constant 0 : index
    %c0_55 = arith.constant 0 : index
    %147 = vector.load %arg6[%c0_53, %c38, %c0_54, %c0_55] : memref<1x44x8x1024xf32, #tpu.memory_space<vmem>>, vector<1x1x8x1024xf32>
    %148 = vector.shape_cast %147 : vector<1x1x8x1024xf32> to vector<1x8x1024xf32>
    %149 = vector.shape_cast %146 : vector<1x8x1024xf32> to vector<1x1x8x1024xf32>
    tpu.vector_store %arg6[%c0_53, %c38, %c0_54, %c0_55], %149 {strides = array<i32>} : memref<1x44x8x1024xf32, #tpu.memory_space<vmem>>, vector<1x1x8x1024xf32>,
    %150 = vector.extract_strided_slice %3 {offsets = [7, 0], sizes = [1, 1024], strides = [1, 1]} : vector<8x1024xf32> to vector<1x1024xf32>
    %151 = vector.shape_cast %150 : vector<1x1024xf32> to vector<1024xf32>
    %152 = vector.shape_cast %151 : vector<1024xf32> to vector<1x1024xf32>
    %153 = vector.shape_cast %152 : vector<1x1024xf32> to vector<1x1024xf32>
    %154 = vector.broadcast %153 : vector<1x1024xf32> to vector<8x1024xf32>
    %155 = vector.extract_strided_slice %7 {offsets = [7, 0, 0], sizes = [1, 8, 1024], strides = [1, 1, 1]} : vector<8x8x1024xf32> to vector<1x8x1024xf32>
    %156 = vector.shape_cast %155 : vector<1x8x1024xf32> to vector<8x1024xf32>
    %157 = arith.subf %154, %156 : vector<8x1024xf32>
    %158 = math.absf %157 : vector<8x1024xf32>
    %159 = arith.addf %139, %158 : vector<8x1024xf32>
    %160 = arith.mulf %157, %157 : vector<8x1024xf32>
    %161 = arith.addf %141, %160 : vector<8x1024xf32>
    %162 = vector.shape_cast %154 : vector<8x1024xf32> to vector<1x8x1024xf32>
    %c0_56 = arith.constant 0 : index
    %c28 = arith.constant 28 : index
    %c0_57 = arith.constant 0 : index
    %c0_58 = arith.constant 0 : index
    %163 = vector.load %arg6[%c0_56, %c28, %c0_57, %c0_58] : memref<1x44x8x1024xf32, #tpu.memory_space<vmem>>, vector<1x1x8x1024xf32>
    %164 = vector.shape_cast %163 : vector<1x1x8x1024xf32> to vector<1x8x1024xf32>
    %165 = vector.shape_cast %162 : vector<1x8x1024xf32> to vector<1x1x8x1024xf32>
    tpu.vector_store %arg6[%c0_56, %c28, %c0_57, %c0_58], %165 {strides = array<i32>} : memref<1x44x8x1024xf32, #tpu.memory_space<vmem>>, vector<1x1x8x1024xf32>,
    %166 = vector.shape_cast %157 : vector<8x1024xf32> to vector<1x8x1024xf32>
    %c0_59 = arith.constant 0 : index
    %c39 = arith.constant 39 : index
    %c0_60 = arith.constant 0 : index
    %c0_61 = arith.constant 0 : index
    %167 = vector.load %arg6[%c0_59, %c39, %c0_60, %c0_61] : memref<1x44x8x1024xf32, #tpu.memory_space<vmem>>, vector<1x1x8x1024xf32>
    %168 = vector.shape_cast %167 : vector<1x1x8x1024xf32> to vector<1x8x1024xf32>
    %169 = vector.shape_cast %166 : vector<1x8x1024xf32> to vector<1x1x8x1024xf32>
    tpu.vector_store %arg6[%c0_59, %c39, %c0_60, %c0_61], %169 {strides = array<i32>} : memref<1x44x8x1024xf32, #tpu.memory_space<vmem>>, vector<1x1x8x1024xf32>,
    %c0_62 = arith.constant 0 : index
    %c10 = arith.constant 10 : index
    %c0_63 = arith.constant 0 : index
    %c0_64 = arith.constant 0 : index
    %170 = vector.load %arg6[%c0_62, %c10, %c0_63, %c0_64] : memref<1x44x8x1024xf32, #tpu.memory_space<vmem>>, vector<1x8x8x1024xf32>
    %171 = vector.shape_cast %170 : vector<1x8x8x1024xf32> to vector<8x8x1024xf32>
    %172 = vector.shape_cast %7 : vector<8x8x1024xf32> to vector<1x8x8x1024xf32>
    tpu.vector_store %arg6[%c0_62, %c10, %c0_63, %c0_64], %172 {strides = array<i32>} : memref<1x44x8x1024xf32, #tpu.memory_space<vmem>>, vector<1x8x8x1024xf32>,
    %cst_65 = arith.constant -1.250000e-01 : f32
    %173 = vector.broadcast %cst_65 : f32 to vector<8x1024xf32>
    %174 = arith.mulf %159, %173 : vector<8x1024xf32>
    %175 = math.exp %174 : vector<8x1024xf32>
    %176 = vector.shape_cast %175 : vector<8x1024xf32> to vector<1x8x1024xf32>
    %177 = vector.broadcast %176 : vector<1x8x1024xf32> to vector<3x8x1024xf32>
    %178 = arith.mulf %5, %177 : vector<3x8x1024xf32>
    %cst_66 = arith.constant dense<0.000000e+00> : vector<3x1024xf32>
    %179 = vector.multi_reduction <add>, %178, %cst_66 [1] : vector<3x8x1024xf32> to vector<3x1024xf32>
    %cst_67 = arith.constant 1.250000e-01 : f32
    %180 = vector.broadcast %cst_67 : f32 to vector<3x1024xf32>
    %181 = arith.mulf %179, %180 : vector<3x1024xf32>
    %cst_68 = arith.constant dense<0xFF800000> : vector<1024xf32>
    %182 = vector.multi_reduction <maximumf>, %181, %cst_68 [0] : vector<3x1024xf32> to vector<1024xf32>
    %183 = vector.shape_cast %182 : vector<1024xf32> to vector<1x1024xf32>
    %184 = vector.broadcast %183 : vector<1x1024xf32> to vector<3x1024xf32>
    %185 = arith.subf %181, %184 : vector<3x1024xf32>
    %186 = math.exp %185 : vector<3x1024xf32>
    %cst_69 = arith.constant dense<0.000000e+00> : vector<1024xf32>
    %187 = vector.multi_reduction <add>, %186, %cst_69 [0] : vector<3x1024xf32> to vector<1024xf32>
    %188 = vector.shape_cast %187 : vector<1024xf32> to vector<1x1024xf32>
    %189 = vector.broadcast %188 : vector<1x1024xf32> to vector<3x1024xf32>
    %190 = arith.divf %186, %189 : vector<3x1024xf32>
    %cst_70 = arith.constant dense<0xFF800000> : vector<1024xf32>
    %191 = vector.multi_reduction <maximumf>, %1, %cst_70 [0] : vector<3x1024xf32> to vector<1024xf32>
    %192 = vector.shape_cast %191 : vector<1024xf32> to vector<1x1024xf32>
    %193 = vector.broadcast %192 : vector<1x1024xf32> to vector<3x1024xf32>
    %194 = arith.subf %1, %193 : vector<3x1024xf32>
    %195 = math.exp %194 : vector<3x1024xf32>
    %cst_71 = arith.constant dense<0.000000e+00> : vector<1024xf32>
    %196 = vector.multi_reduction <add>, %195, %cst_71 [0] : vector<3x1024xf32> to vector<1024xf32>
    %197 = vector.shape_cast %196 : vector<1024xf32> to vector<1x1024xf32>
    %198 = vector.broadcast %197 : vector<1x1024xf32> to vector<3x1024xf32>
    %199 = arith.divf %195, %198 : vector<3x1024xf32>
    %200 = arith.subf %190, %199 : vector<3x1024xf32>
    %201 = math.absf %200 : vector<3x1024xf32>
    %202 = vector.shape_cast %1 : vector<3x1024xf32> to vector<3x1x1024xf32>
    %203 = vector.shape_cast %202 : vector<3x1x1024xf32> to vector<3x1x1024xf32>
    %204 = vector.broadcast %203 : vector<3x1x1024xf32> to vector<3x8x1024xf32>
    %205 = arith.subf %204, %178 : vector<3x8x1024xf32>
    %206 = arith.mulf %205, %205 : vector<3x8x1024xf32>
    %cst_72 = arith.constant dense<0.000000e+00> : vector<8x1024xf32>
    %207 = vector.multi_reduction <add>, %206, %cst_72 [0] : vector<3x8x1024xf32> to vector<8x1024xf32>
    %208 = math.sqrt %207 : vector<8x1024xf32>
    %209 = arith.subf %1, %201 : vector<3x1024xf32>
    %210 = arith.mulf %209, %209 : vector<3x1024xf32>
    %cst_73 = arith.constant dense<0.000000e+00> : vector<1024xf32>
    %211 = vector.multi_reduction <add>, %210, %cst_73 [0] : vector<3x1024xf32> to vector<1024xf32>
    %212 = vector.shape_cast %211 : vector<1024xf32> to vector<1x1024xf32>
    %213 = vector.broadcast %212 : vector<1x1024xf32> to vector<8x1024xf32>
    %214 = arith.addf %161, %213 : vector<8x1024xf32>
    %215 = math.sqrt %214 : vector<8x1024xf32>
    %c0_74 = arith.constant 0 : index
    %c0_75 = arith.constant 0 : index
    %c0_76 = arith.constant 0 : index
    %c0_77 = arith.constant 0 : index
    %216 = vector.load %arg6[%c0_74, %c0_75, %c0_76, %c0_77] : memref<1x44x8x1024xf32, #tpu.memory_space<vmem>>, vector<1x3x8x1024xf32>
    %217 = vector.shape_cast %216 : vector<1x3x8x1024xf32> to vector<3x8x1024xf32>
    %218 = vector.shape_cast %178 : vector<3x8x1024xf32> to vector<1x3x8x1024xf32>
    tpu.vector_store %arg6[%c0_74, %c0_75, %c0_76, %c0_77], %218 {strides = array<i32>} : memref<1x44x8x1024xf32, #tpu.memory_space<vmem>>, vector<1x3x8x1024xf32>,
    %c0_78 = arith.constant 0 : index
    %c3 = arith.constant 3 : index
    %c0_79 = arith.constant 0 : index
    %c0_80 = arith.constant 0 : index
    %219 = vector.load %arg6[%c0_78, %c3, %c0_79, %c0_80] : memref<1x44x8x1024xf32, #tpu.memory_space<vmem>>, vector<1x3x8x1024xf32>
    %220 = vector.shape_cast %219 : vector<1x3x8x1024xf32> to vector<3x8x1024xf32>
    %221 = vector.shape_cast %204 : vector<3x8x1024xf32> to vector<1x3x8x1024xf32>
    tpu.vector_store %arg6[%c0_78, %c3, %c0_79, %c0_80], %221 {strides = array<i32>} : memref<1x44x8x1024xf32, #tpu.memory_space<vmem>>, vector<1x3x8x1024xf32>,
    %c0_81 = arith.constant 0 : index
    %c6 = arith.constant 6 : index
    %c0_82 = arith.constant 0 : index
    %c0_83 = arith.constant 0 : index
    %222 = vector.load %arg6[%c0_81, %c6, %c0_82, %c0_83] : memref<1x44x8x1024xf32, #tpu.memory_space<vmem>>, vector<1x3x8x1024xf32>
    %223 = vector.shape_cast %222 : vector<1x3x8x1024xf32> to vector<3x8x1024xf32>
    %224 = vector.shape_cast %205 : vector<3x8x1024xf32> to vector<1x3x8x1024xf32>
    tpu.vector_store %arg6[%c0_81, %c6, %c0_82, %c0_83], %224 {strides = array<i32>} : memref<1x44x8x1024xf32, #tpu.memory_space<vmem>>, vector<1x3x8x1024xf32>,
    %225 = vector.shape_cast %208 : vector<8x1024xf32> to vector<1x8x1024xf32>
    %c0_84 = arith.constant 0 : index
    %c9 = arith.constant 9 : index
    %c0_85 = arith.constant 0 : index
    %c0_86 = arith.constant 0 : index
    %226 = vector.load %arg6[%c0_84, %c9, %c0_85, %c0_86] : memref<1x44x8x1024xf32, #tpu.memory_space<vmem>>, vector<1x1x8x1024xf32>
    %227 = vector.shape_cast %226 : vector<1x1x8x1024xf32> to vector<1x8x1024xf32>
    %228 = vector.shape_cast %225 : vector<1x8x1024xf32> to vector<1x1x8x1024xf32>
    tpu.vector_store %arg6[%c0_84, %c9, %c0_85, %c0_86], %228 {strides = array<i32>} : memref<1x44x8x1024xf32, #tpu.memory_space<vmem>>, vector<1x1x8x1024xf32>,
    %229 = vector.extract_strided_slice %201 {offsets = [0, 0], sizes = [1, 1024], strides = [1, 1]} : vector<3x1024xf32> to vector<1x1024xf32>
    %230 = vector.shape_cast %229 : vector<1x1024xf32> to vector<1024xf32>
    %231 = vector.shape_cast %230 : vector<1024xf32> to vector<1x1x1024xf32>
    %232 = vector.shape_cast %231 : vector<1x1x1024xf32> to vector<1x1x1024xf32>
    %233 = vector.broadcast %232 : vector<1x1x1024xf32> to vector<1x8x1024xf32>
    %c0_87 = arith.constant 0 : index
    %c18 = arith.constant 18 : index
    %c0_88 = arith.constant 0 : index
    %c0_89 = arith.constant 0 : index
    %234 = vector.load %arg6[%c0_87, %c18, %c0_88, %c0_89] : memref<1x44x8x1024xf32, #tpu.memory_space<vmem>>, vector<1x1x8x1024xf32>
    %235 = vector.shape_cast %234 : vector<1x1x8x1024xf32> to vector<1x8x1024xf32>
    %236 = vector.shape_cast %233 : vector<1x8x1024xf32> to vector<1x1x8x1024xf32>
    tpu.vector_store %arg6[%c0_87, %c18, %c0_88, %c0_89], %236 {strides = array<i32>} : memref<1x44x8x1024xf32, #tpu.memory_space<vmem>>, vector<1x1x8x1024xf32>,
    %237 = vector.extract_strided_slice %209 {offsets = [0, 0], sizes = [1, 1024], strides = [1, 1]} : vector<3x1024xf32> to vector<1x1024xf32>
    %238 = vector.shape_cast %237 : vector<1x1024xf32> to vector<1024xf32>
    %239 = vector.shape_cast %238 : vector<1024xf32> to vector<1x1x1024xf32>
    %240 = vector.shape_cast %239 : vector<1x1x1024xf32> to vector<1x1x1024xf32>
    %241 = vector.broadcast %240 : vector<1x1x1024xf32> to vector<1x8x1024xf32>
    %c0_90 = arith.constant 0 : index
    %c40 = arith.constant 40 : index
    %c0_91 = arith.constant 0 : index
    %c0_92 = arith.constant 0 : index
    %242 = vector.load %arg6[%c0_90, %c40, %c0_91, %c0_92] : memref<1x44x8x1024xf32, #tpu.memory_space<vmem>>, vector<1x1x8x1024xf32>
    %243 = vector.shape_cast %242 : vector<1x1x8x1024xf32> to vector<1x8x1024xf32>
    %244 = vector.shape_cast %241 : vector<1x8x1024xf32> to vector<1x1x8x1024xf32>
    tpu.vector_store %arg6[%c0_90, %c40, %c0_91, %c0_92], %244 {strides = array<i32>} : memref<1x44x8x1024xf32, #tpu.memory_space<vmem>>, vector<1x1x8x1024xf32>,
    %245 = vector.extract_strided_slice %201 {offsets = [1, 0], sizes = [1, 1024], strides = [1, 1]} : vector<3x1024xf32> to vector<1x1024xf32>
    %246 = vector.shape_cast %245 : vector<1x1024xf32> to vector<1024xf32>
    %247 = vector.shape_cast %246 : vector<1024xf32> to vector<1x1x1024xf32>
    %248 = vector.shape_cast %247 : vector<1x1x1024xf32> to vector<1x1x1024xf32>
    %249 = vector.broadcast %248 : vector<1x1x1024xf32> to vector<1x8x1024xf32>
    %c0_93 = arith.constant 0 : index
    %c19 = arith.constant 19 : index
    %c0_94 = arith.constant 0 : index
    %c0_95 = arith.constant 0 : index
    %250 = vector.load %arg6[%c0_93, %c19, %c0_94, %c0_95] : memref<1x44x8x1024xf32, #tpu.memory_space<vmem>>, vector<1x1x8x1024xf32>
    %251 = vector.shape_cast %250 : vector<1x1x8x1024xf32> to vector<1x8x1024xf32>
    %252 = vector.shape_cast %249 : vector<1x8x1024xf32> to vector<1x1x8x1024xf32>
    tpu.vector_store %arg6[%c0_93, %c19, %c0_94, %c0_95], %252 {strides = array<i32>} : memref<1x44x8x1024xf32, #tpu.memory_space<vmem>>, vector<1x1x8x1024xf32>,
    %253 = vector.extract_strided_slice %209 {offsets = [1, 0], sizes = [1, 1024], strides = [1, 1]} : vector<3x1024xf32> to vector<1x1024xf32>
    %254 = vector.shape_cast %253 : vector<1x1024xf32> to vector<1024xf32>
    %255 = vector.shape_cast %254 : vector<1024xf32> to vector<1x1x1024xf32>
    %256 = vector.shape_cast %255 : vector<1x1x1024xf32> to vector<1x1x1024xf32>
    %257 = vector.broadcast %256 : vector<1x1x1024xf32> to vector<1x8x1024xf32>
    %c0_96 = arith.constant 0 : index
    %c41 = arith.constant 41 : index
    %c0_97 = arith.constant 0 : index
    %c0_98 = arith.constant 0 : index
    %258 = vector.load %arg6[%c0_96, %c41, %c0_97, %c0_98] : memref<1x44x8x1024xf32, #tpu.memory_space<vmem>>, vector<1x1x8x1024xf32>
    %259 = vector.shape_cast %258 : vector<1x1x8x1024xf32> to vector<1x8x1024xf32>
    %260 = vector.shape_cast %257 : vector<1x8x1024xf32> to vector<1x1x8x1024xf32>
    tpu.vector_store %arg6[%c0_96, %c41, %c0_97, %c0_98], %260 {strides = array<i32>} : memref<1x44x8x1024xf32, #tpu.memory_space<vmem>>, vector<1x1x8x1024xf32>,
    %261 = vector.extract_strided_slice %201 {offsets = [2, 0], sizes = [1, 1024], strides = [1, 1]} : vector<3x1024xf32> to vector<1x1024xf32>
    %262 = vector.shape_cast %261 : vector<1x1024xf32> to vector<1024xf32>
    %263 = vector.shape_cast %262 : vector<1024xf32> to vector<1x1x1024xf32>
    %264 = vector.shape_cast %263 : vector<1x1x1024xf32> to vector<1x1x1024xf32>
    %265 = vector.broadcast %264 : vector<1x1x1024xf32> to vector<1x8x1024xf32>
    %c0_99 = arith.constant 0 : index
    %c20 = arith.constant 20 : index
    %c0_100 = arith.constant 0 : index
    %c0_101 = arith.constant 0 : index
    %266 = vector.load %arg6[%c0_99, %c20, %c0_100, %c0_101] : memref<1x44x8x1024xf32, #tpu.memory_space<vmem>>, vector<1x1x8x1024xf32>
    %267 = vector.shape_cast %266 : vector<1x1x8x1024xf32> to vector<1x8x1024xf32>
    %268 = vector.shape_cast %265 : vector<1x8x1024xf32> to vector<1x1x8x1024xf32>
    tpu.vector_store %arg6[%c0_99, %c20, %c0_100, %c0_101], %268 {strides = array<i32>} : memref<1x44x8x1024xf32, #tpu.memory_space<vmem>>, vector<1x1x8x1024xf32>,
    %269 = vector.extract_strided_slice %209 {offsets = [2, 0], sizes = [1, 1024], strides = [1, 1]} : vector<3x1024xf32> to vector<1x1024xf32>
    %270 = vector.shape_cast %269 : vector<1x1024xf32> to vector<1024xf32>
    %271 = vector.shape_cast %270 : vector<1024xf32> to vector<1x1x1024xf32>
    %272 = vector.shape_cast %271 : vector<1x1x1024xf32> to vector<1x1x1024xf32>
    %273 = vector.broadcast %272 : vector<1x1x1024xf32> to vector<1x8x1024xf32>
    %c0_102 = arith.constant 0 : index
    %c42 = arith.constant 42 : index
    %c0_103 = arith.constant 0 : index
    %c0_104 = arith.constant 0 : index
    %274 = vector.load %arg6[%c0_102, %c42, %c0_103, %c0_104] : memref<1x44x8x1024xf32, #tpu.memory_space<vmem>>, vector<1x1x8x1024xf32>
    %275 = vector.shape_cast %274 : vector<1x1x8x1024xf32> to vector<1x8x1024xf32>
    %276 = vector.shape_cast %273 : vector<1x8x1024xf32> to vector<1x1x8x1024xf32>
    tpu.vector_store %arg6[%c0_102, %c42, %c0_103, %c0_104], %276 {strides = array<i32>} : memref<1x44x8x1024xf32, #tpu.memory_space<vmem>>, vector<1x1x8x1024xf32>,
    %c0_105 = arith.constant 0 : index
    %c29 = arith.constant 29 : index
    %c0_106 = arith.constant 0 : index
    %c0_107 = arith.constant 0 : index
    %277 = vector.load %arg6[%c0_105, %c29, %c0_106, %c0_107] : memref<1x44x8x1024xf32, #tpu.memory_space<vmem>>, vector<1x3x8x1024xf32>
    %278 = vector.shape_cast %277 : vector<1x3x8x1024xf32> to vector<3x8x1024xf32>
    %279 = vector.shape_cast %204 : vector<3x8x1024xf32> to vector<1x3x8x1024xf32>
    tpu.vector_store %arg6[%c0_105, %c29, %c0_106, %c0_107], %279 {strides = array<i32>} : memref<1x44x8x1024xf32, #tpu.memory_space<vmem>>, vector<1x3x8x1024xf32>,
    %280 = vector.shape_cast %215 : vector<8x1024xf32> to vector<1x8x1024xf32>
    %c0_108 = arith.constant 0 : index
    %c43 = arith.constant 43 : index
    %c0_109 = arith.constant 0 : index
    %c0_110 = arith.constant 0 : index
    %281 = vector.load %arg6[%c0_108, %c43, %c0_109, %c0_110] : memref<1x44x8x1024xf32, #tpu.memory_space<vmem>>, vector<1x1x8x1024xf32>
    %282 = vector.shape_cast %281 : vector<1x1x8x1024xf32> to vector<1x8x1024xf32>
    %283 = vector.shape_cast %280 : vector<1x8x1024xf32> to vector<1x1x8x1024xf32>
    tpu.vector_store %arg6[%c0_108, %c43, %c0_109, %c0_110], %283 {strides = array<i32>} : memref<1x44x8x1024xf32, #tpu.memory_space<vmem>>, vector<1x1x8x1024xf32>,
    return
  }
  func.func @transform_0(%arg0: i32, %arg1: i32) -> (i32, i32, i32) {
    %c0_i32 = arith.constant 0 : i32
    %c0_i32_0 = arith.constant 0 : i32
    return %arg0, %c0_i32, %arg1 : i32, i32, i32
  }
  func.func @transform_1(%arg0: i32, %arg1: i32) -> (i32, i32, i32) {
    %c0_i32 = arith.constant 0 : i32
    %c0_i32_0 = arith.constant 0 : i32
    return %arg0, %c0_i32, %arg1 : i32, i32, i32
  }
  func.func @transform_2(%arg0: i32, %arg1: i32) -> (i32, i32, i32, i32) {
    %c0_i32 = arith.constant 0 : i32
    %c0_i32_0 = arith.constant 0 : i32
    %c0_i32_1 = arith.constant 0 : i32
    return %arg0, %c0_i32, %c0_i32_0, %arg1 : i32, i32, i32, i32
  }
  func.func @transform_3(%arg0: i32, %arg1: i32) -> (i32, i32, i32, i32) {
    %c0_i32 = arith.constant 0 : i32
    %c0_i32_0 = arith.constant 0 : i32
    %c0_i32_1 = arith.constant 0 : i32
    return %arg0, %c0_i32, %c0_i32_0, %arg1 : i32, i32, i32, i32
  }
  func.func @transform_4(%arg0: i32, %arg1: i32) -> (i32, i32, i32, i32) {
    %c0_i32 = arith.constant 0 : i32
    %c0_i32_0 = arith.constant 0 : i32
    %c0_i32_1 = arith.constant 0 : i32
    return %arg0, %c0_i32, %c0_i32_0, %arg1 : i32, i32, i32, i32
  }
}

</mosaic_0001>

<bundles_post_ra>
// kernel: tpu_custom_call.1
= control target key start
LH: loop header
LB: loop body
LE: loop exit
PB: predicated region body
PF: predicated region fallthrough
CT: control target
= control target key end

     0   :  { %s6437_s0 = inlined_call_operand.vmem [shape: f32[2,3,1024], index: 0, kind: input, shape index: {}]   ;;  %s6438_s1 = inlined_call_operand.hbm [shape: f32[2,8,1024], index: 1, kind: input, shape index: {}]   ;;  %s6439_s2 = inlined_call_operand.hbm [shape: f32[2,3,8,1024], index: 2, kind: input, shape index: {}]   ;;  %s6440_s3 = inlined_call_operand.hbm [shape: f32[2,8,8,1024], index: 3, kind: input, shape index: {}]   ;;  %s6441_s4 = inlined_call_operand.hbm [shape: f32[2,44,8,1024], index: 4, kind: output, shape index: {}]  }
   0x1   :  { %6493 = sst [smem:[#allocation36_spill]] %s6439_s2 }
   0x2   :  { %9 = vsyncpa [#allocation3], 0 }
   0x3   :  { %11 = vsyncpa [#allocation3 + $0x1], 0 }
   0x4   :  { %12 = vsyncpa [#allocation6], 0 }
   0x5   :  { %14 = vsyncpa [#allocation6 + $0x1], 0 }
   0x6   :  { %15 = vsyncpa [#allocation4], 0 }
   0x7   :  { %17 = vsyncpa [#allocation4 + $0x1], 0  ;;  %s3832_s15 = smov 0   ;;  %s3834_s16 = smov 0  }
   0x8   :  { %s3836_s17 = smov 0   ;;  %s3838_s18 = smov 0  }
   0x9   :  { %s3840_s19 = smov 0   ;;  %s3842_s20 = smov 0  }
   0xa LB: > { %6494 = sst [smem:[#allocation12_spill]] %s3781_s15  ;;  %s3863_s21 = sadd.s32 4294967295, %s3801_s20   ;;  %s3801_s20 = sphi %s3842_s20, %s23_s20   ;;  %s3797_s19 = sphi %s3840_s19, %s6630_s19   ;;  %s3793_s18 = sphi %s3838_s18, %s6629_s18   ;;  %s3789_s17 = sphi %s3836_s17, %s6625_s17   ;;  %s3785_s16 = sphi %s3834_s16, %s6628_s16   ;;  %s3781_s15 = sphi %s3832_s15, %s6627_s15  }
   0xb   : > { %6495 = sst [smem:[#allocation13_spill]] %s3789_s17  ;;  %s2980_s22 = sadd.s32 4294967294, %s3801_s20  }
   0xc   : > { %6496 = sst [smem:[#allocation14_spill]] %s3801_s20  ;;  %s35_s23 = sadd.s32 1, %s3797_s19 }
   0xd   : > { %s72_s24 = sadd.s32 1, %s3789_s17  ;;  %p37_p0 = scmp.ge.s32.totalorder %s35_s23, 2 }
   0xe   : > { %p79_p1 = scmp.ne.s32.totalorder %s3789_s17, %s3785_s16  ;;  %p80_p2 = scmp.eq.s32.totalorder %s3801_s20, 0 }
   0xf   : > { %p85_p3 = scmp.ne.s32.totalorder %s3785_s16, %s3781_s15  ;;  %s6632_s23 = smov (%p37_p0, %s35_s23), 0 }
  0x10   : > { %6497 = sst [smem:[#allocation15_spill]] %s6632_s23  ;;  %p3875_p4 = por %p80_p2, %p79_p1 }
  0x11   : > { %p86_p5 = scmp.eq.s32.totalorder %s3863_s21, 0  ;;  %s67_s26 = ssub.s32 %s3797_s19, %s6632_s23 }
  0x12   : > { %p167_p6 = scmp.eq.s32.totalorder %s3863_s21, 1  ;;  %p70_p7 = scmp.eq.s32.totalorder %s67_s26, 0 }
  0x13   : > { %p3883_p8 = por %p86_p5, %p85_p3  ;;  %p173_p10 = scmp.eq.s32.totalorder %s2980_s22, 1 }
  0x14   : > { %p3887_p9 = por %p167_p6, %p79_p1  ;;  %p2982_p12 = scmp.ge.s32.totalorder %s3801_s20, 2 }
  0x15   : > { %s3892_s29 = scalar_select %p70_p7, %s3789_s17, %s72_s24  }
  0x16   : > { %s6500_s28 = scalar_select %p3887_p9, 1, 0 }
  0x17   : > { %6502 = sst [smem:[#allocation17_spill]] %s3892_s29  ;;  %p3894_p11 = por %p173_p10, %p85_p3 }
  0x18   : > { %6501 = sst [smem:[#allocation16_spill]] %s6500_s28  ;;  %p3356_p13 = scmp.lt.s32.totalorder %s3801_s20, 2 }
  0x19   : > { %s6503_s30 = scalar_select %p3894_p11, 1, 0 }
  0x1a   : > { %s3901_s5 = sand.u32 1, %s3789_s17   ;;  %s228_s6 = sand.u32 1, %s3801_s20  }
  0x1b   : > { %6504 = sst [smem:[#allocation18_spill]] %s6503_s30  ;;  %s3329_s7 = smul.u32 192, %s3901_s5 }
  0x1c   : > { %p3907_p0 = pnand %p3356_p13, %p3875_p4  ;;  %s3330_s9 = smul.u32 192, %s3797_s19 }
  0x1d   : > { %s232_s10 = scalar_lea.vmem [#allocation5], %s3329_s7  ;;  %s6506_s2 = sld [smem:[#allocation36_spill]] }
  0x1e   : > { %s242_s11 = sshll.u32 %s232_s10, 4  ;;  %s3915_s24 = scalar_lea.sflag [#allocation6], %s228_s6  ;;  %s243_s11 = int_to_ptr.vmem [resolvable:$true] %s242_s11 }
  0x1f   : > { %s3803_s25 = smov 1024   ;;  %s3804_s26 = smov 64  }
  0x20   : > { %p2990_p1 = scmp.ge.s32.totalorder %s3801_s20, 1  ;;  %p274_p2 = scmp.lt.s32.totalorder %s3801_s20, 3 }
  0x21   : > { %s3326_s10 = sshll.u32 %s3797_s19, 6  ;;  %s3327_s29 = sshll.u32 %s3797_s19, 9 }
  0x22   : > { %p3922_p3 = pnand %p2990_p1, %p274_p2  ;;  %s217_s6 = scalar_lea.hbm %s6438_s1, %s3326_s10 }
  0x23   : > { %s239_s14 = scalar_lea.hbm %s6506_s2, %s3330_s9  ;;  %s2983_s9 = sshll.u32 %s3901_s5, 6 }
  0x24   : > { %s240_s22 = sshll.u32 %s239_s14, 4  ;;  %s219_s14 = sshll.u32 %s217_s6, 4  ;;  %s241_s22 = int_to_ptr.hbm [resolvable:$true] %s240_s22  ;;  %s220_s14 = int_to_ptr.hbm [resolvable:$true] %s219_s14 }
  0x25   : > { %3348 = dma.hbm_to_vmem [thread:$0]  (!%p3907_p0), %s241_s22, 3072, %s243_s11, %s3915_s24, %s3803_s25, %s3803_s25, %s3804_s26  }
  0x26   : > { %s210_s2 = scalar_lea.vmem [#allocation2], %s2983_s9  ;;  %s207_s11 = scalar_lea.sflag [#allocation3], %s3901_s5 }
  0x27   : > { %s221_s23 = sshll.u32 %s210_s2, 4  ;;  %s2987_s22 = sshll.u32 %s3901_s5, 9  ;;  %s222_s23 = int_to_ptr.vmem [resolvable:$true] %s221_s23 }
  0x28   : > { %3345 = dma.hbm_to_vmem [thread:$0]  (!%p3907_p0), %s220_s14, 1024, %s222_s23, %s207_s11  }
  0x29   : > { %s263_s30 = scalar_lea.hbm %s6440_s3, %s3327_s29  ;;  %s256_s28 = scalar_lea.vmem [#allocation7], %s2987_s22 }
  0x2a   : > { %s264_s15 = sshll.u32 %s263_s30, 4  ;;  %s266_s12 = sshll.u32 %s256_s28, 4  ;;  %s265_s15 = int_to_ptr.hbm [resolvable:$true] %s264_s15  ;;  %s267_s12 = int_to_ptr.vmem [resolvable:$true] %s266_s12 }
  0x2b   : > { %3351 = dma.hbm_to_vmem [thread:$0]  (!%p3907_p0), %s265_s15, 8192, %s267_s12, %s3915_s24, %s3803_s25, %s3803_s25, %s3804_s26  }
  0x2c   : > { %278 = sbr.rel (%p3922_p3) target bundleno = 546 (0x222), region = 36 }
  0x31   : > { %s3945_s2 = sand.u32 1, %s3785_s16  }
  0x32   : > { %s2991_s23 = sshll.u32 %s3945_s2, 6  ;;  %s281_s5 = scalar_lea.sflag [#allocation3], %s3945_s2 }
  0x33   : > { %s3949_s17 = scalar_lea.vmem [#allocation2], %s2991_s23 }
  0x34   : > { %3768 = dma.done.wait (%p3883_p8), %s281_s5, 1024  }
  0x35   : > { %3770 = vsyncadd (%p3883_p8), %s281_s5, 4294966272  ;;  %s290_s15 = sand.u32 1, %s3863_s21   ;;  %s3331_s20 = smul.u32 192, %s3945_s2 }
  0x36   : > { %s291_s28 = scalar_lea.sflag [#allocation6], %s290_s15 }
  0x37   : > { %s3957_s29 = scalar_lea.vmem [#allocation5], %s3331_s20 }
  0x38   : > { %3772 = dma.done.wait (%p3883_p8), %s291_s28, 11264  }
  0x39   : > { %3774 = vsyncadd (%p3883_p8), %s291_s28, 4294956032  ;;  %p350_p4 = scmp.lt.s32.totalorder %s3793_s18, 1  ;;  %s2992_s26 = sshll.u32 %s3945_s2, 9  ;;  %v3982_v4 = vld [vmem:[%s3949_s17] sm:$0xff]  ;;  %vm1426_vm0 = vcmask 1042432   ;;  %vm1722_vm1 = vcmask 1043456  }
  0x3a   : > { %s3332_s7 = smul.u32 2816, %s3945_s2  ;;  %s3985_s27 = scalar_lea.vmem [#allocation7], %s2992_s26  ;;  %v463_v8 = vperm.slane %v3982_v4, 0  ;;  %v529_v9 = vperm.slane %v3982_v4, 1  ;;  %v595_v10 = vperm.slane %v3982_v4, 2  ;;  %v661_v16 = vperm.slane %v3982_v4, 3 }
  0x3b   : > { %s351_s30 = scalar_select %p350_p4, %s3793_s18, 1  ;;  %v399_v5 = vld [vmem:[%s3985_s27] sm:$0xff]  ;;  %v727_v22 = vperm.slane %v3982_v4, 4  ;;  %v793_v23 = vperm.slane %v3982_v4, 5 }
  0x3c   : > { %v407_v6 = vld [vmem:[%s3985_s27 + $0x40] sm:$0xff]  ;;  %s3989_s9 = scalar_lea.vmem [#allocation8], %s3332_s7  ;;  %v3998_v13 = vsub.f32 %v463_v8, %v399_v5  ;;  %s3333_s10 = smul.u32 2816, %s3793_s18 }
  0x3d   : > { %s3328_s8 = sshll.u32 %s351_s30, 5  ;;  %3123 = vst [vmem:[%s3989_s9 + $0x280] sm:$0xff] %v399_v5  ;;  %v415_v7 = vld [vmem:[%s3985_s27 + $0x80] sm:$0xff]  ;;  %v4011_v28 = vsub.f32 %v529_v9, %v407_v6  ;;  %s2822_s11 = sshll.u32 %s3989_s9, 4  ;;  %s2823_s11 = int_to_ptr.vmem [resolvable:$true] %s2822_s11 }
  0x3e   : > { %s357_s21 = scalar_lea.vmem %s6437_s0, %s3328_s8  ;;  %3131 = vst [vmem:[%s3989_s9 + $0x2c0] sm:$0xff] %v407_v6  ;;  %v4014_v33 = vsub.f32 %v595_v10, %v415_v7  ;;  %s2821_s14 = scalar_lea.hbm %s6441_s4, %s3333_s10 }
  0x3f   : > { %v3970_v0 = vld [vmem:[%s357_s21] sm:$0x77]  ;;  %v3972_v1 = vld [vmem:[%s357_s21 + $0x8] sm:$0x77]  ;;  %v3974_v2 = vld [vmem:[%s357_s21 + $0x10] sm:$0x77] }
  0x40   : > { %1631 = vst [vmem:[#allocation1] ss:$2 sm:$0xff] %v3970_v0  ;;  %v3978_v3 = vld [vmem:[%s357_s21 + $0x18] sm:$0x77]  ;;  %s2824_s18 = sshll.u32 %s2821_s14, 4  ;;  %s2808_s12 = scalar_lea.sflag [#allocation4], %s3945_s2  ;;  %s2825_s18 = int_to_ptr.hbm [resolvable:$true] %s2824_s18 }
  0x41   : > { %1633 = vst [vmem:[#allocation1 + $0x10] ss:$2 sm:$0xff] %v3972_v1  ;;  %s3729_s23 = sshra.s32 %s2825_s18, 4  ;;  %s3735_s20 = scalar_lea.hbm %s6441_s4, 5632  ;;  %s3730_s23 = int_to_ptr.hbm [resolvable:$true] %s3729_s23 }
  0x42   : > { %6508 = vst [vmem:[#allocation19_spill] sm:$0xff] %v3978_v3  ;;  %s3731_s5 = scalar_lea.hbm %s3730_s23, 2816  ;;  %p3736_p8 = scmp.lt.s32.totalorder %s3730_s23, %s6441_s4 }
  0x43   : > { %1635 = vst [vmem:[#allocation1 + $0x20] ss:$2 sm:$0xff] %v3974_v2  ;;  %p3732_p5 = scmp.ne.s32.totalorder %s3730_s23, %s3731_s5  ;;  %p3737_p10 = scmp.lt.s32.totalorder %s3735_s20, %s3731_s5 }
  0x44   : > { %1637 = vst [vmem:[#allocation1 + $0x30] ss:$2 sm:$0xff] %v3978_v3 }
  0x45   : > { %3139 = vst [vmem:[%s3989_s9 + $0x300] sm:$0xff] %v415_v7  ;;  %p3733_p6 = pnand %p3732_p5, %p3887_p9  ;;  %p3738_p13 = por %p3737_p10, %p3736_p8 }
  0x46   : > { %2995 = vst [vmem:[%s3989_s9 + $0x540] sm:$0xff] %v463_v8 }
  0x47   : > { %v1638_v11 = vld.sshfl [vmem:[#allocation1] sm:$0xff pattern:$0x75316420]  ;;  %v1639_v12 = vld.sshfl [vmem:[#allocation1 + $0x8] sm:$0xff pattern:$0x75316420]  ;;  %p3734_p7 = pneg %p3733_p6 }
  0x48   : > { %v1654_v14 = vsel %vm1426_vm0, %v1638_v11, -inf  ;;  %v1640_v15 = vld.sshfl [vmem:[#allocation1 + $0x10] sm:$0xff pattern:$0x75316420]  ;;  %v1661_v18 = vsel %vm1426_vm0, %v1639_v12, -inf  ;;  %3003 = vst [vmem:[%s3989_s9 + $0x800] sm:$0xff] %v3998_v13 }
  0x49   : > { %v1655_v17 = vrot.slane %v1654_v14, 4  ;;  %v1641_v19 = vld.sshfl [vmem:[#allocation1 + $0x18] sm:$0xff pattern:$0x75316420]  ;;  %v1662_v20 = vrot.slane %v1661_v18, 4  ;;  %v1668_v21 = vsel %vm1426_vm0, %v1640_v15, -inf  ;;  %p3739_p0 = pnand %p3738_p13, %p3734_p7 }
  0x4a   : > { %3011 = vst [vmem:[%s3989_s9 + $0x580] sm:$0xff] %v529_v9  ;;  %v1669_v25 = vrot.slane %v1668_v21, 4  ;;  %v1675_v26 = vsel %vm1426_vm0, %v1641_v19, -inf  ;;  %v1642_v27 = vld.sshfl [vmem:[#allocation1 + $0x20] sm:$0xff pattern:$0x75316420] }
  0x4b   : > { %v1656_v24 = vmax.f32 %v1654_v14, %v1655_v17  ;;  %v1663_v29 = vmax.f32 %v1661_v18, %v1662_v20  ;;  %v1676_v30 = vrot.slane %v1675_v26, 4  ;;  %v1643_v31 = vld.sshfl [vmem:[#allocation1 + $0x28] sm:$0xff pattern:$0x75316420]  ;;  %v1682_v32 = vsel %vm1426_vm0, %v1642_v27, -inf  ;;  %3019 = vst [vmem:[%s3989_s9 + $0x840] sm:$0xff] %v4011_v28 }
  0x4c   : > { %v1670_v35 = vmax.f32 %v1668_v21, %v1669_v25  ;;  %v1683_v36 = vrot.slane %v1682_v32, 4  ;;  %v1689_v37 = vsel %vm1426_vm0, %v1643_v31, -inf  ;;  %v1644_v38 = vld.sshfl [vmem:[#allocation1 + $0x30] sm:$0xff pattern:$0x75316420]  ;;  %3027 = vst [vmem:[%s3989_s9 + $0x5c0] sm:$0xff] %v595_v10 }
  0x4d   : > { %v1657_v34 = vrot.slane %v1656_v24, 2  ;;  %v1664_v39 = vrot.slane %v1663_v29, 2  ;;  %v1677_v40 = vmax.f32 %v1675_v26, %v1676_v30  ;;  %v1690_v41 = vrot.slane %v1689_v37, 4  ;;  %v1645_v42 = vld.sshfl [vmem:[#allocation1 + $0x38] sm:$0xff pattern:$0x75316420] }
  0x4e   : > { %v1696_v43 = vsel %vm1426_vm0, %v1644_v38, -inf  ;;  %v1671_v45 = vrot.slane %v1670_v35, 2  ;;  %v1684_v46 = vmax.f32 %v1682_v32, %v1683_v36  ;;  %v1703_v51 = vsel %vm1426_vm0, %v1645_v42, -inf  ;;  %3035 = vst [vmem:[%s3989_s9 + $0x880] sm:$0xff] %v4014_v33  ;;  %v423_v9 = vld [vmem:[%s3985_s27 + $0xc0] sm:$0xff] }
  0x4f   : > { %v1658_v44 = vmax.f32 %v1656_v24, %v1657_v34  ;;  %v1697_v47 = vrot.slane %v1696_v43, 4  ;;  %v1665_v48 = vmax.f32 %v1663_v29, %v1664_v39  ;;  %v1678_v49 = vrot.slane %v1677_v40, 2  ;;  %3043 = vst [vmem:[%s3989_s9 + $0x600] sm:$0xff] %v661_v16  ;;  %v431_v14 = vld [vmem:[%s3985_s27 + $0x100] sm:$0xff] }
  0x50   : > { %v1691_v50 = vmax.f32 %v1689_v37, %v1690_v41  ;;  %v1672_v53 = vmax.f32 %v1670_v35, %v1671_v45  ;;  %v1685_v54 = vrot.slane %v1684_v46, 2  ;;  %v1704_v59 = vrot.slane %v1703_v51, 4  ;;  %3059 = vst [vmem:[%s3989_s9 + $0x640] sm:$0xff] %v727_v22  ;;  %v439_v21 = vld [vmem:[%s3985_s27 + $0x140] sm:$0xff] }
  0x51   : > { %v1659_v52 = vrot.slane %v1658_v44, 1  ;;  %v1698_v55 = vmax.f32 %v1696_v43, %v1697_v47  ;;  %v1666_v56 = vrot.slane %v1665_v48, 1  ;;  %v1679_v57 = vmax.f32 %v1677_v40, %v1678_v49  ;;  %3075 = vst [vmem:[%s3989_s9 + $0x680] sm:$0xff] %v793_v23  ;;  %v447_v24 = vld [vmem:[%s3985_s27 + $0x180] sm:$0xff]  ;;  %v4062_v49 = vld [vmem:[%s3949_s17 + $0x8] sm:$0xff] }
  0x52   : > { %v1692_v58 = vrot.slane %v1691_v50, 2  ;;  %v1673_v61 = vrot.slane %v1672_v53, 1  ;;  %v1686_v62 = vmax.f32 %v1684_v46, %v1685_v54  ;;  %v1705_v8 = vmax.f32 %v1703_v51, %v1704_v59  ;;  %3147 = vst [vmem:[%s3989_s9 + $0x340] sm:$0xff] %v423_v9  ;;  %v455_v34 = vld [vmem:[%s3985_s27 + $0x1c0] sm:$0xff] }
  0x53   : > { %v1660_v60 = vmax.f32 %v1658_v44, %v1659_v52  ;;  %v1699_v63 = vrot.slane %v1698_v55, 2  ;;  %v1667_v5 = vmax.f32 %v1665_v48, %v1666_v56  ;;  %v1680_v6 = vrot.slane %v1679_v57, 1  ;;  %3155 = vst [vmem:[%s3989_s9 + $0x380] sm:$0xff] %v431_v14 }
  0x54   : > { %v1693_v7 = vmax.f32 %v1691_v50, %v1692_v58  ;;  %v1674_v10 = vmax.f32 %v1672_v53, %v1673_v61  ;;  %v1687_v11 = vrot.slane %v1686_v62, 1  ;;  %v479_v15 = vand.u32 2147483647, %v3998_v13  ;;  %3163 = vst [vmem:[%s3989_s9 + $0x3c0] sm:$0xff] %v439_v21  ;;  %v416_v53 = vld [vmem:[%s3985_s27 + $0x88] sm:$0xff] }
  0x55   : > { %v1700_v12 = vmax.f32 %v1698_v55, %v1699_v63  ;;  %v1718_v17 = vrot.slane %v1667_v5, 4  ;;  %v1681_v18 = vmax.f32 %v1679_v57, %v1680_v6  ;;  %v1706_v20 = vrot.slane %v1705_v8, 2  ;;  %3171 = vst [vmem:[%s3989_s9 + $0x400] sm:$0xff] %v447_v24 }
  0x56   : > { %v1694_v19 = vrot.slane %v1693_v7, 1  ;;  %v1688_v25 = vmax.f32 %v1686_v62, %v1687_v11  ;;  %v545_v27 = vand.u32 2147483647, %v4011_v28  ;;  %v611_v29 = vand.u32 2147483647, %v4014_v33  ;;  %3179 = vst [vmem:[%s3989_s9 + $0x440] sm:$0xff] %v455_v34 }
  0x57   : > { %v1701_v26 = vrot.slane %v1700_v12, 1  ;;  %v1723_v13 = vsel %vm1722_vm1, %v1660_v60, %v1718_v17  ;;  %v1719_v30 = vrot.slane %v1681_v18, 4  ;;  %v1707_v32 = vmax.f32 %v1705_v8, %v1706_v20  ;;  %v400_v28 = vld [vmem:[%s3985_s27 + $0x8] sm:$0xff]  ;;  %3140 = vst [vmem:[%s3989_s9 + $0x308] sm:$0xff] %v416_v53 }
  0x58   : > { %v1695_v31 = vmax.f32 %v1693_v7, %v1694_v19  ;;  %v1731_v35 = vsub.f32 %v3970_v0, %v1723_v13  ;;  %v553_v37 = vadd.f32 %v545_v27, %v479_v15  ;;  %v669_v38 = vsub.f32 %v661_v16, %v423_v9  ;;  %3124 = vst [vmem:[%s3989_s9 + $0x288] sm:$0xff] %v400_v28  ;;  %v4084_v15 = vld [vmem:[%s3985_s27 + $0xc8] sm:$0xff] }
  0x59   : > { %v1702_v36 = vmax.f32 %v1700_v12, %v1701_v26  ;;  %v1724_v33 = vsel %vm1722_vm1, %v1674_v10, %v1719_v30  ;;  %v1708_v40 = vrot.slane %v1707_v32, 1  ;;  %v735_v41 = vsub.f32 %v727_v22, %v431_v14  ;;  %v408_v22 = vld [vmem:[%s3985_s27 + $0x48] sm:$0xff]  ;;  %3148 = vst [vmem:[%s3989_s9 + $0x348] sm:$0xff] %v4084_v15 }
  0x5a   : > { %v1720_v39 = vrot.slane %v1695_v31, 4  ;;  %v1735_v42 = vmul.f32 1.442695, %v1731_v35  ;;  %v1732_v43 = vsub.f32 %v3972_v1, %v1724_v33  ;;  %v619_v44 = vadd.f32 %v611_v29, %v553_v37  ;;  %3051 = vst [vmem:[%s3989_s9 + $0x8c0] sm:$0xff] %v669_v38  ;;  %v4090_v20 = vld [vmem:[%s3985_s27 + $0x108] sm:$0xff] }
  0x5b   : > { %v677_v16 = vand.u32 2147483647, %v669_v38  ;;  %v1709_v46 = vmax.f32 %v1707_v32, %v1708_v40  ;;  %v743_v47 = vand.u32 2147483647, %v735_v41  ;;  %v801_v48 = vsub.f32 %v793_v23, %v439_v21  ;;  %3067 = vst [vmem:[%s3989_s9 + $0x900] sm:$0xff] %v735_v41  ;;  %v4098_v27 = vld [vmem:[%s3985_s27 + $0x148] sm:$0xff] }
  0x5c   : > { %v1725_v45 = vsel %vm1722_vm1, %v1688_v25, %v1720_v39  ;;  %3410 = vpow2.f32 %v1735_v42  ;;  %v1737_v50 = vmul.f32 1.442695, %v1732_v43  ;;  %3132 = vst [vmem:[%s3989_s9 + $0x2c8] sm:$0xff] %v408_v22  ;;  %v859_v56 = vperm.slane %v3982_v4, 6  ;;  %v4105_v32 = vld [vmem:[%s3949_s17 + $0x10] sm:$0xff] }
  0x5d   : > { %v1733_v51 = vsub.f32 %v3974_v2, %v1725_v45  ;;  %v685_v52 = vadd.f32 %v677_v16, %v619_v44  ;;  %v1721_v54 = vrot.slane %v1709_v46, 4  ;;  %v809_v55 = vand.u32 2147483647, %v801_v48  ;;  %3083 = vst [vmem:[%s3989_s9 + $0x940] sm:$0xff] %v801_v48  ;;  %v4125_v16 = vld [vmem:[%s3985_s27 + $0x188] sm:$0xff] }
  0x5e   : > { %v925_v23 = vperm.slane %v3982_v4, 7  ;;  %3412 = vpow2.f32 %v1737_v50  ;;  %v464_v59 = vperm.slane %v4062_v49, 0  ;;  %v867_v61 = vsub.f32 %v859_v56, %v447_v24  ;;  %3091 = vst [vmem:[%s3989_s9 + $0x6c0] sm:$0xff] %v859_v56 }
  0x5f   : > { %v1739_v57 = vmul.f32 1.442695, %v1733_v51  ;;  %v751_v58 = vadd.f32 %v743_v47, %v685_v52  ;;  %v1726_v60 = vsel %vm1722_vm1, %v1702_v36, %v1721_v54  ;;  %v530_v63 = vperm.slane %v4062_v49, 1  ;;  %v4132_v51 = vld [vmem:[%s3985_s27 + $0x1c8] sm:$0xff]  ;;  %3156 = vst [vmem:[%s3989_s9 + $0x388] sm:$0xff] %v4090_v20 }
  0x60   : > { %v933_v62 = vsub.f32 %v925_v23, %v455_v34  ;;  %v1734_v4 = vsub.f32 %v3978_v3, %v1726_v60  ;;  %3107 = vst [vmem:[%s3989_s9 + $0x700] sm:$0xff] %v925_v23  ;;  %v472_v6 = vsub.f32 %v464_v59, %v400_v28  ;;  %v875_v7 = vand.u32 2147483647, %v867_v61 }
  0x61   : > { %3414 = vpow2.f32 %v1739_v57  ;;  %v817_v5 = vadd.f32 %v809_v55, %v751_v58  ;;  %3099 = vst [vmem:[%s3989_s9 + $0x980] sm:$0xff] %v867_v61  ;;  %v538_v9 = vsub.f32 %v530_v63, %v408_v22  ;;  %v596_v18 = vperm.slane %v4062_v49, 2 }
  0x62   : > { %v941_v8 = vand.u32 2147483647, %v933_v62  ;;  %v4079_v10 = vpop.eup %3410  ;;  %v1741_v11 = vmul.f32 1.442695, %v1734_v4  ;;  %3115 = vst [vmem:[%s3989_s9 + $0x9c0] sm:$0xff] %v933_v62  ;;  %v662_v21 = vperm.slane %v4062_v49, 3 }
  0x63   : > { %v480_v12 = vand.u32 2147483647, %v472_v6  ;;  %1747 = vst [vmem:[#allocation1] ss:$2 sm:$0xff] %v4079_v10  ;;  %v883_v14 = vadd.f32 %v875_v7, %v817_v5  ;;  %v546_v17 = vand.u32 2147483647, %v538_v9  ;;  %v604_v13 = vsub.f32 %v596_v18, %v416_v53 }
  0x64   : > { %v4087_v19 = vpop.eup %3412  ;;  %3416 = vpow2.f32 %v1741_v11  ;;  %v728_v24 = vperm.slane %v4062_v49, 4  ;;  %v794_v25 = vperm.slane %v4062_v49, 5  ;;  %2996 = vst [vmem:[%s3989_s9 + $0x548] sm:$0xff] %v464_v59  ;;  %v670_v31 = vsub.f32 %v662_v21, %v4084_v15 }
  0x65   : > { %1749 = vst [vmem:[#allocation1 + $0x10] ss:$2 sm:$0xff] %v4087_v19  ;;  %v949_v26 = vadd.f32 %v941_v8, %v883_v14  ;;  %v554_v29 = vadd.f32 %v546_v17, %v480_v12  ;;  %v612_v35 = vand.u32 2147483647, %v604_v13  ;;  %v860_v38 = vperm.slane %v4062_v49, 6  ;;  %v375_v8 = vld [vmem:[%s3957_s29] sm:$0xff] }
  0x66   : > { %3004 = vst [vmem:[%s3989_s9 + $0x808] sm:$0xff] %v472_v6  ;;  %v4111_v36 = vsub.f32 %v728_v24, %v4090_v20  ;;  %v4116_v37 = vsub.f32 %v794_v25, %v4098_v27  ;;  %v926_v28 = vperm.slane %v4062_v49, 7  ;;  %v678_v40 = vand.u32 2147483647, %v670_v31 }
  0x67   : > { %v4100_v30 = vpop.eup %3414  ;;  %v1056_v34 = vmul.f32 -0.125, %v949_v26  ;;  %v620_v39 = vadd.f32 %v612_v35, %v554_v29  ;;  %3012 = vst [vmem:[%s3989_s9 + $0x588] sm:$0xff] %v530_v63  ;;  %v465_v41 = vperm.slane %v4105_v32, 0  ;;  %v4143_v63 = vsub.f32 %v860_v38, %v4125_v16 }
  0x68   : > { %1751 = vst [vmem:[#allocation1 + $0x20] ss:$2 sm:$0xff] %v4100_v30  ;;  %v744_v47 = vand.u32 2147483647, %v4111_v36  ;;  %v810_v55 = vand.u32 2147483647, %v4116_v37  ;;  %v4152_v17 = vsub.f32 %v926_v28, %v4132_v51 }
  0x69   : > { %v1064_v33 = vmul.f32 1.442695, %v1056_v34  ;;  %3020 = vst [vmem:[%s3989_s9 + $0x848] sm:$0xff] %v538_v9  ;;  %v686_v54 = vadd.f32 %v678_v40, %v620_v39 }
  0x6a   : > { %v4122_v42 = vpop.eup %3416  ;;  %v1754_v43 = vld.sshfl [vmem:[#allocation1] sm:$0xff pattern:$0x75316420]  ;;  %v1755_v44 = vld.sshfl [vmem:[#allocation1 + $0x8] sm:$0xff pattern:$0x75316420] }
  0x6b   : > { %1753 = vst [vmem:[#allocation1 + $0x30] ss:$2 sm:$0xff] %v4122_v42  ;;  %v1770_v45 = vsel %vm1426_vm0, %v1754_v43, 0.0  ;;  %v1777_v46 = vsel %vm1426_vm0, %v1755_v44, 0.0  ;;  %3418 = vpow2.f32 %v1064_v33  ;;  %v752_v14 = vadd.f32 %v744_v47, %v686_v54 }
  0x6c   : > { %v1771_v48 = vrot.slane %v1770_v45, 4  ;;  %v1778_v22 = vrot.slane %v1777_v46, 4  ;;  %v1756_v50 = vld.sshfl [vmem:[#allocation1 + $0x10] sm:$0xff pattern:$0x75316420]  ;;  %3028 = vst [vmem:[%s3989_s9 + $0x5c8] sm:$0xff] %v596_v18 }
  0x6d   : > { %v1757_v52 = vld.sshfl [vmem:[#allocation1 + $0x18] sm:$0xff pattern:$0x75316420]  ;;  %v1784_v53 = vsel %vm1426_vm0, %v1756_v50, 0.0  ;;  %3036 = vst [vmem:[%s3989_s9 + $0x888] sm:$0xff] %v604_v13 }
  0x6e   : > { %v1772_v56 = vadd.f32 %v1771_v48, %v1770_v45  ;;  %v1779_v23 = vadd.f32 %v1778_v22, %v1777_v46  ;;  %v1785_v57 = vrot.slane %v1784_v53, 4  ;;  %v1791_v58 = vsel %vm1426_vm0, %v1757_v52, 0.0  ;;  %3044 = vst [vmem:[%s3989_s9 + $0x608] sm:$0xff] %v662_v21  ;;  %v383_v22 = vld [vmem:[%s3957_s29 + $0x40] sm:$0xff] }
  0x6f   : > { %v1758_v59 = vld.sshfl [vmem:[#allocation1 + $0x20] sm:$0xff pattern:$0x75316420]  ;;  %v1792_v60 = vrot.slane %v1791_v58, 4  ;;  %3052 = vst [vmem:[%s3989_s9 + $0x8c8] sm:$0xff] %v670_v31 }
  0x70   : > { %v1759_v61 = vld.sshfl [vmem:[#allocation1 + $0x28] sm:$0xff pattern:$0x75316420]  ;;  %v1798_v62 = vsel %vm1426_vm0, %v1758_v59, 0.0  ;;  %v1773_v4 = vrot.slane %v1772_v56, 2  ;;  %v1780_v5 = vrot.slane %v1779_v23, 2  ;;  %v1786_v6 = vadd.f32 %v1785_v57, %v1784_v53 }
  0x71   : > { %v1799_v7 = vrot.slane %v1798_v62, 4  ;;  %v3419_v9 = vpop.eup %3418  ;;  %v1793_v11 = vadd.f32 %v1792_v60, %v1791_v58  ;;  %v1805_v12 = vsel %vm1426_vm0, %v1759_v61, 0.0  ;;  %3060 = vst [vmem:[%s3989_s9 + $0x648] sm:$0xff] %v728_v24  ;;  %v876_v54 = vand.u32 2147483647, %v4143_v63  ;;  %v391_v58 = vld [vmem:[%s3957_s29 + $0x80] sm:$0xff] }
  0x72   : > { %v1774_v18 = vadd.f32 %v1773_v4, %v1772_v56  ;;  %v1781_v26 = vadd.f32 %v1780_v5, %v1779_v23  ;;  %v1787_v29 = vrot.slane %v1786_v6, 2  ;;  %v1760_v34 = vld.sshfl [vmem:[#allocation1 + $0x30] sm:$0xff pattern:$0x75316420]  ;;  %v1806_v35 = vrot.slane %v1805_v12, 4  ;;  %3068 = vst [vmem:[%s3989_s9 + $0x908] sm:$0xff] %v4111_v36 }
  0x73   : > { %v1800_v13 = vadd.f32 %v1799_v7, %v1798_v62  ;;  %v1794_v21 = vrot.slane %v1793_v11, 2  ;;  %v1761_v33 = vld.sshfl [vmem:[#allocation1 + $0x38] sm:$0xff pattern:$0x75316420]  ;;  %v1812_v39 = vsel %vm1426_vm0, %v1760_v34, 0.0  ;;  %v1080_v40 = vmul.f32 %v3419_v9, %v375_v8  ;;  %3076 = vst [vmem:[%s3989_s9 + $0x688] sm:$0xff] %v794_v25 }
  0x74   : > { %v1775_v43 = vrot.slane %v1774_v18, 1  ;;  %v1782_v31 = vrot.slane %v1781_v26, 1  ;;  %v1788_v44 = vadd.f32 %v1787_v29, %v1786_v6  ;;  %v1807_v47 = vadd.f32 %v1806_v35, %v1805_v12  ;;  %3084 = vst [vmem:[%s3989_s9 + $0x948] sm:$0xff] %v4116_v37  ;;  %v4175_v4 = vld [vmem:[%s3985_s27 + $0x10] sm:$0xff] }
  0x75   : > { %v1801_v45 = vrot.slane %v1800_v13, 2  ;;  %v1795_v46 = vadd.f32 %v1794_v21, %v1793_v11  ;;  %v1813_v48 = vrot.slane %v1812_v39, 4  ;;  %v1819_v24 = vsel %vm1426_vm0, %v1761_v33, 0.0  ;;  %2536 = vst [vmem:[%s3989_s9] sm:$0xff] %v1080_v40 }
  0x76   : > { %v1783_v50 = vadd.f32 %v1782_v31, %v1781_v26  ;;  %v1789_v52 = vrot.slane %v1788_v44, 1  ;;  %v1808_v56 = vrot.slane %v1807_v47, 2  ;;  %v1820_v57 = vrot.slane %v1819_v24, 4  ;;  %3092 = vst [vmem:[%s3989_s9 + $0x6c8] sm:$0xff] %v860_v38 }
  0x77   : > { %v1802_v53 = vadd.f32 %v1801_v45, %v1800_v13  ;;  %v1796_v36 = vrot.slane %v1795_v46, 1  ;;  %v1814_v23 = vadd.f32 %v1813_v48, %v1812_v39  ;;  %v1776_v59 = vadd.f32 %v1775_v43, %v1774_v18  ;;  %3100 = vst [vmem:[%s3989_s9 + $0x988] sm:$0xff] %v4143_v63 }
  0x78   : > { %v1834_v60 = vrot.slane %v1783_v50, 4  ;;  %v1088_v61 = vmul.f32 %v3419_v9, %v383_v22  ;;  %v818_v62 = vadd.f32 %v810_v55, %v752_v14  ;;  %v1809_v5 = vadd.f32 %v1808_v56, %v1807_v47  ;;  %3108 = vst [vmem:[%s3989_s9 + $0x708] sm:$0xff] %v926_v28 }
  0x79   : > { %v1797_v25 = vadd.f32 %v1796_v36, %v1795_v46  ;;  %v1815_v6 = vrot.slane %v1814_v23, 2  ;;  %v1821_v7 = vadd.f32 %v1820_v57, %v1819_v24  ;;  %v1096_v37 = vmul.f32 %v3419_v9, %v391_v58  ;;  %3116 = vst [vmem:[%s3989_s9 + $0x9c8] sm:$0xff] %v4152_v17  ;;  %v4241_v58 = vld [vmem:[%s3985_s27 + $0x50] sm:$0xff] }
  0x7a   : > { %v4180_v8 = vsel %vm1722_vm1, %v1776_v59, %v1834_v60  ;;  %v1104_v11 = vrot.slane %v1080_v40, 4  ;;  %2544 = vst [vmem:[%s3989_s9 + $0x40] sm:$0xff] %v1088_v61  ;;  %v1790_v55 = vadd.f32 %v1789_v52, %v1788_v44  ;;  %v1803_v38 = vrot.slane %v1802_v53, 1 }
  0x7b   : > { %3420 = vrcp.f32 %v4180_v8  ;;  %v4190_v12 = vsub.f32 %v465_v41, %v4175_v4  ;;  %v1835_v63 = vrot.slane %v1797_v25, 4  ;;  %v1810_v14 = vrot.slane %v1809_v5, 1  ;;  %2552 = vst [vmem:[%s3989_s9 + $0x80] sm:$0xff] %v1096_v37 }
  0x7c   : > { %v1816_v18 = vadd.f32 %v1815_v6, %v1814_v23  ;;  %v1822_v9 = vrot.slane %v1821_v7, 2  ;;  %v1105_v26 = vadd.f32 %v1104_v11, %v1080_v40  ;;  %v1152_v29 = vrot.slane %v1088_v61, 4  ;;  %3164 = vst [vmem:[%s3989_s9 + $0x3c8] sm:$0xff] %v4098_v27 }
  0x7d   : > { %v884_v13 = vadd.f32 %v876_v54, %v818_v62  ;;  %v942_v34 = vand.u32 2147483647, %v4152_v17  ;;  %v1855_v49 = vand.u32 2147483647, %v4180_v8  ;;  %v4198_v28 = vsel %vm1722_vm1, %v1790_v55, %v1835_v63  ;;  %3172 = vst [vmem:[%s3989_s9 + $0x408] sm:$0xff] %v4125_v16  ;;  %v4274_v63 = vld [vmem:[%s3985_s27 + $0x110] sm:$0xff] }
  0x7e   : > { %v1811_v21 = vadd.f32 %v1810_v14, %v1809_v5  ;;  %v1823_v35 = vadd.f32 %v1822_v9, %v1821_v7  ;;  %v1857_v33 = vand.u32 2147483648, %v4180_v8  ;;  %3422 = vrcp.f32 %v4198_v28  ;;  %3180 = vst [vmem:[%s3989_s9 + $0x448] sm:$0xff] %v4132_v51  ;;  %v4257_v5 = vld [vmem:[%s3985_s27 + $0x90] sm:$0xff] }
  0x7f   : > { %v1817_v39 = vrot.slane %v1816_v18, 1  ;;  %v481_v40 = vand.u32 2147483647, %v4190_v12  ;;  %v1804_v17 = vadd.f32 %v1803_v38, %v1802_v53  ;;  %v1106_v44 = vrot.slane %v1105_v26, 2  ;;  %2997 = vst [vmem:[%s3989_s9 + $0x550] sm:$0xff] %v465_v41  ;;  %v4267_v7 = vld [vmem:[%s3985_s27 + $0xd0] sm:$0xff] }
  0x80   : > { %v1836_v43 = vrot.slane %v1811_v21, 4  ;;  %v1824_v31 = vrot.slane %v1823_v35, 1  ;;  %vm1851_vm2 = vweird.f32 %v4180_v8  ;;  %v1872_v15 = vand.u32 2147483648, %v4198_v28  ;;  %3005 = vst [vmem:[%s3989_s9 + $0x810] sm:$0xff] %v4190_v12  ;;  %v4277_v14 = vld [vmem:[%s3985_s27 + $0x150] sm:$0xff] }
  0x81   : > { %v4209_v45 = vpop.eup %3420  ;;  %v1153_v46 = vadd.f32 %v1152_v29, %v1088_v61  ;;  %v1200_v47 = vrot.slane %v1096_v37, 4  ;;  %vm4217_vm3 = vcmp.eq.f32.partialorder %v1855_v49, 8.507059e+37  ;;  %v1870_v27 = vand.u32 2147483647, %v4198_v28  ;;  %3125 = vst [vmem:[%s3989_s9 + $0x290] sm:$0xff] %v4175_v4 }
  0x82   : > { %v1847_v20 = vmul.f32 %v4209_v45, %v4180_v8  ;;  %v4223_v24 = vsel %vm1722_vm1, %v1804_v17, %v1836_v43  ;;  %v1825_v22 = vadd.f32 %v1824_v31, %v1823_v35  ;;  %v1858_v50 = vor.u32 1.1754944e-38, %v1857_v33  ;;  %3133 = vst [vmem:[%s3989_s9 + $0x2d0] sm:$0xff] %v4241_v58  ;;  %v4302_v35 = vld [vmem:[%s3985_s27 + $0x190] sm:$0xff] }
  0x83   : > { %3424 = vrcp.f32 %v4223_v24  ;;  %v1887_v16 = vand.u32 2147483648, %v4223_v24  ;;  %v1818_v52 = vadd.f32 %v1817_v39, %v1816_v18  ;;  %vm1866_vm4 = vweird.f32 %v4198_v28  ;;  %3141 = vst [vmem:[%s3989_s9 + $0x310] sm:$0xff] %v4257_v5  ;;  %v4309_v31 = vld [vmem:[%s3985_s27 + $0x1d0] sm:$0xff] }
  0x84   : > { %v1848_v53 = vsub.f32 1.0, %v1847_v20  ;;  %v1837_v54 = vrot.slane %v1825_v22, 4  ;;  %v1107_v36 = vadd.f32 %v1106_v44, %v1105_v26  ;;  %v1154_v56 = vrot.slane %v1153_v46, 2  ;;  %v4235_v51 = vpop.eup %3422  ;;  %3149 = vst [vmem:[%s3989_s9 + $0x350] sm:$0xff] %v4267_v7 }
  0x85   : > { %vm1852_vm5 = vweird.f32 %v4209_v45  ;;  %v4238_v23 = vor.u32 1.1754944e-38, %v1872_v15  ;;  %v1201_v57 = vadd.f32 %v1200_v47, %v1096_v37  ;;  %v950_v41 = vadd.f32 %v942_v34, %v884_v13  ;;  %3157 = vst [vmem:[%s3989_s9 + $0x390] sm:$0xff] %v4274_v63  ;;  %v4319_v47 = vld [vmem:[%s3985_s27 + $0x18] sm:$0xff] }
  0x86   : > { %v1849_v59 = vmul.f32 %v4209_v45, %v1848_v53  ;;  %v1862_v60 = vmul.f32 %v4235_v51, %v4198_v28  ;;  %vm4248_vm6 = vcmp.eq.f32.partialorder %v1870_v27, 8.507059e+37  ;;  %v1885_v62 = vand.u32 2147483647, %v4223_v24  ;;  %vm1853_vm9 = vmor %vm1851_vm2, %vm1852_vm5  ;;  %3165 = vst [vmem:[%s3989_s9 + $0x3d0] sm:$0xff] %v4277_v14 }
  0x87   : > { %v4254_v25 = vsel %vm1722_vm1, %v1818_v52, %v1837_v54  ;;  %vm1867_vm7 = vweird.f32 %v4235_v51  ;;  %v4262_v4 = vor.u32 1.1754944e-38, %v1887_v16  ;;  %vm1881_vm8 = vweird.f32 %v4223_v24  ;;  %3173 = vst [vmem:[%s3989_s9 + $0x410] sm:$0xff] %v4302_v35 }
  0x88   : > { %3426 = vrcp.f32 %v4254_v25  ;;  %v1902_v6 = vand.u32 2147483648, %v4254_v25  ;;  %v1850_v37 = vadd.f32 %v4209_v45, %v1849_v59  ;;  %v1863_v11 = vsub.f32 1.0, %v1862_v60  ;;  %3181 = vst [vmem:[%s3989_s9 + $0x450] sm:$0xff] %v4309_v31  ;;  %vm1868_vm13 = vmor %vm1866_vm4, %vm1867_vm7  ;;  %v4350_v60 = vld [vmem:[%s3985_s27 + $0x98] sm:$0xff] }
  0x89   : > { %v1108_v55 = vrot.slane %v1107_v36, 1  ;;  %v1155_v38 = vadd.f32 %v1154_v56, %v1153_v46  ;;  %v4281_v18 = vpop.eup %3424  ;;  %v1900_v9 = vand.u32 2147483647, %v4254_v25  ;;  %v1202_v29 = vrot.slane %v1201_v57, 2  ;;  %3126 = vst [vmem:[%s3989_s9 + $0x298] sm:$0xff] %v4319_v47  ;;  %v4344_v56 = vld [vmem:[%s3985_s27 + $0x58] sm:$0xff] }
  0x8a   : > { %v4288_v26 = vor.u32 1.1754944e-38, %v1902_v6  ;;  %v1057_v13 = vmul.f32 -0.125, %v950_v41  ;;  %v1854_v34 = vsel %vm1853_vm9, %v4209_v45, %v1850_v37  ;;  %v1864_v49 = vmul.f32 %v4235_v51, %v1863_v11  ;;  %3134 = vst [vmem:[%s3989_s9 + $0x2d8] sm:$0xff] %v4344_v56 }
  0x8b   : > { %v1877_v21 = vmul.f32 %v4281_v18, %v4223_v24  ;;  %vm1882_vm10 = vweird.f32 %v4281_v18  ;;  %vm4297_vm11 = vcmp.eq.f32.partialorder %v1885_v62, 8.507059e+37  ;;  %v1859_v33 = vsel %vm4217_vm3, %v1858_v50, %v1854_v34  ;;  %3142 = vst [vmem:[%s3989_s9 + $0x318] sm:$0xff] %v4350_v60 }
  0x8c   : > { %v1109_v39 = vadd.f32 %v1108_v55, %v1107_v36  ;;  %v1156_v17 = vrot.slane %v1155_v38, 1  ;;  %v1203_v43 = vadd.f32 %v1202_v29, %v1201_v57  ;;  %v1860_v44 = vmul.f32 %v4079_v10, %v1859_v33  ;;  %vm1883_vm2 = vmor %vm1881_vm8, %vm1882_vm10  ;;  %v392_v29 = vld [vmem:[%s3957_s29 + $0x88] sm:$0xff] }
  0x8d   : > { %v1865_v45 = vadd.f32 %v4235_v51, %v1864_v49  ;;  %v1878_v15 = vsub.f32 1.0, %v1877_v21  ;;  %vm1896_vm12 = vweird.f32 %v4254_v25  ;;  %v1066_v46 = vmul.f32 1.442695, %v1057_v13 }
  0x8e   : > { %v4321_v20 = vpop.eup %3426  ;;  %v1157_v48 = vadd.f32 %v1156_v17, %v1155_v38  ;;  %v1204_v10 = vrot.slane %v1203_v43, 1  ;;  %v1248_v27 = vmul.f32 0.125, %v1109_v39  ;;  %v531_v22 = vperm.slane %v4105_v32, 1  ;;  %1910 = vst [vmem:[#allocation1] ss:$2 sm:$0xff] %v1860_v44  ;;  %v376_v38 = vld [vmem:[%s3957_s29 + $0x8] sm:$0xff] }
  0x8f   : > { %v1869_v50 = vsel %vm1868_vm13, %v4235_v51, %v1865_v45  ;;  %v1879_v16 = vmul.f32 %v4281_v18, %v1878_v15  ;;  %v1892_v28 = vmul.f32 %v4321_v20, %v4254_v25  ;;  %vm1897_vm14 = vweird.f32 %v4321_v20 }
  0x90   : > { %vm4335_vm15 = vcmp.eq.f32.partialorder %v1900_v9, 8.507059e+37  ;;  %v1874_v53 = vsel %vm4248_vm6, %v4238_v23, %v1869_v50  ;;  %v1205_v54 = vadd.f32 %v1204_v10, %v1203_v43  ;;  %v1256_v36 = vmul.f32 0.125, %v1157_v48  ;;  %3013 = vst [vmem:[%s3989_s9 + $0x590] sm:$0xff] %v531_v22  ;;  %v384_v9 = vld [vmem:[%s3957_s29 + $0x48] sm:$0xff]  ;;  %vm1898_vm3 = vmor %vm1896_vm12, %vm1897_vm14 }
  0x91   : > { %3428 = vpow2.f32 %v1066_v46  ;;  %v1875_v51 = vmul.f32 %v4087_v19, %v1874_v53  ;;  %v1880_v57 = vadd.f32 %v4281_v18, %v1879_v16  ;;  %v1893_v41 = vsub.f32 1.0, %v1892_v28  ;;  %v4399_v16 = vld [vmem:[%s3949_s17 + $0x18] sm:$0xff] }
  0x92   : > { %v539_v59 = vsub.f32 %v531_v22, %v4241_v58  ;;  %v1264_v23 = vmul.f32 0.125, %v1205_v54  ;;  %v1272_v61 = vmax.f32 %v1248_v27, %v1256_v36  ;;  %v597_v19 = vperm.slane %v4105_v32, 2 }
  0x93   : > { %v663_v62 = vperm.slane %v4105_v32, 3  ;;  %1912 = vst [vmem:[#allocation1 + $0x10] ss:$2 sm:$0xff] %v1875_v51  ;;  %v1884_v58 = vsel %vm1883_vm2, %v4281_v18, %v1880_v57  ;;  %v1894_v6 = vmul.f32 %v4321_v20, %v1893_v41  ;;  %v729_v24 = vperm.slane %v4105_v32, 4 }
  0x94   : > { %v547_v37 = vand.u32 2147483647, %v539_v59  ;;  %v1889_v11 = vsel %vm4297_vm11, %v4262_v4, %v1884_v58  ;;  %v1273_v55 = vmax.f32 %v1272_v61, %v1264_v23  ;;  %v605_v13 = vsub.f32 %v597_v19, %v4257_v5  ;;  %3021 = vst [vmem:[%s3989_s9 + $0x850] sm:$0xff] %v539_v59 }
  0x95   : > { %v671_v18 = vsub.f32 %v663_v62, %v4267_v7  ;;  %v1890_v34 = vmul.f32 %v4100_v30, %v1889_v11  ;;  %v1895_v49 = vadd.f32 %v4321_v20, %v1894_v6  ;;  %v4383_v4 = vsub.f32 %v729_v24, %v4274_v63  ;;  %3029 = vst [vmem:[%s3989_s9 + $0x5d0] sm:$0xff] %v597_v19 }
  0x96   : > { %v555_v21 = vadd.f32 %v547_v37, %v481_v40  ;;  %v1288_v5 = vsub.f32 %v1248_v27, %v1273_v55  ;;  %v1296_v7 = vsub.f32 %v1256_v36, %v1273_v55  ;;  %v1304_v30 = vsub.f32 %v1264_v23, %v1273_v55  ;;  %3037 = vst [vmem:[%s3989_s9 + $0x890] sm:$0xff] %v605_v13 }
  0x97   : > { %v3429_v8 = vpop.eup %3428  ;;  %v613_v33 = vand.u32 2147483647, %v605_v13  ;;  %1914 = vst [vmem:[#allocation1 + $0x20] ss:$2 sm:$0xff] %v1890_v34  ;;  %v1899_v12 = vsel %vm1898_vm3, %v4321_v20, %v1895_v49  ;;  %vm1385_vm4 = vcmask 1041409   ;;  %vm1388_vm5 = vcmask 1042434  }
  0x98   : > { %v1081_v40 = vmul.f32 %v3429_v8, %v376_v38  ;;  %v1089_v39 = vmul.f32 %v3429_v8, %v384_v9  ;;  %v1097_v63 = vmul.f32 %v3429_v8, %v392_v29  ;;  %v1904_v17 = vsel %vm4335_vm15, %v4288_v26, %v1899_v12  ;;  %3045 = vst [vmem:[%s3989_s9 + $0x610] sm:$0xff] %v663_v62 }
  0x99   : > { %v1312_v43 = vmul.f32 1.442695, %v1288_v5  ;;  %v1328_v44 = vmul.f32 1.442695, %v1296_v7  ;;  %v1344_v25 = vmul.f32 1.442695, %v1304_v30  ;;  %v1905_v45 = vmul.f32 %v4122_v42, %v1904_v17 }
  0x9a   : > { %v1110_v15 = vrot.slane %v1081_v40, 4  ;;  %v1158_v46 = vrot.slane %v1089_v39, 4  ;;  %v1206_v48 = vrot.slane %v1097_v63, 4  ;;  %2537 = vst [vmem:[%s3989_s9 + $0x8] sm:$0xff] %v1081_v40  ;;  %v621_v20 = vadd.f32 %v613_v33, %v555_v21  ;;  %v4441_v17 = vld [vmem:[%s3985_s27 + $0xd8] sm:$0xff] }
  0x9b   : > { %3430 = vpow2.f32 %v1312_v43  ;;  %v679_v10 = vand.u32 2147483647, %v671_v18  ;;  %v745_v27 = vand.u32 2147483647, %v4383_v4  ;;  %1916 = vst [vmem:[#allocation1 + $0x30] ss:$2 sm:$0xff] %v1905_v45 }
  0x9c   : > { %3432 = vpow2.f32 %v1328_v44  ;;  %v1111_v26 = vadd.f32 %v1110_v15, %v1081_v40  ;;  %v1159_v22 = vadd.f32 %v1158_v46, %v1089_v39  ;;  %v1207_v50 = vadd.f32 %v1206_v48, %v1097_v63  ;;  %2545 = vst [vmem:[%s3989_s9 + $0x48] sm:$0xff] %v1089_v39  ;;  %v4444_v43 = vld [vmem:[%s3985_s27 + $0x118] sm:$0xff] }
  0x9d   : > { %3434 = vpow2.f32 %v1344_v25  ;;  %v687_v42 = vadd.f32 %v679_v10, %v621_v20  ;;  %v795_v28 = vperm.slane %v4105_v32, 5  ;;  %v861_v52 = vperm.slane %v4105_v32, 6  ;;  %2553 = vst [vmem:[%s3989_s9 + $0x88] sm:$0xff] %v1097_v63  ;;  %v4449_v46 = vld [vmem:[%s3985_s27 + $0x158] sm:$0xff] }
  0x9e   : > { %v1112_v53 = vrot.slane %v1111_v26, 2  ;;  %v1160_v54 = vrot.slane %v1159_v22, 2  ;;  %v1208_v36 = vrot.slane %v1207_v50, 2  ;;  %v927_v51 = vperm.slane %v4105_v32, 7  ;;  %3053 = vst [vmem:[%s3989_s9 + $0x8d0] sm:$0xff] %v671_v18  ;;  %v4452_v48 = vld [vmem:[%s3985_s27 + $0x198] sm:$0xff] }
  0x9f   : > { %v753_v57 = vadd.f32 %v745_v27, %v687_v42  ;;  %v803_v41 = vsub.f32 %v795_v28, %v4277_v14  ;;  %v869_v59 = vsub.f32 %v861_v52, %v4302_v35  ;;  %v466_v23 = vperm.slane %v4399_v16, 0  ;;  %3061 = vst [vmem:[%s3989_s9 + $0x650] sm:$0xff] %v729_v24 }
  0xa0   : > { %v1113_v61 = vadd.f32 %v1112_v53, %v1111_v26  ;;  %v1161_v19 = vadd.f32 %v1160_v54, %v1159_v22  ;;  %v1209_v58 = vadd.f32 %v1208_v36, %v1207_v50  ;;  %v935_v6 = vsub.f32 %v927_v51, %v4309_v31  ;;  %3069 = vst [vmem:[%s3989_s9 + $0x910] sm:$0xff] %v4383_v4 }
  0xa1   : > { %v4414_v37 = vpop.eup %3430  ;;  %v811_v11 = vand.u32 2147483647, %v803_v41  ;;  %v877_v55 = vand.u32 2147483647, %v869_v59  ;;  %v474_v14 = vsub.f32 %v466_v23, %v4319_v47  ;;  %v532_v35 = vperm.slane %v4399_v16, 1  ;;  %3077 = vst [vmem:[%s3989_s9 + $0x690] sm:$0xff] %v795_v28 }
  0xa2   : > { %v4421_v62 = vpop.eup %3432  ;;  %v1114_v38 = vrot.slane %v1113_v61, 1  ;;  %v1162_v9 = vrot.slane %v1161_v19, 1  ;;  %v1210_v29 = vrot.slane %v1209_v58, 1  ;;  %v943_v31 = vand.u32 2147483647, %v935_v6  ;;  %3085 = vst [vmem:[%s3989_s9 + $0x950] sm:$0xff] %v803_v41 }
  0xa3   : > { %v4425_v13 = vpop.eup %3434  ;;  %v1384_v18 = vrot.slane %v4421_v62, 7  ;;  %v819_v32 = vadd.f32 %v811_v11, %v753_v57  ;;  %v482_v24 = vand.u32 2147483647, %v474_v14  ;;  %v540_v47 = vsub.f32 %v532_v35, %v4344_v56  ;;  %3093 = vst [vmem:[%s3989_s9 + $0x6d0] sm:$0xff] %v861_v52  ;;  %v4483_v11 = vld [vmem:[%s3985_s27 + $0x20] sm:$0xff] }
  0xa4   : > { %6517 = vst [vmem:[#allocation20_spill] sm:$0xff] %v4425_v13  ;;  %v1387_v34 = vrot.slane %v4425_v13, 6  ;;  %v1115_v49 = vadd.f32 %v1114_v38, %v1113_v61  ;;  %v1163_v21 = vadd.f32 %v1162_v9, %v1161_v19  ;;  %v1211_v8 = vadd.f32 %v1210_v29, %v1209_v58  ;;  %v4476_v61 = vld [vmem:[%s3985_s27 + $0x1d8] sm:$0xff] }
  0xa5   : > { %v1386_v4 = vsel %vm1385_vm4, %v1384_v18, %v4414_v37  ;;  %v885_v5 = vadd.f32 %v877_v55, %v819_v32  ;;  %v548_v7 = vand.u32 2147483647, %v540_v47  ;;  %v598_v30 = vperm.slane %v4399_v16, 2  ;;  %3101 = vst [vmem:[%s3989_s9 + $0x990] sm:$0xff] %v869_v59  ;;  %v4489_v32 = vld [vmem:[%s3985_s27 + $0x60] sm:$0xff] }
  0xa6   : > { %v1389_v56 = vsel %vm1388_vm5, %v1387_v34, %v1386_v4  ;;  %v1249_v33 = vmul.f32 0.125, %v1115_v49  ;;  %v1257_v12 = vmul.f32 0.125, %v1163_v21  ;;  %v1265_v40 = vmul.f32 0.125, %v1211_v8  ;;  %3109 = vst [vmem:[%s3989_s9 + $0x710] sm:$0xff] %v927_v51  ;;  %v377_v49 = vld [vmem:[%s3957_s29 + $0x10] sm:$0xff] }
  0xa7   : > { %v1427_v39 = vsel %vm1426_vm0, %v1389_v56, 0.0  ;;  %v951_v63 = vadd.f32 %v943_v31, %v885_v5  ;;  %v556_v44 = vadd.f32 %v548_v7, %v482_v24  ;;  %v606_v25 = vsub.f32 %v598_v30, %v4350_v60  ;;  %3117 = vst [vmem:[%s3989_s9 + $0x9d0] sm:$0xff] %v935_v6  ;;  %v4480_v6 = vld [vmem:[%s3949_s17 + $0x20] sm:$0xff]  ;;  %v385_v21 = vld [vmem:[%s3957_s29 + $0x50] sm:$0xff] }
  0xa8   : > { %v1428_v45 = vrot.slane %v1427_v39, 4  ;;  %v1274_v15 = vmax.f32 %v1249_v33, %v1257_v12  ;;  %v664_v20 = vperm.slane %v4399_v16, 3  ;;  %v730_v10 = vperm.slane %v4399_v16, 4  ;;  %2998 = vst [vmem:[%s3989_s9 + $0x558] sm:$0xff] %v466_v23  ;;  %v393_v8 = vld [vmem:[%s3957_s29 + $0x90] sm:$0xff]  ;;  %v4506_v56 = vld [vmem:[%s3985_s27 + $0xa0] sm:$0xff] }
  0xa9   : > { %v1058_v27 = vmul.f32 -0.125, %v951_v63  ;;  %v614_v26 = vand.u32 2147483647, %v606_v25  ;;  %v796_v22 = vperm.slane %v4399_v16, 5  ;;  %v862_v50 = vperm.slane %v4399_v16, 6  ;;  %3006 = vst [vmem:[%s3989_s9 + $0x818] sm:$0xff] %v474_v14 }
  0xaa   : > { %v1429_v60 = vadd.f32 %v1428_v45, %v1427_v39  ;;  %v1275_v42 = vmax.f32 %v1274_v15, %v1265_v40  ;;  %v672_v28 = vsub.f32 %v664_v20, %v4441_v17  ;;  %v738_v52 = vsub.f32 %v730_v10, %v4444_v43  ;;  %3014 = vst [vmem:[%s3989_s9 + $0x598] sm:$0xff] %v532_v35 }
  0xab   : > { %v1068_v53 = vmul.f32 1.442695, %v1058_v27  ;;  %v622_v54 = vadd.f32 %v614_v26, %v556_v44  ;;  %v4467_v36 = vsub.f32 %v796_v22, %v4449_v46  ;;  %v4472_v51 = vsub.f32 %v862_v50, %v4452_v48  ;;  %3022 = vst [vmem:[%s3989_s9 + $0x858] sm:$0xff] %v540_v47  ;;  %v4521_v44 = vld [vmem:[%s3985_s27 + $0xe0] sm:$0xff] }
  0xac   : > { %v1430_v57 = vrot.slane %v1429_v60, 2  ;;  %v1289_v41 = vsub.f32 %v1249_v33, %v1275_v42  ;;  %v1297_v59 = vsub.f32 %v1257_v12, %v1275_v42  ;;  %v1305_v23 = vsub.f32 %v1265_v40, %v1275_v42  ;;  %3030 = vst [vmem:[%s3989_s9 + $0x5d8] sm:$0xff] %v598_v30 }
  0xad   : > { %3436 = vpow2.f32 %v1068_v53  ;;  %v680_v19 = vand.u32 2147483647, %v672_v28  ;;  %v746_v58 = vand.u32 2147483647, %v738_v52  ;;  %v812_v29 = vand.u32 2147483647, %v4467_v36 }
  0xae   : > { %v1431_v55 = vadd.f32 %v1430_v57, %v1429_v60  ;;  %v1314_v14 = vmul.f32 1.442695, %v1289_v41  ;;  %v1330_v35 = vmul.f32 1.442695, %v1297_v59  ;;  %v1346_v38 = vmul.f32 1.442695, %v1305_v23 }
  0xaf   : > { %v688_v9 = vadd.f32 %v680_v19, %v622_v54  ;;  %v878_v31 = vand.u32 2147483647, %v4472_v51  ;;  %v928_v18 = vperm.slane %v4399_v16, 7  ;;  %v467_v47 = vperm.slane %v4480_v6, 0  ;;  %3038 = vst [vmem:[%s3989_s9 + $0x898] sm:$0xff] %v606_v25 }
  0xb0   : > { %v1432_v24 = vrot.slane %v1431_v55, 1  ;;  %3438 = vpow2.f32 %v1314_v14  ;;  %v533_v34 = vperm.slane %v4480_v6, 1  ;;  %v599_v7 = vperm.slane %v4480_v6, 2  ;;  %3046 = vst [vmem:[%s3989_s9 + $0x618] sm:$0xff] %v664_v20 }
  0xb1   : > { %3440 = vpow2.f32 %v1330_v35  ;;  %v754_v4 = vadd.f32 %v746_v58, %v688_v9  ;;  %v4500_v5 = vsub.f32 %v928_v18, %v4476_v61  ;;  %v4511_v33 = vsub.f32 %v467_v47, %v4483_v11  ;;  %3054 = vst [vmem:[%s3989_s9 + $0x8d8] sm:$0xff] %v672_v28 }
  0xb2   : > { %v1433_v30 = vadd.f32 %v1432_v24, %v1431_v55  ;;  %3442 = vpow2.f32 %v1346_v38  ;;  %v4516_v12 = vsub.f32 %v533_v34, %v4489_v32  ;;  %v665_v25 = vperm.slane %v4480_v6, 3  ;;  %3062 = vst [vmem:[%s3989_s9 + $0x658] sm:$0xff] %v730_v10 }
  0xb3   : > { %v3437_v40 = vpop.eup %3436  ;;  %v820_v39 = vadd.f32 %v812_v29, %v754_v4  ;;  %v944_v63 = vand.u32 2147483647, %v4500_v5  ;;  %3070 = vst [vmem:[%s3989_s9 + $0x918] sm:$0xff] %v738_v52  ;;  %v483_v60 = vand.u32 2147483647, %v4511_v33  ;;  %v4535_v28 = vsub.f32 %v599_v7, %v4506_v56 }
  0xb4   : > { %v4524_v45 = vperm.slane %v1433_v30, 0  ;;  %v1082_v15 = vmul.f32 %v3437_v40, %v377_v49  ;;  %v1090_v20 = vmul.f32 %v3437_v40, %v385_v21  ;;  %v1098_v27 = vmul.f32 %v3437_v40, %v393_v8  ;;  %3078 = vst [vmem:[%s3989_s9 + $0x698] sm:$0xff] %v796_v22 }
  0xb5   : > { %v886_v26 = vadd.f32 %v878_v31, %v820_v39  ;;  %v549_v42 = vand.u32 2147483647, %v4516_v12  ;;  %v4546_v52 = vsub.f32 %v665_v25, %v4521_v44  ;;  %3086 = vst [vmem:[%s3989_s9 + $0x958] sm:$0xff] %v4467_v36  ;;  %v615_v21 = vand.u32 2147483647, %v4535_v28 }
  0xb6   : > { %v4537_v53 = vpop.eup %3438  ;;  %3444 = vrcp.f32 %v4524_v45  ;;  %v1500_v54 = vand.u32 2147483647, %v4524_v45  ;;  %v1502_v10 = vand.u32 2147483648, %v4524_v45  ;;  %2538 = vst [vmem:[%s3989_s9 + $0x10] sm:$0xff] %v1082_v15  ;;  %v1116_v41 = vrot.slane %v1082_v15, 4 }
  0xb7   : > { %v4548_v57 = vpop.eup %3440  ;;  %v1164_v59 = vrot.slane %v1090_v20, 4  ;;  %v1212_v23 = vrot.slane %v1098_v27, 4  ;;  %2546 = vst [vmem:[%s3989_s9 + $0x50] sm:$0xff] %v1090_v20  ;;  %v952_v19 = vadd.f32 %v944_v63, %v886_v26  ;;  %vm1496_vm6 = vweird.f32 %v4524_v45 }
  0xb8   : > { %v4551_v58 = vpop.eup %3442  ;;  %v4554_v55 = vor.u32 1.1754944e-38, %v1502_v10  ;;  %v1390_v14 = vrot.slane %v4548_v57, 7  ;;  %2554 = vst [vmem:[%s3989_s9 + $0x90] sm:$0xff] %v1098_v27  ;;  %v557_v35 = vadd.f32 %v549_v42, %v483_v60  ;;  %v1117_v9 = vadd.f32 %v1116_v41, %v1082_v15 }
  0xb9   : > { %6518 = vst [vmem:[#allocation21_spill] sm:$0xff] %v4551_v58  ;;  %v1392_v38 = vrot.slane %v4551_v58, 6  ;;  %v1165_v29 = vadd.f32 %v1164_v59, %v1090_v20  ;;  %v1213_v31 = vadd.f32 %v1212_v23, %v1098_v27  ;;  %v1059_v49 = vmul.f32 -0.125, %v952_v19  ;;  %v4580_v20 = vld [vmem:[%s3985_s27 + $0x120] sm:$0xff] }
  0xba   : > { %v1391_v24 = vsel %vm1385_vm4, %v1390_v14, %v4537_v53  ;;  %v681_v8 = vand.u32 2147483647, %v4546_v52  ;;  %vm4568_vm7 = vcmp.eq.f32.partialorder %v1500_v54, 8.507059e+37  ;;  %v1118_v40 = vrot.slane %v1117_v9, 2  ;;  %3094 = vst [vmem:[%s3989_s9 + $0x6d8] sm:$0xff] %v862_v50  ;;  %v4592_v19 = vld [vmem:[%s3985_s27 + $0x160] sm:$0xff] }
  0xbb   : > { %v1393_v30 = vsel %vm1388_vm5, %v1392_v38, %v1391_v24  ;;  %v1166_v22 = vrot.slane %v1165_v29, 2  ;;  %v1214_v39 = vrot.slane %v1213_v31, 2  ;;  %v1070_v15 = vmul.f32 1.442695, %v1059_v49  ;;  %3102 = vst [vmem:[%s3989_s9 + $0x998] sm:$0xff] %v4472_v51  ;;  %v4595_v14 = vld [vmem:[%s3985_s27 + $0x1a0] sm:$0xff] }
  0xbc   : > { %v3445_v63 = vpop.eup %3444  ;;  %v1434_v36 = vsel %vm1426_vm0, %v1393_v30, 0.0  ;;  %v623_v27 = vadd.f32 %v615_v21, %v557_v35  ;;  %v731_v26 = vperm.slane %v4480_v6, 4  ;;  %v1119_v50 = vadd.f32 %v1118_v40, %v1117_v9  ;;  %3110 = vst [vmem:[%s3989_s9 + $0x718] sm:$0xff] %v928_v18  ;;  %v378_v21 = vld [vmem:[%s3957_s29 + $0x18] sm:$0xff] }
  0xbd   : > { %v1492_v60 = vmul.f32 %v3445_v63, %v4524_v45  ;;  %vm1497_vm8 = vweird.f32 %v3445_v63  ;;  %v1435_v42 = vrot.slane %v1434_v36, 4  ;;  %v1167_v54 = vadd.f32 %v1166_v22, %v1165_v29  ;;  %3118 = vst [vmem:[%s3989_s9 + $0x9d8] sm:$0xff] %v4500_v5 }
  0xbe   : > { %v1215_v10 = vadd.f32 %v1214_v39, %v1213_v31  ;;  %3446 = vpow2.f32 %v1070_v15  ;;  %v689_v51 = vadd.f32 %v681_v8, %v623_v27  ;;  %v1120_v23 = vrot.slane %v1119_v50, 1  ;;  %3150 = vst [vmem:[%s3989_s9 + $0x358] sm:$0xff] %v4441_v17  ;;  %vm4612_vm9 = vmor %vm1496_vm6, %vm1497_vm8  ;;  %v386_v8 = vld [vmem:[%s3957_s29 + $0x58] sm:$0xff] }
  0xbf   : > { %v1493_v41 = vsub.f32 1.0, %v1492_v60  ;;  %v1436_v59 = vadd.f32 %v1435_v42, %v1434_v36  ;;  %v4600_v16 = vsub.f32 %v731_v26, %v4580_v20  ;;  %v1168_v18 = vrot.slane %v1167_v54, 1  ;;  %3158 = vst [vmem:[%s3989_s9 + $0x398] sm:$0xff] %v4444_v43  ;;  %v394_v39 = vld [vmem:[%s3957_s29 + $0x98] sm:$0xff] }
  0xc0   : > { %v1216_v5 = vrot.slane %v1215_v10, 1  ;;  %v797_v35 = vperm.slane %v4480_v6, 5  ;;  %v863_v17 = vperm.slane %v4480_v6, 6  ;;  %v1121_v29 = vadd.f32 %v1120_v23, %v1119_v50  ;;  %3166 = vst [vmem:[%s3989_s9 + $0x3d8] sm:$0xff] %v4449_v46 }
  0xc1   : > { %v1494_v38 = vmul.f32 %v3445_v63, %v1493_v41  ;;  %v1437_v9 = vrot.slane %v1436_v59, 2  ;;  %v747_v31 = vand.u32 2147483647, %v4600_v16  ;;  %v1169_v43 = vadd.f32 %v1168_v18, %v1167_v54  ;;  %3174 = vst [vmem:[%s3989_s9 + $0x418] sm:$0xff] %v4452_v48 }
  0xc2   : > { %v1217_v49 = vadd.f32 %v1216_v5, %v1215_v10  ;;  %v4623_v30 = vsub.f32 %v797_v35, %v4592_v19  ;;  %v4628_v46 = vsub.f32 %v863_v17, %v4595_v14  ;;  %v1250_v22 = vmul.f32 0.125, %v1121_v29  ;;  %3182 = vst [vmem:[%s3989_s9 + $0x458] sm:$0xff] %v4476_v61 }
  0xc3   : > { %v1495_v45 = vadd.f32 %v3445_v63, %v1494_v38  ;;  %v1438_v40 = vadd.f32 %v1437_v9, %v1436_v59  ;;  %v755_v36 = vadd.f32 %v747_v31, %v689_v51  ;;  %v1258_v15 = vmul.f32 0.125, %v1169_v43  ;;  %2999 = vst [vmem:[%s3989_s9 + $0x560] sm:$0xff] %v467_v47  ;;  %v1917_v47 = vld.sshfl [vmem:[#allocation1] sm:$0xff pattern:$0x75316420] }
  0xc4   : > { %v3447_v48 = vpop.eup %3446  ;;  %v1266_v27 = vmul.f32 0.125, %v1217_v49  ;;  %v813_v60 = vand.u32 2147483647, %v4623_v30  ;;  %v879_v42 = vand.u32 2147483647, %v4628_v46  ;;  %3007 = vst [vmem:[%s3989_s9 + $0x820] sm:$0xff] %v4511_v33 }
  0xc5   : > { %v1499_v50 = vsel %vm4612_vm9, %v3445_v63, %v1495_v45  ;;  %v1439_v54 = vrot.slane %v1438_v40, 1  ;;  %v1083_v10 = vmul.f32 %v3447_v48, %v378_v21  ;;  %v1091_v41 = vmul.f32 %v3447_v48, %v386_v8  ;;  %v4655_v8 = vld [vmem:[%s3985_s27 + $0x1e0] sm:$0xff]  ;;  %3015 = vst [vmem:[%s3989_s9 + $0x5a0] sm:$0xff] %v533_v34  ;;  %v4661_v45 = vld [vmem:[%s3949_s17 + $0x28] sm:$0xff] }
  0xc6   : > { %v4643_v61 = vsel %vm4568_vm7, %v4554_v55, %v1499_v50  ;;  %v1276_v51 = vmax.f32 %v1250_v22, %v1258_v15  ;;  %v1099_v59 = vmul.f32 %v3447_v48, %v394_v39  ;;  %v821_v23 = vadd.f32 %v813_v60, %v755_v36  ;;  %3023 = vst [vmem:[%s3989_s9 + $0x860] sm:$0xff] %v4516_v12 }
  0xc7   : > { %v1505_v63 = vmul.f32 %v4414_v37, %v4643_v61  ;;  %v1440_v18 = vadd.f32 %v1439_v54, %v1438_v40  ;;  %v1122_v5 = vrot.slane %v1083_v10, 4  ;;  %v1170_v38 = vrot.slane %v1091_v41, 4  ;;  %2539 = vst [vmem:[%s3989_s9 + $0x18] sm:$0xff] %v1083_v10 }
  0xc8   : > { %v1277_v4 = vmax.f32 %v1276_v51, %v1266_v27  ;;  %v1218_v55 = vrot.slane %v1099_v59, 4  ;;  %2547 = vst [vmem:[%s3989_s9 + $0x58] sm:$0xff] %v1091_v41  ;;  %v887_v9 = vadd.f32 %v879_v42, %v821_v23  ;;  %v468_v51 = vperm.slane %v4661_v45, 0 }
  0xc9   : > { %v1965_v29 = vsub.f32 %v1505_v63, %v1917_v47  ;;  %v4651_v31 = vperm.slane %v1440_v18, 0  ;;  %v1123_v33 = vadd.f32 %v1122_v5, %v1083_v10  ;;  %v1171_v24 = vadd.f32 %v1170_v38, %v1091_v41  ;;  %2555 = vst [vmem:[%s3989_s9 + $0x98] sm:$0xff] %v1099_v59  ;;  %v4681_v10 = vld [vmem:[%s3985_s27 + $0x28] sm:$0xff] }
  0xca   : > { %v1290_v37 = vsub.f32 %v1250_v22, %v1277_v4  ;;  %v1298_v43 = vsub.f32 %v1258_v15, %v1277_v4  ;;  %v1306_v49 = vsub.f32 %v1266_v27, %v1277_v4  ;;  %v1219_v21 = vadd.f32 %v1218_v55, %v1099_v59  ;;  %3031 = vst [vmem:[%s3989_s9 + $0x5e0] sm:$0xff] %v599_v7  ;;  %v4696_v63 = vld [vmem:[%s3985_s27 + $0x68] sm:$0xff] }
  0xcb   : > { %v4663_v40 = vand.u32 2147483647, %v1965_v29  ;;  %3448 = vrcp.f32 %v4651_v31  ;;  %v1515_v39 = vand.u32 2147483647, %v4651_v31  ;;  %v929_v22 = vperm.slane %v4480_v6, 7  ;;  %3039 = vst [vmem:[%s3989_s9 + $0x8a0] sm:$0xff] %v4535_v28 }
  0xcc   : > { %v1517_v36 = vand.u32 2147483648, %v4651_v31  ;;  %v1316_v48 = vmul.f32 1.442695, %v1290_v37  ;;  %v1332_v15 = vmul.f32 1.442695, %v1298_v43  ;;  %v1124_v34 = vrot.slane %v1123_v33, 2 }
  0xcd   : > { %v2619_v27 = vperm.slane %v4663_v40, 0  ;;  %vm1511_vm10 = vweird.f32 %v4651_v31  ;;  %v1348_v60 = vmul.f32 1.442695, %v1306_v49  ;;  %v1172_v42 = vrot.slane %v1171_v24, 2  ;;  %3047 = vst [vmem:[%s3989_s9 + $0x620] sm:$0xff] %v665_v25  ;;  %v4702_v4 = vld [vmem:[%s3985_s27 + $0xa8] sm:$0xff] }
  0xce   : > { %v4676_v50 = vor.u32 1.1754944e-38, %v1517_v36  ;;  %3450 = vpow2.f32 %v1316_v48  ;;  %v1125_v12 = vadd.f32 %v1124_v34, %v1123_v33  ;;  %v1220_v54 = vrot.slane %v1219_v21, 2  ;;  %3055 = vst [vmem:[%s3989_s9 + $0x8e0] sm:$0xff] %v4546_v52 }
  0xcf   : > { %3243 = vst [vmem:[%s3989_s9 + $0x480] sm:$0xff] %v2619_v27  ;;  %3452 = vpow2.f32 %v1332_v15  ;;  %v1173_v41 = vadd.f32 %v1172_v42, %v1171_v24  ;;  %v937_v7 = vsub.f32 %v929_v22, %v4655_v8  ;;  %vm4688_vm11 = vcmp.eq.f32.partialorder %v1515_v39, 8.507059e+37 }
  0xd0   : > { %3454 = vpow2.f32 %v1348_v60  ;;  %v1126_v23 = vrot.slane %v1125_v12, 1  ;;  %v1221_v28 = vadd.f32 %v1220_v54, %v1219_v21  ;;  %v534_v18 = vperm.slane %v4661_v45, 1  ;;  %3063 = vst [vmem:[%s3989_s9 + $0x660] sm:$0xff] %v731_v26  ;;  %v4728_v26 = vld [vmem:[%s3985_s27 + $0xe8] sm:$0xff] }
  0xd1   : > { %v3449_v5 = vpop.eup %3448  ;;  %v1174_v38 = vrot.slane %v1173_v41, 1  ;;  %v945_v47 = vand.u32 2147483647, %v937_v7  ;;  %v4707_v55 = vsub.f32 %v468_v51, %v4681_v10  ;;  %v600_v25 = vperm.slane %v4661_v45, 2  ;;  %3071 = vst [vmem:[%s3989_s9 + $0x920] sm:$0xff] %v4600_v16 }
  0xd2   : > { %v1507_v29 = vmul.f32 %v3449_v5, %v4651_v31  ;;  %vm1512_vm12 = vweird.f32 %v3449_v5  ;;  %v1127_v33 = vadd.f32 %v1126_v23, %v1125_v12  ;;  %v1222_v24 = vrot.slane %v1221_v28, 1  ;;  %3079 = vst [vmem:[%s3989_s9 + $0x6a0] sm:$0xff] %v797_v35 }
  0xd3   : > { %v1175_v52 = vadd.f32 %v1174_v38, %v1173_v41  ;;  %v953_v37 = vadd.f32 %v945_v47, %v887_v9  ;;  %v484_v43 = vand.u32 2147483647, %v4707_v55  ;;  %v4720_v49 = vsub.f32 %v534_v18, %v4696_v63  ;;  %3087 = vst [vmem:[%s3989_s9 + $0x960] sm:$0xff] %v4623_v30  ;;  %vm4751_vm13 = vmor %vm1511_vm10, %vm1512_vm12  ;;  %v4759_v47 = vld [vmem:[%s3985_s27 + $0x128] sm:$0xff] }
  0xd4   : > { %v4722_v21 = vpop.eup %3450  ;;  %v1508_v39 = vsub.f32 1.0, %v1507_v29  ;;  %v1223_v36 = vadd.f32 %v1222_v24, %v1221_v28  ;;  %v1251_v48 = vmul.f32 0.125, %v1127_v33  ;;  %v4733_v16 = vsub.f32 %v600_v25, %v4702_v4  ;;  %3095 = vst [vmem:[%s3989_s9 + $0x6e0] sm:$0xff] %v863_v17 }
  0xd5   : > { %v4735_v9 = vpop.eup %3452  ;;  %v1259_v15 = vmul.f32 0.125, %v1175_v52  ;;  %v1060_v34 = vmul.f32 -0.125, %v953_v37  ;;  %v550_v27 = vand.u32 2147483647, %v4720_v49  ;;  %v666_v60 = vperm.slane %v4661_v45, 3  ;;  %3103 = vst [vmem:[%s3989_s9 + $0x9a0] sm:$0xff] %v4628_v46 }
  0xd6   : > { %v4741_v35 = vpop.eup %3454  ;;  %v1509_v42 = vmul.f32 %v3449_v5, %v1508_v39  ;;  %v1394_v12 = vrot.slane %v4735_v9, 7  ;;  %v1267_v54 = vmul.f32 0.125, %v1223_v36  ;;  %v616_v41 = vand.u32 2147483647, %v4733_v16  ;;  %3111 = vst [vmem:[%s3989_s9 + $0x720] sm:$0xff] %v929_v22 }
  0xd7   : > { %6525 = vst [vmem:[#allocation22_spill] sm:$0xff] %v4741_v35  ;;  %v1396_v23 = vrot.slane %v4741_v35, 6  ;;  %v1278_v28 = vmax.f32 %v1251_v48, %v1259_v15  ;;  %v1072_v38 = vmul.f32 1.442695, %v1060_v34  ;;  %v558_v17 = vadd.f32 %v550_v27, %v484_v43  ;;  %v379_v27 = vld [vmem:[%s3957_s29 + $0x20] sm:$0xff] }
  0xd8   : > { %v1510_v29 = vadd.f32 %v3449_v5, %v1509_v42  ;;  %v1395_v33 = vsel %vm1385_vm4, %v1394_v12, %v4722_v21  ;;  %v4769_v31 = vsub.f32 %v666_v60, %v4728_v26  ;;  %v732_v24 = vperm.slane %v4661_v45, 4  ;;  %3119 = vst [vmem:[%s3989_s9 + $0x9e0] sm:$0xff] %v937_v7  ;;  %v387_v42 = vld [vmem:[%s3957_s29 + $0x60] sm:$0xff] }
  0xd9   : > { %v1397_v46 = vsel %vm1388_vm5, %v1396_v23, %v1395_v33  ;;  %v1279_v52 = vmax.f32 %v1278_v28, %v1267_v54  ;;  %3456 = vpow2.f32 %v1072_v38  ;;  %v624_v37 = vadd.f32 %v616_v41, %v558_v17  ;;  %3127 = vst [vmem:[%s3989_s9 + $0x2a0] sm:$0xff] %v4483_v11  ;;  %v4795_v11 = vld [vmem:[%s3985_s27 + $0x168] sm:$0xff]  ;;  %v1918_v41 = vld.sshfl [vmem:[#allocation1 + $0x8] sm:$0xff pattern:$0x75316420] }
  0xda   : > { %v1514_v6 = vsel %vm4751_vm13, %v3449_v5, %v1510_v29  ;;  %v1441_v22 = vsel %vm1426_vm0, %v1397_v46, 0.0  ;;  %v682_v43 = vand.u32 2147483647, %v4769_v31  ;;  %v4783_v39 = vsub.f32 %v732_v24, %v4759_v47  ;;  %3135 = vst [vmem:[%s3989_s9 + $0x2e0] sm:$0xff] %v4489_v32 }
  0xdb   : > { %v4788_v7 = vsel %vm4688_vm11, %v4676_v50, %v1514_v6  ;;  %v1442_v36 = vrot.slane %v1441_v22, 4  ;;  %v1291_v5 = vsub.f32 %v1251_v48, %v1279_v52  ;;  %v1299_v34 = vsub.f32 %v1259_v15, %v1279_v52  ;;  %3143 = vst [vmem:[%s3989_s9 + $0x320] sm:$0xff] %v4506_v56 }
  0xdc   : > { %v1520_v12 = vmul.f32 %v4537_v53, %v4788_v7  ;;  %v1307_v30 = vsub.f32 %v1267_v54, %v1279_v52  ;;  %v690_v50 = vadd.f32 %v682_v43, %v624_v37  ;;  %v748_v59 = vand.u32 2147483647, %v4783_v39  ;;  %3151 = vst [vmem:[%s3989_s9 + $0x360] sm:$0xff] %v4521_v44  ;;  %v395_v53 = vld [vmem:[%s3957_s29 + $0xa0] sm:$0xff]  ;;  %v4820_v37 = vld [vmem:[%s3985_s27 + $0x1a8] sm:$0xff] }
  0xdd   : > { %v1443_v48 = vadd.f32 %v1442_v36, %v1441_v22  ;;  %v1318_v15 = vmul.f32 1.442695, %v1291_v5  ;;  %v1334_v23 = vmul.f32 1.442695, %v1299_v34  ;;  %v798_v32 = vperm.slane %v4661_v45, 5  ;;  %3159 = vst [vmem:[%s3989_s9 + $0x3a0] sm:$0xff] %v4580_v20 }
  0xde   : > { %v1966_v28 = vsub.f32 %v1520_v12, %v1918_v41  ;;  %v1350_v38 = vmul.f32 1.442695, %v1307_v30  ;;  %v756_v54 = vadd.f32 %v748_v59, %v690_v50  ;;  %v864_v56 = vperm.slane %v4661_v45, 6  ;;  %3167 = vst [vmem:[%s3989_s9 + $0x3e0] sm:$0xff] %v4592_v19  ;;  %v4825_v22 = vld [vmem:[%s3985_s27 + $0x1e8] sm:$0xff] }
  0xdf   : > { %v3457_v17 = vpop.eup %3456  ;;  %v1444_v29 = vrot.slane %v1443_v48, 2  ;;  %3458 = vpow2.f32 %v1318_v15  ;;  %v4814_v44 = vsub.f32 %v798_v32, %v4795_v11  ;;  %v930_v33 = vperm.slane %v4661_v45, 7  ;;  %3175 = vst [vmem:[%s3989_s9 + $0x420] sm:$0xff] %v4595_v14  ;;  %v4830_v14 = vld [vmem:[%s3949_s17 + $0x30] sm:$0xff] }
  0xe0   : > { %v1990_v46 = vand.u32 2147483647, %v1966_v28  ;;  %3460 = vpow2.f32 %v1334_v23  ;;  %v1084_v20 = vmul.f32 %v3457_v17, %v379_v27  ;;  %v1092_v52 = vmul.f32 %v3457_v17, %v387_v42  ;;  %3183 = vst [vmem:[%s3989_s9 + $0x460] sm:$0xff] %v4655_v8 }
  0xe1   : > { %v1445_v6 = vadd.f32 %v1444_v29, %v1443_v48  ;;  %3462 = vpow2.f32 %v1350_v38  ;;  %v1100_v19 = vmul.f32 %v3457_v17, %v395_v53  ;;  %v814_v43 = vand.u32 2147483647, %v4814_v44  ;;  %3000 = vst [vmem:[%s3989_s9 + $0x568] sm:$0xff] %v468_v51 }
  0xe2   : > { %v2289_v36 = vrot.slane %v1990_v46, 4  ;;  %v2620_v5 = vperm.slane %v1990_v46, 0  ;;  %v1128_v34 = vrot.slane %v1084_v20, 4  ;;  %v1176_v27 = vrot.slane %v1092_v52, 4  ;;  %2540 = vst [vmem:[%s3989_s9 + $0x20] sm:$0xff] %v1084_v20  ;;  %v4860_v46 = vld [vmem:[%s3985_s27 + $0x30] sm:$0xff] }
  0xe3   : > { %v1446_v42 = vrot.slane %v1445_v6, 1  ;;  %v1224_v12 = vrot.slane %v1100_v19, 4  ;;  %2548 = vst [vmem:[%s3989_s9 + $0x60] sm:$0xff] %v1092_v52  ;;  %v822_v41 = vadd.f32 %v814_v43, %v756_v54  ;;  %v4836_v8 = vsub.f32 %v864_v56, %v4820_v37 }
  0xe4   : > { %v4840_v30 = vsel %vm1722_vm1, %v4663_v40, %v2289_v36  ;;  %3244 = vst [vmem:[%s3989_s9 + $0x488] sm:$0xff] %v2620_v5  ;;  %v1129_v50 = vadd.f32 %v1128_v34, %v1084_v20  ;;  %v1177_v59 = vadd.f32 %v1176_v27, %v1092_v52  ;;  %v4846_v48 = vsub.f32 %v930_v33, %v4825_v22 }
  0xe5   : > { %6528 = vst [vmem:[#allocation23_spill] sm:$0xff] %v4840_v30  ;;  %v4848_v15 = vpop.eup %3458  ;;  %v1447_v23 = vadd.f32 %v1446_v42, %v1445_v6  ;;  %v1225_v28 = vadd.f32 %v1224_v12, %v1100_v19  ;;  %v880_v38 = vand.u32 2147483647, %v4836_v8  ;;  %v6453_v40 = vperm.slane %v4830_v14, 0 }
  0xe6   : > { %2556 = vst [vmem:[%s3989_s9 + $0xa0] sm:$0xff] %v1100_v19  ;;  %v4853_v53 = vpop.eup %3460  ;;  %v1130_v54 = vrot.slane %v1129_v50, 2  ;;  %v1178_v17 = vrot.slane %v1177_v59, 2  ;;  %v946_v29 = vand.u32 2147483647, %v4846_v48 }
  0xe7   : > { %v4862_v20 = vpop.eup %3462  ;;  %v4864_v52 = vperm.slane %v1447_v23, 0  ;;  %v1398_v6 = vrot.slane %v4853_v53, 7  ;;  %v1226_v19 = vrot.slane %v1225_v28, 2  ;;  %v888_v43 = vadd.f32 %v880_v38, %v822_v41  ;;  %3008 = vst [vmem:[%s3989_s9 + $0x828] sm:$0xff] %v4707_v55 }
  0xe8   : > { %6529 = vst [vmem:[#allocation24_spill] sm:$0xff] %v4862_v20  ;;  %v1400_v36 = vrot.slane %v4862_v20, 6  ;;  %v1131_v5 = vadd.f32 %v1130_v54, %v1129_v50  ;;  %v1179_v34 = vadd.f32 %v1178_v17, %v1177_v59  ;;  %v4880_v27 = vsub.f32 %v6453_v40, %v4860_v46  ;;  %v4889_v50 = vld [vmem:[%s3985_s27 + $0x70] sm:$0xff] }
  0xe9   : > { %3016 = vst [vmem:[%s3989_s9 + $0x5a8] sm:$0xff] %v534_v18  ;;  %3464 = vrcp.f32 %v4864_v52  ;;  %v1530_v51 = vand.u32 2147483647, %v4864_v52  ;;  %v6452_v55 = vperm.slane %v4830_v14, 1  ;;  %v1399_v42 = vsel %vm1385_vm4, %v1398_v6, %v4848_v15 }
  0xea   : > { %3024 = vst [vmem:[%s3989_s9 + $0x868] sm:$0xff] %v4720_v49  ;;  %v1132_v12 = vrot.slane %v1131_v5, 1  ;;  %v1180_v18 = vrot.slane %v1179_v34, 1  ;;  %v1227_v41 = vadd.f32 %v1226_v19, %v1225_v28  ;;  %vm1526_vm14 = vweird.f32 %v4864_v52 }
  0xeb   : > { %3032 = vst [vmem:[%s3989_s9 + $0x5e8] sm:$0xff] %v600_v25  ;;  %v1532_v49 = vand.u32 2147483648, %v4864_v52  ;;  %v1401_v59 = vsel %vm1388_vm5, %v1400_v36, %v1399_v42  ;;  %v954_v23 = vadd.f32 %v946_v29, %v888_v43  ;;  %v485_v29 = vand.u32 2147483647, %v4880_v27 }
  0xec   : > { %3040 = vst [vmem:[%s3989_s9 + $0x8a8] sm:$0xff] %v4733_v16  ;;  %v1448_v38 = vsel %vm1426_vm0, %v1401_v59, 0.0  ;;  %v1133_v28 = vadd.f32 %v1132_v12, %v1131_v5  ;;  %v1181_v54 = vadd.f32 %v1180_v18, %v1179_v34  ;;  %v1228_v17 = vrot.slane %v1227_v41, 1  ;;  %v4916_v5 = vld [vmem:[%s3985_s27 + $0xb0] sm:$0xff] }
  0xed   : > { %3048 = vst [vmem:[%s3989_s9 + $0x628] sm:$0xff] %v666_v60  ;;  %v1449_v25 = vrot.slane %v1448_v38, 4  ;;  %v1061_v6 = vmul.f32 -0.125, %v954_v23  ;;  %v4906_v16 = vsub.f32 %v6452_v55, %v4889_v50  ;;  %vm4908_vm15 = vcmp.eq.f32.partialorder %v1530_v51, 8.507059e+37 }
  0xee   : > { %3056 = vst [vmem:[%s3989_s9 + $0x8e8] sm:$0xff] %v4769_v31  ;;  %v1229_v43 = vadd.f32 %v1228_v17, %v1227_v41  ;;  %v1252_v36 = vmul.f32 0.125, %v1133_v28  ;;  %v1260_v60 = vmul.f32 0.125, %v1181_v54  ;;  %v4919_v31 = vld [vmem:[%s3985_s27 + $0xf0] sm:$0xff]  ;;  %v6450_v34 = vperm.slane %v4830_v14, 2 }
  0xef   : > { %3064 = vst [vmem:[%s3989_s9 + $0x668] sm:$0xff] %v732_v24  ;;  %v3465_v42 = vpop.eup %3464  ;;  %v1450_v12 = vadd.f32 %v1449_v25, %v1448_v38  ;;  %v1074_v51 = vmul.f32 1.442695, %v1061_v6  ;;  %v551_v18 = vand.u32 2147483647, %v4906_v16  ;;  %v6451_v41 = vperm.slane %v4830_v14, 3 }
  0xf0   : > { %3072 = vst [vmem:[%s3989_s9 + $0x928] sm:$0xff] %v4783_v39  ;;  %v1522_v24 = vmul.f32 %v3465_v42, %v4864_v52  ;;  %vm1527_vm2 = vweird.f32 %v3465_v42  ;;  %v1268_v59 = vmul.f32 0.125, %v1229_v43  ;;  %v1280_v23 = vmax.f32 %v1252_v36, %v1260_v60  ;;  %v4941_v25 = vld [vmem:[%s3985_s27 + $0x130] sm:$0xff] }
  0xf1   : > { %3080 = vst [vmem:[%s3989_s9 + $0x6a8] sm:$0xff] %v798_v32  ;;  %v1451_v28 = vrot.slane %v1450_v12, 2  ;;  %3466 = vpow2.f32 %v1074_v51  ;;  %v559_v38 = vadd.f32 %v551_v18, %v485_v29  ;;  %v4935_v39 = vsub.f32 %v6450_v34, %v4916_v5  ;;  %v380_v34 = vld [vmem:[%s3957_s29 + $0x28] sm:$0xff]  ;;  %vm4963_vm3 = vmor %vm1526_vm14, %vm1527_vm2 }
  0xf2   : > { %3088 = vst [vmem:[%s3989_s9 + $0x968] sm:$0xff] %v4814_v44  ;;  %v1523_v54 = vsub.f32 1.0, %v1522_v24  ;;  %v1281_v17 = vmax.f32 %v1280_v23, %v1268_v59  ;;  %v4946_v32 = vsub.f32 %v6451_v41, %v4919_v31  ;;  %v6457_v44 = vperm.slane %v4830_v14, 4  ;;  %v4958_v41 = vld [vmem:[%s3985_s27 + $0x170] sm:$0xff] }
  0xf3   : > { %3096 = vst [vmem:[%s3989_s9 + $0x6e8] sm:$0xff] %v864_v56  ;;  %v1533_v6 = vor.u32 1.1754944e-38, %v1532_v49  ;;  %v1452_v29 = vadd.f32 %v1451_v28, %v1450_v12  ;;  %v617_v43 = vand.u32 2147483647, %v4935_v39  ;;  %v6455_v56 = vperm.slane %v4830_v14, 5  ;;  %v388_v12 = vld [vmem:[%s3957_s29 + $0x68] sm:$0xff] }
  0xf4   : > { %3104 = vst [vmem:[%s3989_s9 + $0x9a8] sm:$0xff] %v4836_v8  ;;  %v1524_v51 = vmul.f32 %v3465_v42, %v1523_v54  ;;  %v1292_v18 = vsub.f32 %v1252_v36, %v1281_v17  ;;  %v1300_v24 = vsub.f32 %v1260_v60, %v1281_v17  ;;  %v1308_v23 = vsub.f32 %v1268_v59, %v1281_v17  ;;  %v396_v28 = vld [vmem:[%s3957_s29 + $0xa8] sm:$0xff] }
  0xf5   : > { %3112 = vst [vmem:[%s3989_s9 + $0x728] sm:$0xff] %v930_v33  ;;  %v1453_v49 = vrot.slane %v1452_v29, 1  ;;  %v625_v36 = vadd.f32 %v617_v43, %v559_v38  ;;  %v683_v60 = vand.u32 2147483647, %v4946_v32  ;;  %v4975_v45 = vsub.f32 %v6457_v44, %v4941_v25 }
  0xf6   : > { %3120 = vst [vmem:[%s3989_s9 + $0x9e8] sm:$0xff] %v4846_v48  ;;  %v1525_v33 = vadd.f32 %v3465_v42, %v1524_v51  ;;  %v1320_v52 = vmul.f32 1.442695, %v1292_v18  ;;  %v1336_v59 = vmul.f32 1.442695, %v1300_v24  ;;  %v4983_v38 = vsub.f32 %v6455_v56, %v4958_v41 }
  0xf7   : > { %v1352_v54 = vmul.f32 1.442695, %v1308_v23  ;;  %v3467_v17 = vpop.eup %3466  ;;  %v1454_v55 = vadd.f32 %v1453_v49, %v1452_v29  ;;  %3128 = vst [vmem:[%s3989_s9 + $0x2a8] sm:$0xff] %v4681_v10  ;;  %v691_v40 = vadd.f32 %v683_v60, %v625_v36  ;;  %v749_v48 = vand.u32 2147483647, %v4975_v45 }
  0xf8   : > { %v1529_v43 = vsel %vm4963_vm3, %v3465_v42, %v1525_v33  ;;  %3468 = vpow2.f32 %v1320_v52  ;;  %v1085_v51 = vmul.f32 %v3467_v17, %v380_v34  ;;  %v1093_v18 = vmul.f32 %v3467_v17, %v388_v12  ;;  %3136 = vst [vmem:[%s3989_s9 + $0x2e8] sm:$0xff] %v4696_v63  ;;  %v4999_v34 = vld.sshfl [vmem:[#allocation1 + $0x10] sm:$0xff pattern:$0x75316420]  ;;  %v5016_v12 = vld [vmem:[%s3949_s17 + $0x38] sm:$0xff] }
  0xf9   : > { %v4991_v10 = vsel %vm4908_vm15, %v1533_v6, %v1529_v43  ;;  %v4993_v29 = vperm.slane %v1454_v55, 0  ;;  %3470 = vpow2.f32 %v1336_v59  ;;  %v1101_v24 = vmul.f32 %v3467_v17, %v396_v28  ;;  %3144 = vst [vmem:[%s3989_s9 + $0x328] sm:$0xff] %v4702_v4 }
  0xfa   : > { %v1535_v42 = vmul.f32 %v4722_v21, %v4991_v10  ;;  %3472 = vpow2.f32 %v1352_v54  ;;  %v1134_v63 = vrot.slane %v1085_v51, 4  ;;  %v1182_v23 = vrot.slane %v1093_v18, 4  ;;  %3152 = vst [vmem:[%s3989_s9 + $0x368] sm:$0xff] %v4728_v26  ;;  %v5013_v26 = vld [vmem:[%s3985_s27 + $0x1b0] sm:$0xff] }
  0xfb   : > { %3474 = vrcp.f32 %v4993_v29  ;;  %v1545_v55 = vand.u32 2147483647, %v4993_v29  ;;  %v1547_v4 = vand.u32 2147483648, %v4993_v29  ;;  %3160 = vst [vmem:[%s3989_s9 + $0x3a8] sm:$0xff] %v4759_v47  ;;  %v6454_v21 = vperm.slane %v4830_v14, 6  ;;  %v5031_v54 = vld [vmem:[%s3985_s27 + $0x1f0] sm:$0xff] }
  0xfc   : > { %v1967_v19 = vsub.f32 %v1535_v42, %v4999_v34  ;;  %v1135_v6 = vadd.f32 %v1134_v63, %v1085_v51  ;;  %v1183_v8 = vadd.f32 %v1182_v23, %v1093_v18  ;;  %v1230_v49 = vrot.slane %v1101_v24, 4  ;;  %3168 = vst [vmem:[%s3989_s9 + $0x3e8] sm:$0xff] %v4795_v11 }
  0xfd   : > { %vm1541_vm6 = vweird.f32 %v4993_v29  ;;  %v5019_v28 = vor.u32 1.1754944e-38, %v1547_v4  ;;  %3176 = vst [vmem:[%s3989_s9 + $0x428] sm:$0xff] %v4820_v37  ;;  %v757_v47 = vadd.f32 %v749_v48, %v691_v40  ;;  %v815_v36 = vand.u32 2147483647, %v4983_v38 }
  0xfe   : > { %v5024_v60 = vpop.eup %3468  ;;  %v5026_v33 = vand.u32 2147483647, %v1967_v19  ;;  %v1136_v52 = vrot.slane %v1135_v6, 2  ;;  %v1184_v11 = vrot.slane %v1183_v8, 2  ;;  %v1231_v59 = vadd.f32 %v1230_v49, %v1101_v24  ;;  %3184 = vst [vmem:[%s3989_s9 + $0x468] sm:$0xff] %v4825_v22 }
  0xff   : > { %v5033_v17 = vpop.eup %3470  ;;  %2541 = vst [vmem:[%s3989_s9 + $0x28] sm:$0xff] %v1085_v51  ;;  %v823_v37 = vadd.f32 %v815_v36, %v757_v47  ;;  %v5039_v40 = vsub.f32 %v6454_v21, %v5013_v26  ;;  %v6456_v48 = vperm.slane %v4830_v14, 7  ;;  %vm5046_vm7 = vcmp.eq.f32.partialorder %v1545_v55, 8.507059e+37 }
 0x100   : > { %6534 = vst [vmem:[#allocation25_spill] sm:$0xff] %v5033_v17  ;;  %v5043_v42 = vpop.eup %3472  ;;  %v2621_v22 = vperm.slane %v5026_v33, 0  ;;  %v1402_v51 = vrot.slane %v5033_v17, 7  ;;  %v1137_v23 = vadd.f32 %v1136_v52, %v1135_v6  ;;  %v1185_v4 = vadd.f32 %v1184_v11, %v1183_v8  ;;  %v5065_v8 = vld [vmem:[%s3985_s27 + $0x38] sm:$0xff] }
 0x101   : > { %6535 = vst [vmem:[#allocation26_spill] sm:$0xff] %v5043_v42  ;;  %v3475_v19 = vpop.eup %3474  ;;  %v1404_v49 = vrot.slane %v5043_v42, 6  ;;  %v1232_v47 = vrot.slane %v1231_v59, 2  ;;  %v881_v36 = vand.u32 2147483647, %v5039_v40  ;;  %v5058_v55 = vsub.f32 %v6456_v48, %v5031_v54 }
 0x102   : > { %2549 = vst [vmem:[%s3989_s9 + $0x68] sm:$0xff] %v1093_v18  ;;  %v1537_v21 = vmul.f32 %v3475_v19, %v4993_v29  ;;  %vm1542_vm8 = vweird.f32 %v3475_v19  ;;  %v1403_v18 = vsel %vm1385_vm4, %v1402_v51, %v5024_v60  ;;  %v1138_v6 = vrot.slane %v1137_v23, 1  ;;  %v5106_v29 = vld [vmem:[%s3985_s27 + $0xf8] sm:$0xff] }
 0x103   : > { %2557 = vst [vmem:[%s3989_s9 + $0xa8] sm:$0xff] %v1101_v24  ;;  %v1405_v24 = vsel %vm1388_vm5, %v1404_v49, %v1403_v18  ;;  %v1186_v52 = vrot.slane %v1185_v4, 1  ;;  %v1233_v11 = vadd.f32 %v1232_v47, %v1231_v59  ;;  %v889_v56 = vadd.f32 %v881_v36, %v823_v37  ;;  %v5079_v37 = vld [vmem:[%s3985_s27 + $0x78] sm:$0xff]  ;;  %vm5092_vm9 = vmor %vm1541_vm6, %vm1542_vm8 }
 0x104   : > { %3245 = vst [vmem:[%s3989_s9 + $0x490] sm:$0xff] %v2621_v22  ;;  %v6538_v48 = vperm.slane %v4830_v14, 0  ;;  %v1538_v22 = vsub.f32 1.0, %v1537_v21  ;;  %v1455_v44 = vsel %vm1426_vm0, %v1405_v24, 0.0  ;;  %v1139_v43 = vadd.f32 %v1138_v6, %v1137_v23 }
 0x105   : > { %v947_v51 = vand.u32 2147483647, %v5058_v55  ;;  %3009 = vst [vmem:[%s3989_s9 + $0x830] sm:$0xff] %v4880_v27  ;;  %v1456_v3 = vrot.slane %v1455_v44, 4  ;;  %v1187_v42 = vadd.f32 %v1186_v52, %v1185_v4  ;;  %v1234_v49 = vrot.slane %v1233_v11, 1 }
 0x106   : > { %3001 = vst [vmem:[%s3989_s9 + $0x570] sm:$0xff] %v6538_v48  ;;  %v6539_v59 = vperm.slane %v4830_v14, 1  ;;  %v6540_v21 = vperm.slane %v5016_v12, 0  ;;  %v1539_v23 = vmul.f32 %v3475_v19, %v1538_v22  ;;  %v1253_v47 = vmul.f32 0.125, %v1139_v43 }
 0x107   : > { %v955_v27 = vadd.f32 %v947_v51, %v889_v56  ;;  %3025 = vst [vmem:[%s3989_s9 + $0x870] sm:$0xff] %v4906_v16  ;;  %v6466_v4 = vperm.slane %v5016_v12, 1  ;;  %v1457_v18 = vadd.f32 %v1456_v3, %v1455_v44  ;;  %v1235_v6 = vadd.f32 %v1234_v49, %v1233_v11  ;;  %v5100_v56 = vld [vmem:[%s3985_s27 + $0xb8] sm:$0xff] }
 0x108   : > { %3017 = vst [vmem:[%s3989_s9 + $0x5b0] sm:$0xff] %v6539_v59  ;;  %v5084_v48 = vsub.f32 %v6540_v21, %v5065_v8  ;;  %v1261_v24 = vmul.f32 0.125, %v1187_v42  ;;  %v6543_v52 = vperm.slane %v4830_v14, 2  ;;  %v1540_v43 = vadd.f32 %v3475_v19, %v1539_v23 }
 0x109   : > { %v1062_v22 = vmul.f32 -0.125, %v955_v27  ;;  %3041 = vst [vmem:[%s3989_s9 + $0x8b0] sm:$0xff] %v4935_v39  ;;  %v5111_v3 = vsub.f32 %v6466_v4, %v5079_v37  ;;  %v6465_v44 = vperm.slane %v5016_v12, 2  ;;  %v1458_v42 = vrot.slane %v1457_v18, 2 }
 0x10a   : > { %3033 = vst [vmem:[%s3989_s9 + $0x5f0] sm:$0xff] %v6543_v52  ;;  %v486_v16 = vand.u32 2147483647, %v5084_v48  ;;  %v1269_v11 = vmul.f32 0.125, %v1235_v6  ;;  %v1282_v51 = vmax.f32 %v1253_v47, %v1261_v24  ;;  %v6544_v49 = vperm.slane %v4830_v14, 3 }
 0x10b   : > { %v6462_v59 = vperm.slane %v5016_v12, 3  ;;  %v1544_v39 = vsel %vm5092_vm9, %v3475_v19, %v1540_v43  ;;  %v1076_v21 = vmul.f32 1.442695, %v1062_v22  ;;  %3057 = vst [vmem:[%s3989_s9 + $0x8f0] sm:$0xff] %v4946_v32  ;;  %v552_v23 = vand.u32 2147483647, %v5111_v3 }
 0x10c   : > { %3049 = vst [vmem:[%s3989_s9 + $0x630] sm:$0xff] %v6544_v49  ;;  %v5126_v27 = vsub.f32 %v6465_v44, %v5100_v56  ;;  %v5131_v6 = vsel %vm5046_vm7, %v5019_v28, %v1544_v39  ;;  %v1459_v52 = vadd.f32 %v1458_v42, %v1457_v18  ;;  %v1283_v36 = vmax.f32 %v1282_v51, %v1269_v11  ;;  %v5146_v18 = vld.sshfl [vmem:[#allocation1 + $0x18] sm:$0xff pattern:$0x75316420] }
 0x10d   : > { %v6545_v19 = vperm.slane %v4830_v14, 4  ;;  %v5139_v32 = vsub.f32 %v6462_v59, %v5106_v29  ;;  %v1550_v43 = vmul.f32 %v4848_v15, %v5131_v6  ;;  %3476 = vpow2.f32 %v1076_v21  ;;  %3073 = vst [vmem:[%s3989_s9 + $0x930] sm:$0xff] %v4975_v45 }
 0x10e   : > { %v560_v28 = vadd.f32 %v552_v23, %v486_v16  ;;  %v618_v63 = vand.u32 2147483647, %v5126_v27  ;;  %v1460_v22 = vrot.slane %v1459_v52, 1  ;;  %v1293_v42 = vsub.f32 %v1253_v47, %v1283_v36  ;;  %3089 = vst [vmem:[%s3989_s9 + $0x970] sm:$0xff] %v4983_v38 }
 0x10f   : > { %3065 = vst [vmem:[%s3989_s9 + $0x670] sm:$0xff] %v6545_v19  ;;  %v1301_v51 = vsub.f32 %v1261_v24, %v1283_v36  ;;  %v1309_v49 = vsub.f32 %v1269_v11, %v1283_v36  ;;  %v6546_v39 = vperm.slane %v4830_v14, 5  ;;  %v5152_v19 = vld [vmem:[%s3985_s27 + $0x138] sm:$0xff]  ;;  %v1968_v15 = vsub.f32 %v1550_v43, %v5146_v18 }
 0x110   : > { %v626_v45 = vadd.f32 %v618_v63, %v560_v28  ;;  %v6461_v16 = vperm.slane %v5016_v12, 4  ;;  %v1461_v21 = vadd.f32 %v1460_v22, %v1459_v52  ;;  %v1322_v23 = vmul.f32 1.442695, %v1293_v42  ;;  %v381_v52 = vld [vmem:[%s3957_s29 + $0x30] sm:$0xff]  ;;  %3105 = vst [vmem:[%s3989_s9 + $0x9b0] sm:$0xff] %v5039_v40  ;;  %v5183_v40 = vld [vmem:[%s3985_s27 + $0x178] sm:$0xff] }
 0x111   : > { %3081 = vst [vmem:[%s3989_s9 + $0x6b0] sm:$0xff] %v6546_v39  ;;  %v1338_v47 = vmul.f32 1.442695, %v1301_v51  ;;  %v684_v24 = vand.u32 2147483647, %v5139_v32  ;;  %v6547_v39 = vperm.slane %v4830_v14, 6 }
 0x112   : > { %v1992_v11 = vand.u32 2147483647, %v1968_v15  ;;  %v1354_v36 = vmul.f32 1.442695, %v1309_v49  ;;  %v5165_v38 = vsub.f32 %v6461_v16, %v5152_v19  ;;  %v5167_v43 = vperm.slane %v1461_v21, 0  ;;  %v389_v28 = vld [vmem:[%s3957_s29 + $0x70] sm:$0xff] }
 0x113   : > { %3097 = vst [vmem:[%s3989_s9 + $0x6f0] sm:$0xff] %v6547_v39  ;;  %3478 = vpow2.f32 %v1322_v23  ;;  %v6464_v63 = vperm.slane %v5016_v12, 5  ;;  %v3477_v22 = vpop.eup %3476  ;;  %v397_v49 = vld [vmem:[%s3957_s29 + $0xb0] sm:$0xff]  ;;  %v6548_v15 = vperm.slane %v4830_v14, 7  ;;  %v6463_v21 = vperm.slane %v5016_v12, 6  ;;  %v5186_v23 = vld [vmem:[%s3985_s27 + $0x1b8] sm:$0xff] }
 0x114   : > { %v2290_v42 = vrot.slane %v1992_v11, 4  ;;  %v2622_v51 = vperm.slane %v1992_v11, 0  ;;  %3480 = vpow2.f32 %v1338_v47  ;;  %3121 = vst [vmem:[%s3989_s9 + $0x9f0] sm:$0xff] %v5058_v55  ;;  %v692_v39 = vadd.f32 %v684_v24, %v626_v45  ;;  %v5200_v45 = vld [vmem:[%s3985_s27 + $0x1f8] sm:$0xff] }
 0x115   : > { %3113 = vst [vmem:[%s3989_s9 + $0x730] sm:$0xff] %v6548_v15  ;;  %3482 = vrcp.f32 %v5167_v43  ;;  %v750_v47 = vand.u32 2147483647, %v5165_v38  ;;  %v1086_v11 = vmul.f32 %v3477_v22, %v381_v52  ;;  %v1094_v15 = vmul.f32 %v3477_v22, %v389_v28 }
 0x116   : > { %v5191_v14 = vsel %vm1722_vm1, %v5026_v33, %v2290_v42  ;;  %3246 = vst [vmem:[%s3989_s9 + $0x498] sm:$0xff] %v2622_v51  ;;  %3484 = vpow2.f32 %v1354_v36  ;;  %vm1556_vm10 = vweird.f32 %v5167_v43  ;;  %v1102_v55 = vmul.f32 %v3477_v22, %v397_v49 }
 0x117   : > { %6549 = vst [vmem:[#allocation27_spill] sm:$0xff] %v5191_v14  ;;  %v1140_v16 = vrot.slane %v1086_v11, 4  ;;  %v1188_v59 = vrot.slane %v1094_v15, 4  ;;  %v5205_v33 = vsub.f32 %v6464_v63, %v5183_v40  ;;  %v5210_v24 = vsub.f32 %v6463_v21, %v5186_v23 }
 0x118   : > { %3129 = vst [vmem:[%s3989_s9 + $0x2b0] sm:$0xff] %v4860_v46  ;;  %v1560_v46 = vand.u32 2147483647, %v5167_v43  ;;  %v1236_v52 = vrot.slane %v1102_v55, 4  ;;  %v6468_v28 = vperm.slane %v5016_v12, 7  ;;  %v1562_v42 = vand.u32 2147483648, %v5167_v43 }
 0x119   : > { %3137 = vst [vmem:[%s3989_s9 + $0x2f0] sm:$0xff] %v4889_v50  ;;  %v5212_v36 = vpop.eup %3478  ;;  %v758_v50 = vadd.f32 %v750_v47, %v692_v39  ;;  %v1141_v51 = vadd.f32 %v1140_v16, %v1086_v11  ;;  %v1189_v49 = vadd.f32 %v1188_v59, %v1094_v15  ;;  %v816_v21 = vand.u32 2147483647, %v5205_v33 }
 0x11a   : > { %3145 = vst [vmem:[%s3989_s9 + $0x330] sm:$0xff] %v4916_v5  ;;  %v5218_v22 = vpop.eup %3480  ;;  %v1237_v4 = vadd.f32 %v1236_v52, %v1102_v55  ;;  %v882_v5 = vand.u32 2147483647, %v5210_v24  ;;  %v5231_v39 = vsub.f32 %v6468_v28, %v5200_v45  ;;  %vm1561_vm13 = vcmp.eq.f32.partialorder %v1560_v46, 8.507059e+37 }
 0x11b   : > { %6550 = vst [vmem:[#allocation28_spill] sm:$0xff] %v5218_v22  ;;  %v3483_v63 = vpop.eup %3482  ;;  %v1406_v44 = vrot.slane %v5218_v22, 7  ;;  %v1142_v16 = vrot.slane %v1141_v51, 2  ;;  %v1190_v47 = vrot.slane %v1189_v49, 2  ;;  %v824_v28 = vadd.f32 %v816_v21, %v758_v50 }
 0x11c   : > { %3153 = vst [vmem:[%s3989_s9 + $0x370] sm:$0xff] %v4919_v31  ;;  %v5233_v59 = vpop.eup %3484  ;;  %v1552_v31 = vmul.f32 %v3483_v63, %v5167_v43  ;;  %vm1557_vm11 = vweird.f32 %v3483_v63  ;;  %v1238_v20 = vrot.slane %v1237_v4, 2  ;;  %v948_v30 = vand.u32 2147483647, %v5231_v39 }
 0x11d   : > { %3161 = vst [vmem:[%s3989_s9 + $0x3b0] sm:$0xff] %v4941_v25  ;;  %v1407_v25 = vsel %vm1385_vm4, %v1406_v44, %v5212_v36  ;;  %v1408_v52 = vrot.slane %v5233_v59, 6  ;;  %v1143_v35 = vadd.f32 %v1142_v16, %v1141_v51  ;;  %v1191_v58 = vadd.f32 %v1190_v47, %v1189_v49  ;;  %vm5253_vm12 = vmor %vm1556_vm10, %vm1557_vm11 }
 0x11e   : > { %6551 = vst [vmem:[#allocation29_spill] sm:$0xff] %v5233_v59  ;;  %v1553_v14 = vsub.f32 1.0, %v1552_v31  ;;  %v1239_v13 = vadd.f32 %v1238_v20, %v1237_v4  ;;  %v890_v44 = vadd.f32 %v882_v5, %v824_v28  ;;  %v1563_v21 = vor.u32 1.1754944e-38, %v1562_v42  ;;  %v5277_v5 = vld.sshfl [vmem:[#allocation1 + $0x20] sm:$0xff pattern:$0x75316420] }
 0x11f   : > { %3169 = vst [vmem:[%s3989_s9 + $0x3f0] sm:$0xff] %v4958_v41  ;;  %v1409_v41 = vsel %vm1388_vm5, %v1408_v52, %v1407_v25  ;;  %v1144_v17 = vrot.slane %v1143_v35, 1  ;;  %v6555_v46 = vperm.slane %v5016_v12, 1  ;;  %vm2037_vm10 = vcmask 1045509  }
 0x120   : > { %3177 = vst [vmem:[%s3989_s9 + $0x430] sm:$0xff] %v5013_v26  ;;  %v1554_v59 = vmul.f32 %v3483_v63, %v1553_v14  ;;  %v1462_v22 = vsel %vm1426_vm0, %v1409_v41, 0.0  ;;  %v1192_v26 = vrot.slane %v1191_v58, 1  ;;  %v1240_v20 = vrot.slane %v1239_v13, 1 }
 0x121   : > { %3185 = vst [vmem:[%s3989_s9 + $0x470] sm:$0xff] %v5031_v54  ;;  %v1463_v50 = vrot.slane %v1462_v22, 4  ;;  %v956_v4 = vadd.f32 %v948_v30, %v890_v44  ;;  %v6558_v44 = vperm.slane %v5016_v12, 4  ;;  %v390_v54 = vld [vmem:[%s3957_s29 + $0x78] sm:$0xff]  ;;  %vm2027_vm11 = vcmask 1046534  }
 0x122   : > { %2542 = vst [vmem:[%s3989_s9 + $0x30] sm:$0xff] %v1086_v11  ;;  %v1555_v14 = vadd.f32 %v3483_v63, %v1554_v59  ;;  %v1145_v11 = vadd.f32 %v1144_v17, %v1143_v35  ;;  %v1193_v28 = vadd.f32 %v1192_v26, %v1191_v58  ;;  %v1241_v51 = vadd.f32 %v1240_v20, %v1239_v13  ;;  %v382_v26 = vld [vmem:[%s3957_s29 + $0x38] sm:$0xff] }
 0x123   : > { %2550 = vst [vmem:[%s3989_s9 + $0x70] sm:$0xff] %v1094_v15  ;;  %v6554_v15 = vperm.slane %v5016_v12, 0  ;;  %v1464_v43 = vadd.f32 %v1463_v50, %v1462_v22  ;;  %v1063_v49 = vmul.f32 -0.125, %v956_v4  ;;  %v6559_v4 = vperm.slane %v5016_v12, 5 }
 0x124   : > { %2558 = vst [vmem:[%s3989_s9 + $0xb0] sm:$0xff] %v1102_v55  ;;  %v1559_v42 = vsel %vm5253_vm12, %v3483_v63, %v1555_v14  ;;  %v1254_v55 = vmul.f32 0.125, %v1145_v11  ;;  %v1262_v30 = vmul.f32 0.125, %v1193_v28  ;;  %v1270_v17 = vmul.f32 0.125, %v1241_v51 }
 0x125   : > { %3002 = vst [vmem:[%s3989_s9 + $0x578] sm:$0xff] %v6554_v15  ;;  %v5268_v58 = vsel %vm1561_vm13, %v1563_v21, %v1559_v42  ;;  %v1465_v35 = vrot.slane %v1464_v43, 2  ;;  %v1078_v22 = vmul.f32 1.442695, %v1063_v49  ;;  %v6556_v63 = vperm.slane %v5016_v12, 2  ;;  %v398_v21 = vld [vmem:[%s3957_s29 + $0xb8] sm:$0xff] }
 0x126   : > { %3010 = vst [vmem:[%s3989_s9 + $0x838] sm:$0xff] %v5084_v48  ;;  %v1565_v13 = vmul.f32 %v5024_v60, %v5268_v58  ;;  %v1284_v48 = vmax.f32 %v1254_v55, %v1262_v30  ;;  %v6557_v60 = vperm.slane %v5016_v12, 3  ;;  %v6560_v51 = vperm.slane %v5016_v12, 6 }
 0x127   : > { %3018 = vst [vmem:[%s3989_s9 + $0x5b8] sm:$0xff] %v6555_v46  ;;  %v1466_v59 = vadd.f32 %v1465_v35, %v1464_v43  ;;  %3486 = vpow2.f32 %v1078_v22  ;;  %vm2033_vm12 = vcmask 1043459  }
 0x128   : > { %3026 = vst [vmem:[%s3989_s9 + $0x878] sm:$0xff] %v5111_v3  ;;  %v1969_v3 = vsub.f32 %v1565_v13, %v5277_v5  ;;  %v1285_v31 = vmax.f32 %v1284_v48, %v1270_v17 }
 0x129   : > { %3034 = vst [vmem:[%s3989_s9 + $0x5f8] sm:$0xff] %v6556_v63  ;;  %v1467_v16 = vrot.slane %v1466_v59, 1 }
 0x12a   : > { %3042 = vst [vmem:[%s3989_s9 + $0x8b8] sm:$0xff] %v5126_v27  ;;  %v5287_v47 = vand.u32 2147483647, %v1969_v3  ;;  %v1294_v25 = vsub.f32 %v1254_v55, %v1285_v31  ;;  %v1302_v52 = vsub.f32 %v1262_v30, %v1285_v31  ;;  %v1310_v41 = vsub.f32 %v1270_v17, %v1285_v31 }
 0x12b   : > { %3050 = vst [vmem:[%s3989_s9 + $0x638] sm:$0xff] %v6557_v60  ;;  %v1468_v27 = vadd.f32 %v1467_v16, %v1466_v59  ;;  %v6561_v55 = vperm.slane %v5016_v12, 7 }
 0x12c   : > { %3058 = vst [vmem:[%s3989_s9 + $0x8f8] sm:$0xff] %v5139_v32  ;;  %v2623_v50 = vperm.slane %v5287_v47, 0  ;;  %v1324_v32 = vmul.f32 1.442695, %v1294_v25  ;;  %v1340_v20 = vmul.f32 1.442695, %v1302_v52 }
 0x12d   : > { %3066 = vst [vmem:[%s3989_s9 + $0x678] sm:$0xff] %v6558_v44  ;;  %v3487_v14 = vpop.eup %3486  ;;  %v1488_v11 = vperm.slane %v1468_v27, 0  ;;  %v1356_v28 = vmul.f32 1.442695, %v1310_v41 }
 0x12e   : > { %3074 = vst [vmem:[%s3989_s9 + $0x938] sm:$0xff] %v5165_v38  ;;  %3488 = vpow2.f32 %v1324_v32  ;;  %v5304_v15 = vmul.f32 %v3487_v14, %v382_v26  ;;  %v5306_v38 = vmul.f32 %v3487_v14, %v390_v54  ;;  %v5308_v43 = vmul.f32 %v3487_v14, %v398_v21  ;;  %v5402_v54 = vld.sshfl [vmem:[#allocation1] sm:$0xff pattern:$0x75316420] }
 0x12f   : > { %3082 = vst [vmem:[%s3989_s9 + $0x6b8] sm:$0xff] %v6559_v4  ;;  %3490 = vrcp.f32 %v1488_v11  ;;  %vm1571_vm14 = vweird.f32 %v1488_v11  ;;  %v1575_v59 = vand.u32 2147483647, %v1488_v11  ;;  %v1577_v31 = vand.u32 2147483648, %v1488_v11 }
 0x130   : > { %3090 = vst [vmem:[%s3989_s9 + $0x978] sm:$0xff] %v5205_v33  ;;  %3492 = vpow2.f32 %v1340_v20  ;;  %v1146_v49 = vrot.slane %v5304_v15, 4  ;;  %v1194_v33 = vrot.slane %v5306_v38, 4  ;;  %v1242_v42 = vrot.slane %v5308_v43, 4 }
 0x131   : > { %3247 = vst [vmem:[%s3989_s9 + $0x4a0] sm:$0xff] %v2623_v50  ;;  %3494 = vpow2.f32 %v1356_v28  ;;  %vm1576_vm3 = vcmp.eq.f32.partialorder %v1575_v59, 8.507059e+37 }
 0x132   : > { %3098 = vst [vmem:[%s3989_s9 + $0x6f8] sm:$0xff] %v6560_v51  ;;  %v1147_v30 = vadd.f32 %v1146_v49, %v5304_v15  ;;  %v1195_v46 = vadd.f32 %v1194_v33, %v5306_v38  ;;  %v1243_v35 = vadd.f32 %v1242_v42, %v5308_v43 }
 0x133   : > { %3106 = vst [vmem:[%s3989_s9 + $0x9b8] sm:$0xff] %v5210_v24 }
 0x134   : > { %3114 = vst [vmem:[%s3989_s9 + $0x738] sm:$0xff] %v6561_v55  ;;  %v5328_v17 = vpop.eup %3488  ;;  %v1148_v22 = vrot.slane %v1147_v30, 2  ;;  %v1196_v13 = vrot.slane %v1195_v46, 2  ;;  %v1244_v24 = vrot.slane %v1243_v35, 2 }
 0x135   : > { %3122 = vst [vmem:[%s3989_s9 + $0x9f8] sm:$0xff] %v5231_v39  ;;  %v3491_v12 = vpop.eup %3490  ;;  %v5372_v55 = vld.sshfl [vmem:[#allocation1 + $0x28] sm:$0xff pattern:$0x75316420] }
 0x136   : > { %3130 = vst [vmem:[%s3989_s9 + $0x2b8] sm:$0xff] %v5065_v8  ;;  %v5334_v48 = vpop.eup %3492  ;;  %v1567_v63 = vmul.f32 %v3491_v12, %v1488_v11  ;;  %v1149_v39 = vadd.f32 %v1148_v22, %v1147_v30  ;;  %v1197_v8 = vadd.f32 %v1196_v13, %v1195_v46  ;;  %vm1572_vm15 = vweird.f32 %v3491_v12 }
 0x137   : > { %3138 = vst [vmem:[%s3989_s9 + $0x2f8] sm:$0xff] %v5079_v37  ;;  %v5338_v3 = vpop.eup %3494  ;;  %v1410_v37 = vrot.slane %v5334_v48, 7  ;;  %v1245_v60 = vadd.f32 %v1244_v24, %v1243_v35  ;;  %vm5355_vm2 = vmor %vm1571_vm14, %vm1572_vm15  ;;  %vm2025_vm15 = vcmask 1044484  }
 0x138   : > { %3146 = vst [vmem:[%s3989_s9 + $0x338] sm:$0xff] %v5100_v56  ;;  %v1568_v56 = vsub.f32 1.0, %v1567_v63  ;;  %v1412_v16 = vrot.slane %v5338_v3, 6  ;;  %v1150_v25 = vrot.slane %v1149_v39, 1  ;;  %v1198_v52 = vrot.slane %v1197_v8, 1 }
 0x139   : > { %3154 = vst [vmem:[%s3989_s9 + $0x378] sm:$0xff] %v5106_v29  ;;  %v1411_v29 = vsel %vm1385_vm4, %v1410_v37, %v5328_v17  ;;  %v1246_v41 = vrot.slane %v1245_v60, 1 }
 0x13a   : > { %3162 = vst [vmem:[%s3989_s9 + $0x3b8] sm:$0xff] %v5152_v19  ;;  %v1569_v44 = vmul.f32 %v3491_v12, %v1568_v56  ;;  %v1413_v27 = vsel %vm1388_vm5, %v1412_v16, %v1411_v29  ;;  %v1151_v19 = vadd.f32 %v1150_v25, %v1149_v39  ;;  %v1199_v26 = vadd.f32 %v1198_v52, %v1197_v8 }
 0x13b   : > { %3170 = vst [vmem:[%s3989_s9 + $0x3f8] sm:$0xff] %v5183_v40  ;;  %v1578_v40 = vor.u32 1.1754944e-38, %v1577_v31  ;;  %v1469_v21 = vsel %vm1426_vm0, %v1413_v27, 0.0  ;;  %v5380_v56 = vrot.slane %v3972_v1, 6  ;;  %v5383_v16 = vrot.slane %v3972_v1, 1 }
 0x13c   : > { %3178 = vst [vmem:[%s3989_s9 + $0x438] sm:$0xff] %v5186_v23  ;;  %v1247_v23 = vadd.f32 %v1246_v41, %v1245_v60  ;;  %v1570_v50 = vadd.f32 %v3491_v12, %v1569_v44  ;;  %v1470_v32 = vrot.slane %v1469_v21, 4  ;;  %v1255_v20 = vmul.f32 0.125, %v1151_v19  ;;  %v5398_v27 = vld.sshfl [vmem:[#allocation1 + $0x30] sm:$0xff pattern:$0x75316420] }
 0x13d   : > { %3186 = vst [vmem:[%s3989_s9 + $0x478] sm:$0xff] %v5200_v45  ;;  %v1263_v4 = vmul.f32 0.125, %v1199_v26  ;;  %v5386_v25 = vrot.slane %v3974_v2, 4  ;;  %v5396_v41 = vrot.slane %v3974_v2, 7 }
 0x13e   : > { %2543 = vst [vmem:[%s3989_s9 + $0x38] sm:$0xff] %v5304_v15  ;;  %v1271_v45 = vmul.f32 0.125, %v1247_v23  ;;  %v1574_v14 = vsel %vm5355_vm2, %v3491_v12, %v1570_v50  ;;  %v1471_v11 = vadd.f32 %v1470_v32, %v1469_v21  ;;  %v5405_v21 = vld.sshfl [vmem:[#allocation1 + $0x8] sm:$0xff pattern:$0x75316420]  ;;  %v1927_v50 = vrot.slane %v4999_v34, 1 }
 0x13f   : > { %2551 = vst [vmem:[%s3989_s9 + $0x78] sm:$0xff] %v5306_v38  ;;  %v1286_v28 = vmax.f32 %v1255_v20, %v1263_v4  ;;  %v5368_v51 = vsel %vm1576_vm3, %v1578_v40, %v1574_v14  ;;  %v1925_v40 = vrot.slane %v5402_v54, 1  ;;  %v1926_v23 = vrot.slane %v5405_v21, 1 }
 0x140   : > { %2559 = vst [vmem:[%s3989_s9 + $0xb8] sm:$0xff] %v5308_v43  ;;  %v1580_v49 = vmul.f32 %v5212_v36, %v5368_v51  ;;  %v1472_v33 = vrot.slane %v1471_v11, 2  ;;  %v5376_v36 = vrot.slane %v3970_v0, 3  ;;  %v1929_v14 = vrot.slane %v5277_v5, 1 }
 0x141   : > { %v1287_v42 = vmax.f32 %v1286_v28, %v1271_v45  ;;  %v1930_v28 = vrot.slane %v5372_v55, 1 }
 0x142   : > { %v1970_v30 = vsub.f32 %v1580_v49, %v5372_v55  ;;  %v1473_v46 = vadd.f32 %v1472_v33, %v1471_v11  ;;  %v5393_v29 = vsel %vm1385_vm4, %v3970_v0, %v5376_v36 }
 0x143   : > { %v1295_v35 = vsub.f32 %v1255_v20, %v1287_v42  ;;  %v1303_v22 = vsub.f32 %v1263_v4, %v1287_v42  ;;  %v1311_v13 = vsub.f32 %v1271_v45, %v1287_v42  ;;  %v1928_v45 = vrot.slane %v5146_v18, 1 }
 0x144   : > { %v1994_v24 = vand.u32 2147483647, %v1970_v30  ;;  %v1474_v12 = vrot.slane %v1473_v46, 1 }
 0x145   : > { %v1326_v63 = vmul.f32 1.442695, %v1295_v35  ;;  %v1342_v59 = vmul.f32 1.442695, %v1303_v22  ;;  %v1358_v39 = vmul.f32 1.442695, %v1311_v13 }
 0x146   : > { %v2624_v8 = vperm.slane %v1994_v24, 0  ;;  %v1475_v31 = vadd.f32 %v1474_v12, %v1473_v46  ;;  %v2291_v60 = vrot.slane %v1994_v24, 4  ;;  %v1611_v12 = vmul.f32 %v4421_v62, %v4643_v61 }
 0x147   : > { %3496 = vpow2.f32 %v1326_v63  ;;  %v1612_v63 = vmul.f32 %v4548_v57, %v4788_v7 }
 0x148   : > { %3498 = vpow2.f32 %v1342_v59  ;;  %3248 = vst [vmem:[%s3989_s9 + $0x4a8] sm:$0xff] %v2624_v8  ;;  %v1489_v37 = vperm.slane %v1475_v31, 0  ;;  %v5413_v20 = vsel %vm1722_vm1, %v5287_v47, %v2291_v60  ;;  %v1613_v59 = vmul.f32 %v4735_v9, %v4991_v10  ;;  %v6566_v60 = vld [vmem:[#allocation25_spill] sm:$0xff] }
 0x149   : > { %3500 = vpow2.f32 %v1358_v39  ;;  %v1614_v31 = vmul.f32 %v4853_v53, %v5131_v6 }
 0x14a   : > { %3502 = vrcp.f32 %v1489_v37  ;;  %v1590_v44 = vand.u32 2147483647, %v1489_v37  ;;  %v1592_v26 = vand.u32 2147483648, %v1489_v37  ;;  %vm1586_vm6 = vweird.f32 %v1489_v37 }
 0x14b   : > { %v1976_v57 = vsub.f32 %v1614_v31, %v1928_v45 }
 0x14c   : > { %vm5421_vm7 = vcmp.eq.f32.partialorder %v1590_v44, 8.507059e+37  ;;  %v1593_v22 = vor.u32 1.1754944e-38, %v1592_v26  ;;  %v1615_v44 = vmul.f32 %v6566_v60, %v5268_v58  ;;  %v1973_v26 = vsub.f32 %v1611_v12, %v1925_v40 }
 0x14d   : > { %v5388_v52 = vpop.eup %3496  ;;  %v2000_v12 = vand.u32 2147483647, %v1976_v57 }
 0x14e   : > { %v5400_v19 = vpop.eup %3498  ;;  %v1977_v30 = vsub.f32 %v1615_v44, %v1929_v14  ;;  %v1997_v53 = vand.u32 2147483647, %v1973_v26 }
 0x14f   : > { %v5409_v32 = vpop.eup %3500  ;;  %v1414_v4 = vrot.slane %v5400_v19, 7  ;;  %v2676_v31 = vperm.slane %v2000_v12, 0 }
 0x150   : > { %v1416_v11 = vrot.slane %v5409_v32, 6  ;;  %v3503_v33 = vpop.eup %3502 }
 0x151   : > { %v1415_v47 = vsel %vm1385_vm4, %v1414_v4, %v5388_v52  ;;  %v1582_v35 = vmul.f32 %v3503_v33, %v1489_v37  ;;  %vm1587_vm8 = vweird.f32 %v3503_v33  ;;  %v1974_v4 = vsub.f32 %v1612_v63, %v1926_v23  ;;  %3262 = vst [vmem:[%s3989_s9 + $0x4d8] sm:$0xff] %v2676_v31 }
 0x152   : > { %v1417_v13 = vsel %vm1388_vm5, %v1416_v11, %v1415_v47  ;;  %v1975_v11 = vsub.f32 %v1613_v59, %v1927_v50  ;;  %v6567_v47 = vld [vmem:[#allocation28_spill] sm:$0xff]  ;;  %vm5445_vm9 = vmor %vm1586_vm6, %vm1587_vm8  ;;  %v2001_v63 = vand.u32 2147483647, %v1977_v30  ;;  %v2673_v59 = vperm.slane %v1997_v53, 0 }
 0x153   : > { %v1476_v24 = vsel %vm1426_vm0, %v1417_v13, 0.0  ;;  %v1583_v39 = vsub.f32 1.0, %v1582_v35  ;;  %v1616_v62 = vmul.f32 %v6567_v47, %v5368_v51  ;;  %v1998_v35 = vand.u32 2147483647, %v1974_v4 }
 0x154   : > { %v1477_v8 = vrot.slane %v1476_v24, 4  ;;  %v1999_v49 = vand.u32 2147483647, %v1975_v11  ;;  %3259 = vst [vmem:[%s3989_s9 + $0x4c0] sm:$0xff] %v2673_v59  ;;  %v2677_v30 = vperm.slane %v2001_v63, 0  ;;  %v6573_v59 = vrot.slane %v5402_v54, 2 }
 0x155   : > { %v1584_v13 = vmul.f32 %v3503_v33, %v1583_v39  ;;  %v1978_v40 = vsub.f32 %v1616_v62, %v1930_v28  ;;  %v2293_v45 = vrot.slane %v1998_v35, 4  ;;  %v2674_v14 = vperm.slane %v1998_v35, 0 }
 0x156   : > { %v1478_v46 = vadd.f32 %v1477_v8, %v1476_v24  ;;  %v2675_v37 = vperm.slane %v1999_v49, 0  ;;  %v2294_v8 = vrot.slane %v2000_v12, 4  ;;  %3263 = vst [vmem:[%s3989_s9 + $0x4e0] sm:$0xff] %v2677_v30  ;;  %v1938_v31 = vrot.slane %v5372_v55, 2 }
 0x157   : > { %v1585_v23 = vadd.f32 %v3503_v33, %v1584_v13  ;;  %v2305_v60 = vsel %vm1722_vm1, %v1997_v53, %v2293_v45  ;;  %v2002_v44 = vand.u32 2147483647, %v1978_v40  ;;  %3260 = vst [vmem:[%s3989_s9 + $0x4c8] sm:$0xff] %v2674_v14  ;;  %v1937_v40 = vrot.slane %v5277_v5, 2  ;;  %v6574_v14 = vld [vmem:[#allocation21_spill] sm:$0xff]  ;;  %v6575_v5 = vld [vmem:[#allocation22_spill] sm:$0xff] }
 0x158   : > { %v1479_v50 = vrot.slane %v1478_v46, 2  ;;  %v2313_v11 = vrot.slane %v2305_v60, 7  ;;  %3261 = vst [vmem:[%s3989_s9 + $0x4d0] sm:$0xff] %v2675_v37  ;;  %v1621_v37 = vmul.f32 %v6575_v5, %v4991_v10  ;;  %v1939_v10 = vrot.slane %v5398_v27, 2 }
 0x159   : > { %v1589_v24 = vsel %vm5445_vm9, %v3503_v33, %v1585_v23  ;;  %v2306_v33 = vsel %vm1722_vm1, %v1999_v49, %v2294_v8  ;;  %v2678_v47 = vperm.slane %v2002_v44, 0  ;;  %v6571_v49 = vrot.slane %v5398_v27, 1 }
 0x15a   : > { %v1480_v39 = vadd.f32 %v1479_v50, %v1478_v46  ;;  %v1594_v28 = vsel %vm5421_vm7, %v1593_v22, %v1589_v24  ;;  %v2295_v46 = vrot.slane %v2002_v44, 4  ;;  %v1935_v22 = vrot.slane %v4999_v34, 2  ;;  %v6572_v50 = vld [vmem:[#allocation23_spill] sm:$0xff] }
 0x15b   : > { %v1595_v26 = vmul.f32 %v5328_v17, %v1594_v28  ;;  %v1617_v42 = vmul.f32 %v5334_v48, %v1594_v28  ;;  %v2319_v57 = vrot.slane %v2306_v33, 7  ;;  %v6570_v17 = vld [vmem:[#allocation20_spill] sm:$0xff]  ;;  %v1936_v48 = vrot.slane %v5146_v18, 2  ;;  %3264 = vst [vmem:[%s3989_s9 + $0x4e8] sm:$0xff] %v2678_v47 }
 0x15c   : > { %v1481_v4 = vrot.slane %v1480_v39, 1  ;;  %v1619_v9 = vmul.f32 %v6570_v17, %v4643_v61  ;;  %v2307_v53 = vsel %vm1722_vm1, %v2001_v63, %v2295_v46  ;;  %v2314_v12 = vsel %vm1385_vm4, %v2313_v11, %v6572_v50  ;;  %v6578_v46 = vld [vmem:[#allocation24_spill] sm:$0xff] }
 0x15d   : > { %v1971_v62 = vsub.f32 %v1595_v26, %v5398_v27  ;;  %v5469_v35 = vsub.f32 %v1617_v42, %v6571_v49  ;;  %v2325_v61 = vrot.slane %v2307_v53, 7  ;;  %v1620_v18 = vmul.f32 %v6574_v14, %v4788_v7  ;;  %v6579_v27 = vld [vmem:[#allocation26_spill] sm:$0xff] }
 0x15e   : > { %v1482_v13 = vadd.f32 %v1481_v4, %v1480_v39  ;;  %v1981_v45 = vsub.f32 %v1619_v9, %v6573_v59  ;;  %v6576_v39 = vld [vmem:[#allocation27_spill] sm:$0xff]  ;;  %v2315_v30 = vsel %vm2037_vm10, %v2313_v11, %v2314_v12  ;;  %v6577_v26 = vrot.slane %v5405_v21, 2 }
 0x15f   : > { %v5473_v34 = vand.u32 2147483647, %v1971_v62  ;;  %v2003_v63 = vand.u32 2147483647, %v5469_v35  ;;  %v2320_v8 = vsel %vm1385_vm4, %v2319_v57, %v6576_v39  ;;  %v2326_v54 = vsel %vm1385_vm4, %v2325_v61, %v5413_v20 }
 0x160   : > { %v5475_v23 = vperm.slane %v1482_v13, 0  ;;  %v2005_v60 = vand.u32 2147483647, %v1981_v45  ;;  %v5500_v44 = vsel %vm2037_vm10, %v2325_v61, %v2326_v54  ;;  %v1982_v55 = vsub.f32 %v1620_v18, %v6577_v26  ;;  %v6580_v13 = vld [vmem:[#allocation29_spill] sm:$0xff] }
 0x161   : > { %v2625_v24 = vperm.slane %v5473_v34, 0  ;;  %v2679_v7 = vperm.slane %v2003_v63, 0  ;;  %v1983_v4 = vsub.f32 %v1621_v37, %v1935_v22  ;;  %v2321_v20 = vsel %vm2037_vm10, %v2319_v57, %v2320_v8  ;;  %v1924_v54 = vld.sshfl [vmem:[#allocation1 + $0x38] sm:$0xff pattern:$0x75316420] }
 0x162   : > { %3504 = vrcp.f32 %v5475_v23  ;;  %v2723_v33 = vperm.slane %v2005_v60, 0  ;;  %v1622_v47 = vmul.f32 %v6578_v46, %v5131_v6  ;;  %v1623_v42 = vmul.f32 %v6579_v27, %v5268_v58 }
 0x163   : > { %3249 = vst [vmem:[%s3989_s9 + $0x4b0] sm:$0xff] %v2625_v24  ;;  %v2006_v11 = vand.u32 2147483647, %v1982_v55  ;;  %v2007_v62 = vand.u32 2147483647, %v1983_v4  ;;  %v1624_v17 = vmul.f32 %v6580_v13, %v5368_v51  ;;  %v1625_v21 = vmul.f32 %v5338_v3, %v1594_v28 }
 0x164   : > { %3265 = vst [vmem:[%s3989_s9 + $0x4f0] sm:$0xff] %v2679_v7  ;;  %vm1601_vm13 = vweird.f32 %v5475_v23  ;;  %v1605_v22 = vand.u32 2147483647, %v5475_v23  ;;  %v1984_v57 = vsub.f32 %v1622_v47, %v1936_v48  ;;  %v1985_v9 = vsub.f32 %v1623_v42, %v1937_v40 }
 0x165   : > { %3275 = vst [vmem:[%s3989_s9 + $0x500] sm:$0xff] %v2723_v33  ;;  %v2297_v6 = vrot.slane %v2006_v11, 4  ;;  %v2724_v49 = vperm.slane %v2006_v11, 0  ;;  %v2725_v58 = vperm.slane %v2007_v62, 0  ;;  %v1986_v50 = vsub.f32 %v1624_v17, %v1938_v31 }
 0x166   : > { %v1607_v51 = vand.u32 2147483648, %v5475_v23  ;;  %v2008_v61 = vand.u32 2147483647, %v1984_v57  ;;  %v2009_v3 = vand.u32 2147483647, %v1985_v9  ;;  %v5520_v45 = vsub.f32 %v1625_v21, %v1939_v10 }
 0x167   : > { %v2309_v28 = vsel %vm1722_vm1, %v2005_v60, %v2297_v6  ;;  %3276 = vst [vmem:[%s3989_s9 + $0x508] sm:$0xff] %v2724_v49  ;;  %v2010_v59 = vand.u32 2147483647, %v1986_v50  ;;  %vm1606_vm3 = vcmp.eq.f32.partialorder %v1605_v22, 8.507059e+37  ;;  %v5546_v47 = vsel %vm2033_vm12, %v5380_v56, %v5383_v16 }
 0x168   : > { %v3505_v53 = vpop.eup %3504  ;;  %v2316_v40 = vrot.slane %v2309_v28, 6  ;;  %3277 = vst [vmem:[%s3989_s9 + $0x510] sm:$0xff] %v2725_v58  ;;  %v2298_v14 = vrot.slane %v2008_v61, 4  ;;  %v2726_v18 = vperm.slane %v2008_v61, 0  ;;  %v2727_v5 = vperm.slane %v2009_v3, 0  ;;  %v6583_v58 = vld [vmem:[#allocation19_spill] sm:$0xff] }
 0x169   : > { %v1597_v12 = vmul.f32 %v3505_v53, %v5475_v23  ;;  %vm1602_vm14 = vweird.f32 %v3505_v53  ;;  %v2299_v37 = vrot.slane %v2010_v59, 4  ;;  %v2728_v24 = vperm.slane %v2010_v59, 0 }
 0x16a   : > { %v2011_v39 = vand.u32 2147483647, %v5520_v45  ;;  %v1608_v31 = vor.u32 1.1754944e-38, %v1607_v51  ;;  %v2317_v7 = vsel %vm1388_vm5, %v2316_v40, %v2315_v30  ;;  %v2310_v60 = vsel %vm1722_vm1, %v2007_v62, %v2298_v14  ;;  %3278 = vst [vmem:[%s3989_s9 + $0x518] sm:$0xff] %v2726_v18  ;;  %vm5530_vm2 = vmor %vm1601_vm13, %vm1602_vm14 }
 0x16b   : > { %v1598_v48 = vsub.f32 1.0, %v1597_v12  ;;  %v2318_v26 = vsel %vm2027_vm11, %v2316_v40, %v2317_v7  ;;  %v2322_v55 = vrot.slane %v2310_v60, 6  ;;  %3279 = vst [vmem:[%s3989_s9 + $0x520] sm:$0xff] %v2727_v5  ;;  %v2311_v4 = vsel %vm1722_vm1, %v2009_v3, %v2299_v37 }
 0x16c   : > { %v2729_v30 = vperm.slane %v2011_v39, 0  ;;  %v5540_v46 = vsub.f32 %v3970_v0, %v2318_v26  ;;  %v2328_v23 = vrot.slane %v2311_v4, 6  ;;  %3280 = vst [vmem:[%s3989_s9 + $0x528] sm:$0xff] %v2728_v24  ;;  %vm2039_vm6 = vcmask 1046528  }
 0x16d   : > { %v1599_v8 = vmul.f32 %v3505_v53, %v1598_v48  ;;  %v1932_v27 = vrot.slane %v1924_v54, 1  ;;  %v2323_v42 = vsel %vm1388_vm5, %v2322_v55, %v2321_v20  ;;  %v1940_v11 = vrot.slane %v1924_v54, 2 }
 0x16e   : > { %3281 = vst [vmem:[%s3989_s9 + $0x530] sm:$0xff] %v2729_v30  ;;  %vm2020_vm7 = vcmask 1040384   ;;  %v2324_v13 = vsel %vm2027_vm11, %v2322_v55, %v2323_v42  ;;  %v2329_v17 = vsel %vm1388_vm5, %v2328_v23, %v5500_v44  ;;  %v2345_v21 = vmul.f32 %v5540_v46, %v5540_v46 }
 0x16f   : > { %v1600_v33 = vadd.f32 %v3505_v53, %v1599_v8  ;;  %v5558_v57 = vsub.f32 %v3972_v1, %v2324_v13  ;;  %v2330_v20 = vsel %vm2027_vm11, %v2328_v23, %v2329_v17  ;;  %v2640_v9 = vperm.slane %v5540_v46, 0 }
 0x170   : > { %vm2035_vm8 = vcmask 1042433   ;;  %v5565_v49 = vsub.f32 %v3974_v2, %v2330_v20  ;;  %2353 = vst [vmem:[#allocation1] ss:$2 sm:$0xff] %v2345_v21  ;;  %vm2048_vm9 = vcmask 1043458   ;;  %v5569_v50 = vrot.slane %v6583_v58, 2 }
 0x171   : > { %v1604_v62 = vsel %vm5530_vm2, %v3505_v53, %v1600_v33  ;;  %vm2041_vm12 = vcmask 1046533   ;;  %vm2052_vm13 = vcmask 1045504   ;;  %v2346_v1 = vmul.f32 %v5558_v57, %v5558_v57 }
 0x172   : > { %v1609_v22 = vsel %vm1606_vm3, %v1608_v31, %v1604_v62  ;;  %v2656_v12 = vperm.slane %v2640_v9, 0  ;;  %v2347_v2 = vmul.f32 %v5565_v49, %v5565_v49  ;;  %v2642_v28 = vperm.slane %v5558_v57, 0 }
 0x173   : > { %v1610_v6 = vmul.f32 %v5388_v52, %v1609_v22  ;;  %v1618_v53 = vmul.f32 %v5400_v19, %v1609_v22  ;;  %v1626_v44 = vmul.f32 %v5409_v32, %v1609_v22  ;;  %v2641_v52 = vperm.slane %v5540_v46, 4  ;;  %2355 = vst [vmem:[#allocation1 + $0x10] ss:$2 sm:$0xff] %v2346_v1 }
 0x174   : > { %v2019_v32 = vrot.slane %v6583_v58, 5  ;;  %v2643_v59 = vperm.slane %v5558_v57, 4  ;;  %v2046_v48 = vsel %vm1388_vm5, %v3970_v0, %v5376_v36  ;;  %v2047_v5 = vsel %vm2025_vm15, %v5380_v56, %v5383_v16  ;;  %2357 = vst [vmem:[#allocation1 + $0x20] ss:$2 sm:$0xff] %v2347_v2 }
 0x175   : > { %v1972_v51 = vsub.f32 %v1610_v6, %v1924_v54  ;;  %v1980_v19 = vsub.f32 %v1618_v53, %v1932_v27  ;;  %v1988_v61 = vsub.f32 %v1626_v44, %v1940_v11  ;;  %v2657_v3 = vperm.slane %v2641_v52, 0  ;;  %3251 = vst [vmem:[%s3989_s9 + $0xa00] sm:$0xff] %v2656_v12 }
 0x176   : > { %v2038_v37 = vsel %vm2037_vm10, %v5386_v25, %v5396_v41  ;;  %v2644_v24 = vperm.slane %v5565_v49, 0  ;;  %v2645_v8 = vperm.slane %v5565_v49, 4  ;;  %v2658_v55 = vperm.slane %v2642_v28, 0 }
 0x177   : > { %v1996_v40 = vand.u32 2147483647, %v1972_v51  ;;  %v2004_v14 = vand.u32 2147483647, %v1980_v19  ;;  %v2012_v18 = vand.u32 2147483647, %v1988_v61  ;;  %v2050_v30 = vsel %vm2027_vm11, %v5386_v25, %v5396_v41 }
 0x178   : > { %3252 = vst [vmem:[%s3989_s9 + $0xa08] sm:$0xff] %v2657_v3  ;;  %v2690_v4 = vperm.slane %v5540_v46, 1  ;;  %v2040_v33 = vsel %vm2039_vm6, %v2019_v32, %v5569_v50  ;;  %v2659_v27 = vperm.slane %v2643_v59, 0  ;;  %v2051_v42 = vsel %vm2020_vm7, %v5569_v50, %v2019_v32  ;;  %v2361_v12 = vld.sshfl [vmem:[#allocation1 + $0x8] sm:$0xff pattern:$0x75316420] }
 0x179   : > { %v2292_v31 = vrot.slane %v1996_v40, 4  ;;  %v2626_v54 = vperm.slane %v1996_v40, 0  ;;  %v2296_v7 = vrot.slane %v2004_v14, 4  ;;  %v2680_v60 = vperm.slane %v2004_v14, 0  ;;  %3253 = vst [vmem:[%s3989_s9 + $0xa10] sm:$0xff] %v2658_v55 }
 0x17a   : > { %v2300_v10 = vrot.slane %v2012_v18, 4  ;;  %v2730_v26 = vperm.slane %v2012_v18, 0  ;;  %v2660_v13 = vperm.slane %v2644_v24, 0  ;;  %vm2043_vm14 = vcmask 1044481   ;;  %3254 = vst [vmem:[%s3989_s9 + $0xa18] sm:$0xff] %v2659_v27 }
 0x17b   : > { %3250 = vst [vmem:[%s3989_s9 + $0x4b8] sm:$0xff] %v2626_v54  ;;  %v2308_v23 = vsel %vm1722_vm1, %v2003_v63, %v2296_v7  ;;  %vm2054_vm2 = vcmask 1045506   ;;  %v2304_v35 = vsel %vm1722_vm1, %v5473_v34, %v2292_v31  ;;  %v2661_v63 = vperm.slane %v2645_v8, 0  ;;  %v2363_v19 = vld.sshfl [vmem:[#allocation1 + $0x18] sm:$0xff pattern:$0x75316420] }
 0x17c   : > { %v2331_v11 = vrot.slane %v2308_v23, 7  ;;  %3266 = vst [vmem:[%s3989_s9 + $0x4f8] sm:$0xff] %v2680_v60  ;;  %v2312_v62 = vsel %vm1722_vm1, %v2011_v39, %v2300_v10  ;;  %v2036_v17 = vsel %vm2035_vm8, %v5393_v29, %v5546_v47  ;;  %v2706_v45 = vperm.slane %v2690_v4, 1  ;;  %v2365_v55 = vld.sshfl [vmem:[#allocation1 + $0x28] sm:$0xff pattern:$0x75316420] }
 0x17d   : > { %3282 = vst [vmem:[%s3989_s9 + $0x538] sm:$0xff] %v2730_v26  ;;  %v2334_v22 = vrot.slane %v2312_v62, 6  ;;  %v2049_v39 = vsel %vm2048_vm9, %v2046_v48, %v2047_v5  ;;  %v2042_v20 = vsel %vm2041_vm12, %v2038_v37, %v2040_v33  ;;  %v2053_v9 = vsel %vm2052_vm13, %v2051_v42, %v2050_v30  ;;  %v2364_v48 = vld.sshfl [vmem:[#allocation1 + $0x20] sm:$0xff pattern:$0x75316420] }
 0x17e   : > { %v2332_v21 = vsel %vm1385_vm4, %v2331_v11, %v2304_v35  ;;  %v2021_v29 = vsel %vm2020_vm7, %v3970_v0, %v5376_v36  ;;  %v2022_v47 = vsel %vm1388_vm5, %v5380_v56, %v5383_v16  ;;  %vm2023_vm4 = vcmask 1041408   ;;  %3255 = vst [vmem:[%s3989_s9 + $0xa20] sm:$0xff] %v2660_v13  ;;  %v2360_v16 = vld.sshfl [vmem:[#allocation1] sm:$0xff pattern:$0x75316420] }
 0x17f   : > { %v2333_v34 = vsel %vm2037_vm10, %v2331_v11, %v2332_v21  ;;  %v2026_v53 = vsel %vm2025_vm15, %v5386_v25, %v5396_v41  ;;  %v2028_v44 = vsel %vm2027_vm11, %v5569_v50, %v2019_v32  ;;  %vm2029_vm10 = vcmask 1045508   ;;  %3256 = vst [vmem:[%s3989_s9 + $0xa28] sm:$0xff] %v2661_v63  ;;  %v2362_v41 = vld.sshfl [vmem:[#allocation1 + $0x10] sm:$0xff pattern:$0x75316420] }
 0x180   : > { %v2335_v6 = vsel %vm1388_vm5, %v2334_v22, %v2333_v34  ;;  %v2044_v0 = vsel %vm2043_vm14, %v2036_v17, %v2042_v20  ;;  %v2055_v36 = vsel %vm2054_vm2, %v2049_v39, %v2053_v9  ;;  %3267 = vst [vmem:[%s3989_s9 + $0xa40] sm:$0xff] %v2706_v45  ;;  %v2691_v52 = vperm.slane %v5540_v46, 5 }
 0x181   : > { %v2336_v1 = vsel %vm2027_vm11, %v2334_v22, %v2335_v6  ;;  %v2024_v25 = vsel %vm2023_vm4, %v2021_v29, %v2022_v47  ;;  %v2692_v50 = vperm.slane %v5558_v57, 1  ;;  %v2693_v51 = vperm.slane %v5558_v57, 5 }
 0x182   : > { %v5639_v56 = vsub.f32 %v6583_v58, %v2336_v1  ;;  %v2694_v32 = vperm.slane %v5565_v49, 1  ;;  %v2030_v3 = vsel %vm2029_vm10, %v2026_v53, %v2028_v44  ;;  %v5651_v28 = vrot.slane %v2044_v0, 1 }
 0x183   : > { %v5653_v59 = vrot.slane %v2055_v36, 2  ;;  %v2707_v40 = vperm.slane %v2691_v52, 1  ;;  %v2708_v5 = vperm.slane %v2692_v50, 1  ;;  %v2695_v37 = vperm.slane %v5565_v49, 5 }
 0x184   : > { %v2348_v61 = vmul.f32 %v5639_v56, %v5639_v56  ;;  %v2646_v2 = vperm.slane %v5639_v56, 0  ;;  %v2647_v58 = vperm.slane %v5639_v56, 4  ;;  %v2376_v24 = vsel %vm1426_vm0, %v2360_v16, 0.0 }
 0x185   : > { %v2383_v8 = vsel %vm1426_vm0, %v2361_v12, 0.0  ;;  %3268 = vst [vmem:[%s3989_s9 + $0xa48] sm:$0xff] %v2707_v40  ;;  %v2709_v31 = vperm.slane %v2693_v51, 1  ;;  %v2696_v54 = vperm.slane %v5639_v56, 1  ;;  %v2390_v7 = vsel %vm1426_vm0, %v2362_v41, 0.0  ;;  %v3542_v40 = vld [vmem:[%s3989_s9 + $0x10] sm:$0xff] }
 0x186   : > { %2359 = vst [vmem:[#allocation1 + $0x30] ss:$2 sm:$0xff] %v2348_v61  ;;  %v2662_v14 = vperm.slane %v2646_v2, 0  ;;  %v2663_v18 = vperm.slane %v2647_v58, 0  ;;  %v2397_v60 = vsel %vm1426_vm0, %v2363_v19, 0.0  ;;  %v2710_v10 = vperm.slane %v2694_v32, 1 }
 0x187   : > { %v2697_v26 = vperm.slane %v5639_v56, 5  ;;  %v2404_v4 = vsel %vm1426_vm0, %v2364_v48, 0.0  ;;  %v2740_v30 = vperm.slane %v5540_v46, 2  ;;  %3269 = vst [vmem:[%s3989_s9 + $0xa50] sm:$0xff] %v2708_v5  ;;  %v2711_v33 = vperm.slane %v2695_v37, 1  ;;  %v3540_v2 = vld [vmem:[%s3989_s9] sm:$0xff] }
 0x188   : > { %3257 = vst [vmem:[%s3989_s9 + $0xa30] sm:$0xff] %v2662_v14  ;;  %v2741_v23 = vperm.slane %v5540_v46, 6  ;;  %v2742_v27 = vperm.slane %v5558_v57, 2  ;;  %v2031_v42 = vsel %vm1722_vm1, %v2024_v25, %v2030_v3  ;;  %v2377_v11 = vrot.slane %v2376_v24, 4  ;;  %v3541_v3 = vld [vmem:[%s3989_s9 + $0x8] sm:$0xff] }
 0x189   : > { %3258 = vst [vmem:[%s3989_s9 + $0xa38] sm:$0xff] %v2663_v18  ;;  %v2384_v62 = vrot.slane %v2383_v8, 4  ;;  %v2391_v13 = vrot.slane %v2390_v7, 4  ;;  %v2712_v35 = vperm.slane %v2696_v54, 1  ;;  %v2398_v63 = vrot.slane %v2397_v60, 4 }
 0x18a   : > { %3270 = vst [vmem:[%s3989_s9 + $0xa58] sm:$0xff] %v2709_v31  ;;  %v2405_v17 = vrot.slane %v2404_v4, 4  ;;  %v2713_v21 = vperm.slane %v2697_v26, 1  ;;  %v2743_v22 = vperm.slane %v5558_v57, 6  ;;  %v5675_v45 = vsel %vm1426_vm0, %v2365_v55, 0.0 }
 0x18b   : > { %3271 = vst [vmem:[%s3989_s9 + $0xa60] sm:$0xff] %v2710_v10  ;;  %v2756_v46 = vperm.slane %v2740_v30, 2  ;;  %v2744_v39 = vperm.slane %v5565_v49, 2  ;;  %v2745_v20 = vperm.slane %v5565_v49, 6  ;;  %v2757_v9 = vperm.slane %v2741_v23, 2 }
 0x18c   : > { %3272 = vst [vmem:[%s3989_s9 + $0xa68] sm:$0xff] %v2711_v33  ;;  %v2758_v34 = vperm.slane %v2742_v27, 2  ;;  %v2746_v29 = vperm.slane %v5639_v56, 2  ;;  %v5681_v47 = vperm.slane %v2031_v42, 0  ;;  %v5683_v6 = vadd.f32 %v2377_v11, %v2376_v24 }
 0x18d   : > { %v5685_v57 = vadd.f32 %v2384_v62, %v2383_v8  ;;  %v2366_v53 = vld.sshfl [vmem:[#allocation1 + $0x30] sm:$0xff pattern:$0x75316420]  ;;  %3273 = vst [vmem:[%s3989_s9 + $0xa70] sm:$0xff] %v2712_v35  ;;  %v5688_v44 = vperm.slane %v2031_v42, 1  ;;  %v5690_v1 = vperm.slane %v2031_v42, 2  ;;  %v5692_v49 = vadd.f32 %v2391_v13, %v2390_v7 }
 0x18e   : > { %v5694_v0 = vadd.f32 %v2398_v63, %v2397_v60  ;;  %v2367_v36 = vld.sshfl [vmem:[#allocation1 + $0x38] sm:$0xff pattern:$0x75316420]  ;;  %3274 = vst [vmem:[%s3989_s9 + $0xa78] sm:$0xff] %v2713_v21  ;;  %v2759_v16 = vperm.slane %v2743_v22, 2  ;;  %v2747_v12 = vperm.slane %v5639_v56, 6  ;;  %v5698_v52 = vadd.f32 %v2405_v17, %v2404_v4 }
 0x18f   : > { %3283 = vst [vmem:[%s3989_s9 + $0xa80] sm:$0xff] %v2756_v46  ;;  %v2760_v41 = vperm.slane %v2744_v39, 2  ;;  %v2761_v50 = vperm.slane %v2745_v20, 2  ;;  %v2762_v51 = vperm.slane %v2746_v29, 2  ;;  %v5703_v19 = vperm.slane %v2031_v42, 3  ;;  %v3544_v62 = vld [vmem:[%s3989_s9 + $0x48] sm:$0xff] }
 0x190   : > { %6584 = vst [vmem:[#allocation25_spill] sm:$0xff] %v5698_v52  ;;  %v5705_v61 = vperm.slane %v2031_v42, 4  ;;  %v5709_v58 = vsub.f32 %v5681_v47, %v3540_v2  ;;  %v5712_v56 = vsel %vm1426_vm0, %v2366_v53, 0.0  ;;  %v5715_v32 = vsel %vm1426_vm0, %v2367_v36, 0.0  ;;  %v3545_v17 = vld [vmem:[%s3989_s9 + $0x18] sm:$0xff]  ;;  %v3546_v22 = vld [vmem:[%s3989_s9 + $0x50] sm:$0xff] }
 0x191   : > { %3284 = vst [vmem:[%s3989_s9 + $0xa88] sm:$0xff] %v2757_v9  ;;  %v5720_v48 = vsub.f32 %v5688_v44, %v3541_v3  ;;  %v5724_v14 = vsub.f32 %v5690_v1, %v3542_v40  ;;  %v2763_v18 = vperm.slane %v2747_v12, 2  ;;  %v5727_v5 = vperm.slane %v2031_v42, 5  ;;  %v3547_v39 = vld [vmem:[%s3989_s9 + $0x20] sm:$0xff]  ;;  %v3548_v9 = vld [vmem:[%s3989_s9 + $0x28] sm:$0xff]  ;;  %v3550_v53 = vld [vmem:[%s3989_s9 + $0x58] sm:$0xff] }
 0x192   : > { %6585 = vst [vmem:[#allocation28_spill] sm:$0xff] %v5715_v32  ;;  %v5730_v37 = vperm.slane %v5651_v28, 0  ;;  %v5733_v24 = vperm.slane %v5651_v28, 1  ;;  %v5736_v8 = vperm.slane %v2031_v42, 6  ;;  %v5738_v31 = vperm.slane %v2031_v42, 7  ;;  %v3543_v42 = vld [vmem:[%s3989_s9 + $0x40] sm:$0xff] }
 0x193   : > { %3285 = vst [vmem:[%s3989_s9 + $0xa90] sm:$0xff] %v2758_v34  ;;  %v5741_v54 = vperm.slane %v5651_v28, 2  ;;  %v5744_v7 = vperm.slane %v5651_v28, 3  ;;  %v5748_v60 = vperm.slane %v5651_v28, 4  ;;  %v5751_v10 = vperm.slane %v5651_v28, 5  ;;  %v3549_v34 = vld [vmem:[%s3989_s9 + $0x30] sm:$0xff] }
 0x194   : > { %3286 = vst [vmem:[%s3989_s9 + $0xa98] sm:$0xff] %v2759_v16  ;;  %v5754_v26 = vperm.slane %v5651_v28, 6  ;;  %v5757_v55 = vperm.slane %v5651_v28, 7  ;;  %v5761_v4 = vperm.slane %v5653_v59, 0  ;;  %v5764_v30 = vperm.slane %v5653_v59, 1  ;;  %v3551_v12 = vld [vmem:[%s3989_s9 + $0x60] sm:$0xff] }
 0x195   : > { %3287 = vst [vmem:[%s3989_s9 + $0xaa0] sm:$0xff] %v2760_v41  ;;  %v5767_v33 = vperm.slane %v5653_v59, 2  ;;  %v5770_v23 = vperm.slane %v5653_v59, 3  ;;  %v5774_v28 = vperm.slane %v5653_v59, 4  ;;  %v5777_v27 = vperm.slane %v5653_v59, 5  ;;  %v3553_v40 = vld [vmem:[%s3989_s9 + $0x70] sm:$0xff] }
 0x196   : > { %3288 = vst [vmem:[%s3989_s9 + $0xaa8] sm:$0xff] %v2761_v50  ;;  %v5781_v11 = vsub.f32 %v5730_v37, %v3543_v42  ;;  %v5785_v13 = vsub.f32 %v5733_v24, %v3544_v62  ;;  %v5790_v35 = vperm.slane %v5653_v59, 6  ;;  %v5793_v63 = vperm.slane %v5653_v59, 7  ;;  %v3552_v50 = vld [vmem:[%s3989_s9 + $0x68] sm:$0xff] }
 0x197   : > { %3289 = vst [vmem:[%s3989_s9 + $0xab0] sm:$0xff] %v2762_v51  ;;  %v5797_v21 = vsub.f32 %v5703_v19, %v3545_v17  ;;  %v5801_v46 = vsub.f32 %v5741_v54, %v3546_v22  ;;  %v5807_v20 = vsub.f32 %v5705_v61, %v3547_v39  ;;  %v5811_v59 = vsub.f32 %v5727_v5, %v3548_v9 }
 0x198   : > { %3290 = vst [vmem:[%s3989_s9 + $0xab8] sm:$0xff] %v2763_v18  ;;  %v5815_v29 = vsub.f32 %v5736_v8, %v3549_v34  ;;  %v5819_v36 = vsub.f32 %v5744_v7, %v3550_v53  ;;  %v5827_v16 = vsub.f32 %v5738_v31, %v5304_v15  ;;  %v5831_v41 = vsub.f32 %v5748_v60, %v3551_v12  ;;  %v3554_v12 = vld [vmem:[%s3989_s9 + $0x80] sm:$0xff] }
 0x199   : > { %6586 = vst [vmem:[#allocation20_spill] sm:$0xff] %v5785_v13  ;;  %v5835_v51 = vsub.f32 %v5751_v10, %v3552_v50  ;;  %v2130_v2 = vmul.f32 %v5720_v48, %v5720_v48  ;;  %v2137_v3 = vmul.f32 %v5781_v11, %v5781_v11  ;;  %v2138_v15 = vmul.f32 %v5785_v13, %v5785_v13 }
 0x19a   : > { %3187 = vst [vmem:[%s3989_s9 + $0xc0] sm:$0xff] %v5681_v47  ;;  %v5847_v18 = vsub.f32 %v5754_v26, %v3553_v40  ;;  %v2132_v42 = vmul.f32 %v5797_v21, %v5797_v21  ;;  %v2139_v62 = vmul.f32 %v5801_v46, %v5801_v46  ;;  %v5859_v17 = vsub.f32 %v5757_v55, %v5306_v38 }
 0x19b   : > { %6587 = vst [vmem:[#allocation23_spill] sm:$0xff] %v5801_v46  ;;  %v2133_v22 = vmul.f32 %v5807_v20, %v5807_v20  ;;  %v2134_v39 = vmul.f32 %v5811_v59, %v5811_v59  ;;  %v2135_v9 = vmul.f32 %v5815_v29, %v5815_v29  ;;  %v2140_v34 = vmul.f32 %v5819_v36, %v5819_v36  ;;  %v3556_v46 = vld [vmem:[%s3989_s9 + $0x90] sm:$0xff] }
 0x19c   : > { %3291 = vst [vmem:[%s3989_s9 + $0x740] sm:$0xff] %v5681_v47  ;;  %v2129_v47 = vmul.f32 %v5709_v58, %v5709_v58  ;;  %v5875_v38 = vmul.f32 %v5827_v16, %v5827_v16  ;;  %v2142_v53 = vmul.f32 %v5835_v51, %v5835_v51  ;;  %v5883_v50 = vsub.f32 %v5761_v4, %v3554_v12 }
 0x19d   : > { %6588 = vst [vmem:[#allocation21_spill] sm:$0xff] %v5819_v36  ;;  %v2155_v25 = vadd.f32 %v2138_v15, %v2130_v2  ;;  %v2143_v52 = vmul.f32 %v5847_v18, %v5847_v18  ;;  %v3555_v36 = vld [vmem:[%s3989_s9 + $0x88] sm:$0xff]  ;;  %v2144_v12 = vmul.f32 %v5859_v17, %v5859_v17 }
 0x19e   : > { %3188 = vst [vmem:[%s3989_s9 + $0xc8] sm:$0xff] %v5688_v44  ;;  %v2153_v40 = vadd.f32 %v2137_v3, %v2129_v47  ;;  %v3557_v47 = vld [vmem:[%s3989_s9 + $0x800] sm:$0xff]  ;;  %v2159_v3 = vadd.f32 %v2140_v34, %v2132_v42 }
 0x19f   : > { %6589 = vst [vmem:[#allocation22_spill] sm:$0xff] %v5831_v41  ;;  %v495_v2 = vmul.f32 %v3557_v47, %v3557_v47  ;;  %v3561_v42 = vld [vmem:[%s3989_s9 + $0x880] sm:$0xff] }
 0x1a0   : > { %6590 = vst [vmem:[#allocation27_spill] sm:$0xff] %v5835_v51  ;;  %v627_v34 = vmul.f32 %v3561_v42, %v3561_v42 }
 0x1a1   : > { %3292 = vst [vmem:[%s3989_s9 + $0x748] sm:$0xff] %v5688_v44  ;;  %v2131_v44 = vmul.f32 %v5724_v14, %v5724_v14 }
 0x1a2   : > { %6591 = vst [vmem:[#allocation24_spill] sm:$0xff] %v5847_v18  ;;  %v2163_v18 = vadd.f32 %v2142_v53, %v2134_v39  ;;  %v3565_v53 = vld [vmem:[%s3989_s9 + $0x808] sm:$0xff] }
 0x1a3   : > { %3189 = vst [vmem:[%s3989_s9 + $0xd0] sm:$0xff] %v5690_v1  ;;  %v2157_v51 = vadd.f32 %v2139_v62, %v2131_v44  ;;  %v3559_v44 = vld [vmem:[%s3989_s9 + $0xa0] sm:$0xff]  ;;  %v496_v42 = vmul.f32 %v3565_v53, %v3565_v53 }
 0x1a4   : > { %6592 = vst [vmem:[#allocation26_spill] sm:$0xff] %v5859_v17  ;;  %v5910_v62 = vsub.f32 %v5774_v28, %v3559_v44  ;;  %v3560_v17 = vld [vmem:[%s3989_s9 + $0x840] sm:$0xff] }
 0x1a5   : > { %3293 = vst [vmem:[%s3989_s9 + $0x750] sm:$0xff] %v5690_v1  ;;  %v2141_v1 = vmul.f32 %v5831_v41, %v5831_v41  ;;  %v5891_v41 = vsub.f32 %v5764_v30, %v3555_v36  ;;  %v3558_v36 = vld [vmem:[%s3989_s9 + $0x98] sm:$0xff] }
 0x1a6   : > { %3190 = vst [vmem:[%s3989_s9 + $0xd8] sm:$0xff] %v5703_v19  ;;  %v5906_v15 = vsub.f32 %v5770_v23, %v3558_v36  ;;  %v2165_v36 = vadd.f32 %v2143_v52, %v2135_v9  ;;  %v3564_v52 = vld [vmem:[%s3989_s9 + $0x8c0] sm:$0xff] }
 0x1a7   : > { %6593 = vst [vmem:[#allocation29_spill] sm:$0xff] %v5883_v50  ;;  %v2161_v47 = vadd.f32 %v2141_v1, %v2133_v22  ;;  %v2146_v44 = vmul.f32 %v5891_v41, %v5891_v41  ;;  %v3563_v1 = vld [vmem:[%s3989_s9 + $0xb0] sm:$0xff]  ;;  %v693_v9 = vmul.f32 %v3564_v52, %v3564_v52  ;;  %v5949_v52 = vsub.f32 %v5793_v63, %v5308_v43 }
 0x1a8   : > { %3294 = vst [vmem:[%s3989_s9 + $0x758] sm:$0xff] %v5703_v19  ;;  %v5899_v19 = vsub.f32 %v5767_v33, %v3556_v46  ;;  %v561_v46 = vmul.f32 %v3560_v17, %v3560_v17  ;;  %v3562_v17 = vld [vmem:[%s3989_s9 + $0xa8] sm:$0xff]  ;;  %v2167_v43 = vadd.f32 %v2144_v12, %v5875_v38 }
 0x1a9   : > { %6594 = vst [vmem:[#allocation19_spill] sm:$0xff] %v5891_v41  ;;  %v5924_v13 = vsub.f32 %v5777_v27, %v3562_v17  ;;  %v3570_v12 = vld [vmem:[%s3989_s9 + $0x8c8] sm:$0xff] }
 0x1aa   : > { %3191 = vst [vmem:[%s3989_s9 + $0xe0] sm:$0xff] %v5705_v61  ;;  %v569_v22 = vadd.f32 %v561_v46, %v495_v2  ;;  %v2147_v39 = vmul.f32 %v5899_v19, %v5899_v19  ;;  %v2148_v2 = vmul.f32 %v5906_v15, %v5906_v15  ;;  %v2149_v46 = vmul.f32 %v5910_v62, %v5910_v62 }
 0x1ab   : > { %6595 = vst [vmem:[#allocation30_spill] sm:$0xff] %v5899_v19  ;;  %v3566_v19 = vld [vmem:[%s3989_s9 + $0x848] sm:$0xff] }
 0x1ac   : > { %3295 = vst [vmem:[%s3989_s9 + $0x760] sm:$0xff] %v5705_v61  ;;  %v2145_v61 = vmul.f32 %v5883_v50, %v5883_v50  ;;  %v635_v17 = vadd.f32 %v627_v34, %v569_v22  ;;  %v562_v41 = vmul.f32 %v3566_v19, %v3566_v19  ;;  %v3568_v50 = vld [vmem:[%s3989_s9 + $0x888] sm:$0xff]  ;;  %v5955_v34 = vadd.f32 %v2155_v25, %v2146_v44 }
 0x1ad   : > { %6596 = vst [vmem:[#allocation31_spill] sm:$0xff] %v5906_v15  ;;  %v628_v15 = vmul.f32 %v3568_v50, %v3568_v50  ;;  %v2150_v19 = vmul.f32 %v5924_v13, %v5924_v13  ;;  %v5962_v22 = vadd.f32 %v2157_v51, %v2147_v39  ;;  %v5969_v25 = vadd.f32 %v2159_v3, %v2148_v2 }
 0x1ae   : > { %3192 = vst [vmem:[%s3989_s9 + $0xe8] sm:$0xff] %v5727_v5  ;;  %v5971_v44 = vadd.f32 %v2161_v47, %v2149_v46  ;;  %v2152_v51 = vmul.f32 %v5949_v52, %v5949_v52  ;;  %v2419_v3 = vrot.slane %v5712_v56, 4  ;;  %v3571_v46 = vld [vmem:[%s3989_s9 + $0x810] sm:$0xff]  ;;  %vm2188_vm1 = vcmp.eq.f32.partialorder %v5955_v34, inf }
 0x1af   : > { %3296 = vst [vmem:[%s3989_s9 + $0x768] sm:$0xff] %v5727_v5  ;;  %v5932_v5 = vsub.f32 %v5790_v35, %v3563_v1  ;;  %v5945_v1 = vadd.f32 %v2153_v40, %v2145_v61  ;;  %v701_v40 = vadd.f32 %v693_v9, %v635_v17  ;;  %v570_v61 = vadd.f32 %v562_v41, %v496_v42  ;;  %v3569_v9 = vld [vmem:[%s3989_s9 + $0x940] sm:$0xff] }
 0x1b0   : > { %3193 = vst [vmem:[%s3989_s9 + $0xf0] sm:$0xff] %v5736_v8  ;;  %v825_v42 = vmul.f32 %v3569_v9, %v3569_v9  ;;  %v5983_v47 = vadd.f32 %v2163_v18, %v2150_v19  ;;  %v497_v17 = vmul.f32 %v3571_v46, %v3571_v46  ;;  %v3572_v18 = vld [vmem:[%s3989_s9 + $0x980] sm:$0xff]  ;;  %v6015_v9 = vadd.f32 %v2419_v3, %v5712_v56 }
 0x1b1   : > { %6597 = vst [vmem:[#allocation32_spill] sm:$0xff] %v5932_v5  ;;  %v2151_v50 = vmul.f32 %v5932_v5, %v5932_v5  ;;  %3506 = vrsqrt.f32 %v5945_v1  ;;  %v636_v38 = vadd.f32 %v628_v15, %v570_v61  ;;  %v2386_v15 = vrot.slane %v5685_v57, 2 }
 0x1b2   : > { %3297 = vst [vmem:[%s3989_s9 + $0x770] sm:$0xff] %v5736_v8  ;;  %v3567_v8 = vld [vmem:[%s3989_s9 + $0x900] sm:$0xff]  ;;  %3508 = vrsqrt.f32 %v5955_v34  ;;  %vm2176_vm0 = vcmp.eq.f32.partialorder %v5945_v1, inf  ;;  %vm2200_vm5 = vcmp.eq.f32.partialorder %v5962_v22, inf  ;;  %vm2178_vm11 = vcmp.eq.f32.partialorder %v5945_v1, 0.0 }
 0x1b3   : > { %3194 = vst [vmem:[%s3989_s9 + $0xf8] sm:$0xff] %v5738_v31  ;;  %v759_v53 = vmul.f32 %v3567_v8, %v3567_v8  ;;  %v5989_v2 = vadd.f32 %v2165_v36, %v2151_v50  ;;  %3510 = vrsqrt.f32 %v5962_v22  ;;  %v891_v8 = vmul.f32 %v3572_v18, %v3572_v18 }
 0x1b4   : > { %6598 = vst [vmem:[#allocation33_spill] sm:$0xff] %v5949_v52  ;;  %3512 = vrsqrt.f32 %v5969_v25  ;;  %v6001_v36 = vadd.f32 %v2167_v43, %v2152_v51  ;;  %v2387_v51 = vadd.f32 %v2386_v15, %v5685_v57  ;;  %v3577_v15 = vld [vmem:[%s3989_s9 + $0x988] sm:$0xff]  ;;  %vm2190_vm15 = vcmp.eq.f32.partialorder %v5955_v34, 0.0 }
 0x1b5   : > { %3298 = vst [vmem:[%s3989_s9 + $0x778] sm:$0xff] %v5738_v31  ;;  %v2379_v31 = vrot.slane %v5683_v6, 2  ;;  %v767_v41 = vadd.f32 %v759_v53, %v701_v40  ;;  %3514 = vrsqrt.f32 %v5971_v44  ;;  %v3574_v40 = vld [vmem:[%s3989_s9 + $0x908] sm:$0xff]  ;;  %vm2202_vm3 = vcmp.eq.f32.partialorder %v5962_v22, 0.0 }
 0x1b6   : > { %3195 = vst [vmem:[%s3989_s9 + $0x100] sm:$0xff] %v5730_v37  ;;  %v760_v61 = vmul.f32 %v3574_v40, %v3574_v40  ;;  %3516 = vrsqrt.f32 %v5983_v47  ;;  %vm2212_vm6 = vcmp.eq.f32.partialorder %v5969_v25, inf  ;;  %vm2214_vm7 = vcmp.eq.f32.partialorder %v5969_v25, 0.0 }
 0x1b7   : > { %3299 = vst [vmem:[%s3989_s9 + $0x780] sm:$0xff] %v5730_v37  ;;  %v694_v37 = vmul.f32 %v3570_v12, %v3570_v12  ;;  %v2380_v39 = vadd.f32 %v2379_v31, %v5683_v6  ;;  %v3573_v6 = vld [vmem:[%s3989_s9 + $0x850] sm:$0xff]  ;;  %3518 = vrsqrt.f32 %v5989_v2  ;;  %vm2224_vm8 = vcmp.eq.f32.partialorder %v5971_v44, inf }
 0x1b8   : > { %3196 = vst [vmem:[%s3989_s9 + $0x108] sm:$0xff] %v5733_v24  ;;  %v563_v53 = vmul.f32 %v3573_v6, %v3573_v6  ;;  %3520 = vrsqrt.f32 %v6001_v36  ;;  %v892_v6 = vmul.f32 %v3577_v15, %v3577_v15  ;;  %vm2226_vm9 = vcmp.eq.f32.partialorder %v5971_v44, 0.0 }
 0x1b9   : > { %3300 = vst [vmem:[%s3989_s9 + $0x788] sm:$0xff] %v5733_v24  ;;  %v833_v24 = vadd.f32 %v825_v42, %v767_v41  ;;  %v702_v19 = vadd.f32 %v694_v37, %v636_v38  ;;  %v2381_v43 = vrot.slane %v2380_v39, 1  ;;  %v3507_v41 = vpop.eup %3506  ;;  %v3576_v37 = vld [vmem:[%s3989_s9 + $0x9c0] sm:$0xff]  ;;  %vm2236_vm12 = vcmp.eq.f32.partialorder %v5983_v47, inf }
 0x1ba   : > { %3197 = vst [vmem:[%s3989_s9 + $0x110] sm:$0xff] %v5741_v54  ;;  %v3509_v38 = vpop.eup %3508  ;;  %v957_v56 = vmul.f32 %v3576_v37, %v3576_v37  ;;  %v571_v3 = vadd.f32 %v563_v53, %v497_v17  ;;  %v3578_v53 = vld [vmem:[%s3989_s9 + $0x9c8] sm:$0xff]  ;;  %v3579_v37 = vld [vmem:[%s3989_s9 + $0x890] sm:$0xff]  ;;  %vm2238_vm13 = vcmp.eq.f32.partialorder %v5983_v47, 0.0  ;;  %vm2248_vm14 = vcmp.eq.f32.partialorder %v5989_v2, inf }
 0x1bb   : > { %3301 = vst [vmem:[%s3989_s9 + $0x790] sm:$0xff] %v5741_v54  ;;  %v6599_v54 = vrot.slane %v5675_v45, 4  ;;  %v899_v12 = vadd.f32 %v891_v8, %v833_v24  ;;  %v3511_v46 = vpop.eup %3510  ;;  %v2182_v18 = vmul.f32 %v3509_v38, %v5955_v34  ;;  %v768_v57 = vadd.f32 %v760_v61, %v702_v19 }
 0x1bc   : > { %3198 = vst [vmem:[%s3989_s9 + $0x118] sm:$0xff] %v5744_v7  ;;  %v2194_v8 = vmul.f32 %v3511_v46, %v5962_v22  ;;  %v2382_v17 = vadd.f32 %v2381_v43, %v2380_v39  ;;  %v6035_v40 = vmul.f32 %v3578_v53, %v3578_v53  ;;  %v2388_v61 = vrot.slane %v2387_v51, 1 }
 0x1bd   : > { %v6008_v50 = vadd.f32 %v6599_v54, %v5675_v45  ;;  %3302 = vst [vmem:[%s3989_s9 + $0x798] sm:$0xff] %v5744_v7  ;;  %v3575_v45 = vld [vmem:[%s3989_s9 + $0x948] sm:$0xff]  ;;  %v2170_v7 = vmul.f32 %v3507_v41, %v5945_v1  ;;  %v629_v15 = vmul.f32 %v3579_v37, %v3579_v37  ;;  %v965_v53 = vadd.f32 %v957_v56, %v899_v12 }
 0x1be   : > { %6601 = vst [vmem:[#allocation35_spill] sm:$0xff] %v6015_v9  ;;  %v826_v42 = vmul.f32 %v3575_v45, %v3575_v45  ;;  %v2183_v45 = vmul.f32 %v3509_v38, %v2182_v18  ;;  %v2195_v43 = vmul.f32 %v3511_v46, %v2194_v8  ;;  %vm2250_vm2 = vcmp.eq.f32.partialorder %v5989_v2, 0.0 }
 0x1bf   : > { %6600 = vst [vmem:[#allocation34_spill] sm:$0xff] %v6008_v50  ;;  %v2171_v24 = vmul.f32 %v3507_v41, %v2170_v7  ;;  %v637_v52 = vadd.f32 %v629_v15, %v571_v3  ;;  %v3580_v50 = vld [vmem:[%s3989_s9 + $0x8d0] sm:$0xff]  ;;  %vm2260_vm4 = vcmp.eq.f32.partialorder %v6001_v36, inf  ;;  %vm2262_vm10 = vcmp.eq.f32.partialorder %v6001_v36, 0.0 }
 0x1c0   : > { %3199 = vst [vmem:[%s3989_s9 + $0x120] sm:$0xff] %v5748_v60  ;;  %v2184_v18 = vmul.f32 0.5, %v2183_v45  ;;  %v834_v9 = vadd.f32 %v826_v42, %v768_v57  ;;  %v695_v42 = vmul.f32 %v3580_v50, %v3580_v50 }
 0x1c1   : > { %3303 = vst [vmem:[%s3989_s9 + $0x7a0] sm:$0xff] %v5748_v60  ;;  %v3513_v60 = vpop.eup %3512  ;;  %v2172_v39 = vmul.f32 0.5, %v2171_v24  ;;  %v2196_v24 = vmul.f32 0.5, %v2195_v43  ;;  %v6069_v43 = vadd.f32 %v2388_v61, %v2387_v51  ;;  %v3581_v51 = vld [vmem:[%s3989_s9 + $0x910] sm:$0xff] }
 0x1c2   : > { %3200 = vst [vmem:[%s3989_s9 + $0x128] sm:$0xff] %v5751_v10  ;;  %v6037_v54 = vpop.eup %3514  ;;  %v2206_v19 = vmul.f32 %v3513_v60, %v5969_v25  ;;  %v2185_v45 = vsub.f32 1.5, %v2184_v18  ;;  %v761_v3 = vmul.f32 %v3581_v51, %v3581_v51  ;;  %v900_v61 = vadd.f32 %v892_v6, %v834_v9 }
 0x1c3   : > { %3304 = vst [vmem:[%s3989_s9 + $0x7a8] sm:$0xff] %v5751_v10  ;;  %v6043_v10 = vpop.eup %3516  ;;  %v2218_v7 = vmul.f32 %v6037_v54, %v5971_v44  ;;  %v2197_v57 = vsub.f32 1.5, %v2196_v24  ;;  %v703_v15 = vadd.f32 %v695_v42, %v637_v52  ;;  %v2191_v6 = vand.u32 2147483648, %v5955_v34 }
 0x1c4   : > { %3201 = vst [vmem:[%s3989_s9 + $0x130] sm:$0xff] %v5754_v26  ;;  %v6049_v31 = vpop.eup %3518  ;;  %v2207_v32 = vmul.f32 %v3513_v60, %v2206_v19  ;;  %v2230_v37 = vmul.f32 %v6043_v10, %v5983_v47  ;;  %v966_v42 = vadd.f32 %v6035_v40, %v900_v61 }
 0x1c5   : > { %3305 = vst [vmem:[%s3989_s9 + $0x7b0] sm:$0xff] %v5754_v26  ;;  %v2173_v26 = vsub.f32 1.5, %v2172_v39  ;;  %v2219_v8 = vmul.f32 %v6037_v54, %v2218_v7  ;;  %v2242_v12 = vmul.f32 %v6049_v31, %v5989_v2  ;;  %v6060_v56 = vpop.eup %3520  ;;  %v6067_v39 = vadd.f32 %v2382_v17, %v965_v53 }
 0x1c6   : > { %3202 = vst [vmem:[%s3989_s9 + $0x138] sm:$0xff] %v5757_v55  ;;  %v2208_v19 = vmul.f32 0.5, %v2207_v32  ;;  %v2186_v7 = vmul.f32 %v3509_v38, %v2185_v45  ;;  %v2231_v32 = vmul.f32 %v6043_v10, %v2230_v37  ;;  %v2198_v50 = vmul.f32 %v3511_v46, %v2197_v57  ;;  %v3582_v46 = vld [vmem:[%s3989_s9 + $0x950] sm:$0xff] }
 0x1c7   : > { %3306 = vst [vmem:[%s3989_s9 + $0x7b8] sm:$0xff] %v5757_v55  ;;  %v2174_v55 = vmul.f32 %v3507_v41, %v2173_v26  ;;  %v2220_v18 = vmul.f32 0.5, %v2219_v8  ;;  %v2254_v41 = vmul.f32 %v6060_v56, %v6001_v36  ;;  %v827_v53 = vmul.f32 %v3582_v46, %v3582_v46  ;;  %v3583_v57 = vld [vmem:[%s3989_s9 + $0x990] sm:$0xff] }
 0x1c8   : > { %3203 = vst [vmem:[%s3989_s9 + $0x140] sm:$0xff] %v5761_v4  ;;  %v2209_v5 = vsub.f32 1.5, %v2208_v19  ;;  %v2187_v17 = vmul.f32 %v2186_v7, %v5955_v34  ;;  %v2199_v37 = vmul.f32 %v2198_v50, %v5962_v22  ;;  %v2232_v24 = vmul.f32 0.5, %v2231_v32 }
 0x1c9   : > { %3307 = vst [vmem:[%s3989_s9 + $0x7c0] sm:$0xff] %v5761_v4  ;;  %v2243_v4 = vmul.f32 %v6049_v31, %v2242_v12  ;;  %v2175_v38 = vmul.f32 %v2174_v55, %v5945_v1  ;;  %v2221_v26 = vsub.f32 1.5, %v2220_v18  ;;  %3522 = vrsqrt.f32 %v6067_v39 }
 0x1ca   : > { %3204 = vst [vmem:[%s3989_s9 + $0x148] sm:$0xff] %v5764_v30  ;;  %v2201_v12 = vsel %vm2200_vm5, %v5962_v22, %v2199_v37  ;;  %v2233_v19 = vsub.f32 1.5, %v2232_v24  ;;  %v769_v55 = vadd.f32 %v761_v3, %v703_v15  ;;  %v893_v7 = vmul.f32 %v3583_v57, %v3583_v57 }
 0x1cb   : > { %3308 = vst [vmem:[%s3989_s9 + $0x7c8] sm:$0xff] %v5764_v30  ;;  %v2210_v30 = vmul.f32 %v3513_v60, %v2209_v5  ;;  %v2244_v52 = vmul.f32 0.5, %v2243_v4  ;;  %v2255_v5 = vmul.f32 %v6060_v56, %v2254_v41  ;;  %v2177_v9 = vsel %vm2176_vm0, %v5945_v1, %v2175_v38 }
 0x1cc   : > { %3205 = vst [vmem:[%s3989_s9 + $0x150] sm:$0xff] %v5767_v33  ;;  %v2203_v60 = vand.u32 2147483648, %v5962_v22  ;;  %v2222_v45 = vmul.f32 %v6037_v54, %v2221_v26  ;;  %v2215_v54 = vand.u32 2147483648, %v5969_v25  ;;  %v6166_v3 = vadd.f32 %v6069_v43, %v966_v42  ;;  %v3586_v26 = vld [vmem:[%s3989_s9 + $0x858] sm:$0xff] }
 0x1cd   : > { %3309 = vst [vmem:[%s3989_s9 + $0x7d0] sm:$0xff] %v5767_v33  ;;  %v2179_v33 = vand.u32 2147483648, %v5945_v1  ;;  %v2211_v8 = vmul.f32 %v2210_v30, %v5969_v25  ;;  %v2245_v50 = vsub.f32 1.5, %v2244_v52  ;;  %v2393_v46 = vrot.slane %v5692_v49, 2 }
 0x1ce   : > { %3206 = vst [vmem:[%s3989_s9 + $0x158] sm:$0xff] %v5770_v23  ;;  %v6142_v4 = vsel %vm2202_vm3, %v2203_v60, %v2201_v12  ;;  %3524 = vrsqrt.f32 %v6166_v3  ;;  %v2400_v42 = vrot.slane %v5694_v0, 2  ;;  %vm2447_vm0 = vcmp.eq.f32.partialorder %v6067_v39, inf }
 0x1cf   : > { %3310 = vst [vmem:[%s3989_s9 + $0x7d8] sm:$0xff] %v5770_v23  ;;  %v2189_v23 = vsel %vm2188_vm1, %v5955_v34, %v2187_v17  ;;  %v6124_v18 = vpop.eup %3522  ;;  %v6130_v32 = vsel %vm2178_vm11, %v2179_v33, %v2177_v9  ;;  %v2213_v1 = vsel %vm2212_vm6, %v5969_v25, %v2211_v8  ;;  %v2227_v34 = vand.u32 2147483648, %v5971_v44 }
 0x1d0   : > { %3207 = vst [vmem:[%s3989_s9 + $0x160] sm:$0xff] %v5774_v28  ;;  %v6138_v40 = vsel %vm2190_vm15, %v2191_v6, %v2189_v23  ;;  %v2246_v41 = vmul.f32 %v6049_v31, %v2245_v50  ;;  %v2441_v25 = vmul.f32 %v6124_v18, %v6067_v39  ;;  %v6162_v51 = vsel %vm2214_vm7, %v2215_v54, %v2213_v1  ;;  %v6603_v50 = vld [vmem:[#allocation23_spill] sm:$0xff] }
 0x1d1   : > { %3311 = vst [vmem:[%s3989_s9 + $0x7e0] sm:$0xff] %v5774_v28  ;;  %v2450_v28 = vand.u32 2147483648, %v6067_v39  ;;  %v2239_v31 = vand.u32 2147483648, %v5983_v47  ;;  %v2251_v33 = vand.u32 2147483648, %v5989_v2  ;;  %v2263_v9 = vand.u32 2147483648, %v6001_v36 }
 0x1d2   : > { %3208 = vst [vmem:[%s3989_s9 + $0x168] sm:$0xff] %v5777_v27  ;;  %v2247_v17 = vmul.f32 %v2246_v41, %v5989_v2  ;;  %v2394_v23 = vadd.f32 %v2393_v46, %v5692_v49  ;;  %vm2449_vm1 = vcmp.eq.f32.partialorder %v6067_v39, 0.0  ;;  %vm2459_vm5 = vcmp.eq.f32.partialorder %v6166_v3, inf }
 0x1d3   : > { %3312 = vst [vmem:[%s3989_s9 + $0x7e8] sm:$0xff] %v5777_v27  ;;  %v2234_v27 = vmul.f32 %v6043_v10, %v2233_v19  ;;  %v2223_v10 = vmul.f32 %v2222_v45, %v5971_v44  ;;  %v3589_v45 = vld [vmem:[%s3989_s9 + $0x918] sm:$0xff]  ;;  %vm2461_vm11 = vcmp.eq.f32.partialorder %v6166_v3, 0.0 }
 0x1d4   : > { %3209 = vst [vmem:[%s3989_s9 + $0x170] sm:$0xff] %v5790_v35  ;;  %v6215_v12 = vpop.eup %3524  ;;  %v762_v19 = vmul.f32 %v3589_v45, %v3589_v45  ;;  %v6610_v45 = vld [vmem:[#allocation25_spill] sm:$0xff] }
 0x1d5   : > { %3313 = vst [vmem:[%s3989_s9 + $0x7f0] sm:$0xff] %v5790_v35  ;;  %v2256_v35 = vmul.f32 0.5, %v2255_v5  ;;  %v2235_v22 = vmul.f32 %v2234_v27, %v5983_v47  ;;  %v2225_v43 = vsel %vm2224_vm8, %v5971_v44, %v2223_v10  ;;  %v2453_v57 = vmul.f32 %v6215_v12, %v6166_v3 }
 0x1d6   : > { %3210 = vst [vmem:[%s3989_s9 + $0x178] sm:$0xff] %v5793_v63  ;;  %v6195_v24 = vsel %vm2226_vm9, %v2227_v34, %v2225_v43 }
 0x1d7   : > { %3314 = vst [vmem:[%s3989_s9 + $0x7f8] sm:$0xff] %v5793_v63  ;;  %v835_v63 = vadd.f32 %v827_v53, %v769_v55  ;;  %v2237_v38 = vsel %vm2236_vm12, %v5983_v47, %v2235_v22  ;;  %v3585_v53 = vld [vmem:[%s3989_s9 + $0x818] sm:$0xff]  ;;  %v6602_v55 = vld [vmem:[#allocation20_spill] sm:$0xff]  ;;  %v6604_v22 = vld [vmem:[#allocation21_spill] sm:$0xff]  ;;  %v2454_v41 = vmul.f32 %v6215_v12, %v2453_v57 }
 0x1d8   : > { %3211 = vst [vmem:[%s3989_s9 + $0x180] sm:$0xff] %v5709_v58  ;;  %v2442_v58 = vmul.f32 %v6124_v18, %v2441_v25  ;;  %v498_v37 = vmul.f32 %v3585_v53, %v3585_v53  ;;  %v6208_v44 = vsel %vm2238_vm13, %v2239_v31, %v2237_v38  ;;  %v3593_v25 = vld [vmem:[%s3989_s9 + $0x958] sm:$0xff] }
 0x1d9   : > { %3212 = vst [vmem:[%s3989_s9 + $0x188] sm:$0xff] %v5720_v48  ;;  %v2257_v48 = vsub.f32 1.5, %v2256_v35  ;;  %v901_v30 = vadd.f32 %v893_v7, %v835_v63  ;;  %v3590_v7 = vld [vmem:[%s3989_s9 + $0x820] sm:$0xff]  ;;  %v828_v63 = vmul.f32 %v3593_v25, %v3593_v25 }
 0x1da   : > { %3213 = vst [vmem:[%s3989_s9 + $0x190] sm:$0xff] %v5724_v14  ;;  %v2443_v61 = vmul.f32 0.5, %v2442_v58  ;;  %v3584_v14 = vld [vmem:[%s3989_s9 + $0x9d0] sm:$0xff]  ;;  %v499_v54 = vmul.f32 %v3590_v7, %v3590_v7  ;;  %v3592_v35 = vld [vmem:[%s3989_s9 + $0x8a0] sm:$0xff] }
 0x1db   : > { %3214 = vst [vmem:[%s3989_s9 + $0x198] sm:$0xff] %v5797_v21  ;;  %v959_v15 = vmul.f32 %v3584_v14, %v3584_v14  ;;  %v564_v21 = vmul.f32 %v3586_v26, %v3586_v26  ;;  %v2258_v8 = vmul.f32 %v6060_v56, %v2257_v48  ;;  %v631_v34 = vmul.f32 %v3592_v35, %v3592_v35  ;;  %v3594_v58 = vld [vmem:[%s3989_s9 + $0x8e0] sm:$0xff]  ;;  %v6605_v48 = vld [vmem:[#allocation22_spill] sm:$0xff]  ;;  %v3602_v35 = vld [vmem:[%s3989_s9 + $0x8a8] sm:$0xff] }
 0x1dc   : > { %3215 = vst [vmem:[%s3989_s9 + $0x1a0] sm:$0xff] %v5807_v20  ;;  %v2444_v52 = vsub.f32 1.5, %v2443_v61  ;;  %v3587_v20 = vld [vmem:[%s3989_s9 + $0x898] sm:$0xff]  ;;  %v697_v43 = vmul.f32 %v3594_v58, %v3594_v58  ;;  %v6606_v14 = vld [vmem:[#allocation27_spill] sm:$0xff] }
 0x1dd   : > { %3216 = vst [vmem:[%s3989_s9 + $0x1a8] sm:$0xff] %v5811_v59  ;;  %v630_v5 = vmul.f32 %v3587_v20, %v3587_v20  ;;  %v572_v6 = vadd.f32 %v564_v21, %v498_v37  ;;  %v3588_v59 = vld [vmem:[%s3989_s9 + $0x8d8] sm:$0xff]  ;;  %v967_v49 = vadd.f32 %v959_v15, %v901_v30  ;;  %v2455_v15 = vmul.f32 0.5, %v2454_v41  ;;  %v3596_v37 = vld [vmem:[%s3989_s9 + $0x920] sm:$0xff]  ;;  %v6607_v21 = vld [vmem:[#allocation24_spill] sm:$0xff] }
 0x1de   : > { %3217 = vst [vmem:[%s3989_s9 + $0x1b0] sm:$0xff] %v5815_v29  ;;  %v696_v60 = vmul.f32 %v3588_v59, %v3588_v59  ;;  %v2249_v29 = vsel %vm2248_vm14, %v5989_v2, %v2247_v17  ;;  %v2445_v56 = vmul.f32 %v6124_v18, %v2444_v52  ;;  %v2401_v18 = vadd.f32 %v2400_v42, %v5694_v0  ;;  %v3595_v30 = vld [vmem:[%s3989_s9 + $0x998] sm:$0xff]  ;;  %v3600_v42 = vld [vmem:[%s3989_s9 + $0x828] sm:$0xff] }
 0x1df   : > { %3218 = vst [vmem:[%s3989_s9 + $0x1b8] sm:$0xff] %v5827_v16  ;;  %v2395_v16 = vrot.slane %v2394_v23, 1  ;;  %v638_v47 = vadd.f32 %v630_v5, %v572_v6  ;;  %v6243_v38 = vsel %vm2250_vm2, %v2251_v33, %v2249_v29  ;;  %v894_v46 = vmul.f32 %v3595_v30, %v3595_v30  ;;  %v3597_v52 = vld [vmem:[%s3989_s9 + $0x9d8] sm:$0xff] }
 0x1e0   : > { %3219 = vst [vmem:[%s3989_s9 + $0x1c0] sm:$0xff] %v5781_v11  ;;  %v3591_v11 = vld [vmem:[%s3989_s9 + $0x860] sm:$0xff]  ;;  %v2402_v61 = vrot.slane %v2401_v18, 1  ;;  %v763_v26 = vmul.f32 %v3596_v37, %v3596_v37  ;;  %v2259_v2 = vmul.f32 %v2258_v8, %v6001_v36  ;;  %v2446_v33 = vmul.f32 %v2445_v56, %v6067_v39  ;;  %v6608_v5 = vld [vmem:[#allocation26_spill] sm:$0xff]  ;;  %v6609_v8 = vld [vmem:[#allocation29_spill] sm:$0xff] }
 0x1e1   : > { %3220 = vst [vmem:[%s3989_s9 + $0x1c8] sm:$0xff] %v6602_v55  ;;  %v565_v27 = vmul.f32 %v3591_v11, %v3591_v11  ;;  %v2396_v1 = vadd.f32 %v2395_v16, %v2394_v23  ;;  %v704_v10 = vadd.f32 %v696_v60, %v638_v47  ;;  %v960_v20 = vmul.f32 %v3597_v52, %v3597_v52  ;;  %v3598_v60 = vld [vmem:[%s3989_s9 + $0x960] sm:$0xff]  ;;  %v3601_v11 = vld [vmem:[%s3989_s9 + $0x868] sm:$0xff]  ;;  %v6616_v52 = vld [vmem:[#allocation33_spill] sm:$0xff] }
 0x1e2   : > { %3221 = vst [vmem:[%s3989_s9 + $0x1d0] sm:$0xff] %v6603_v50  ;;  %v2456_v23 = vsub.f32 1.5, %v2455_v15  ;;  %v829_v29 = vmul.f32 %v3598_v60, %v3598_v60  ;;  %v3599_v16 = vld [vmem:[%s3989_s9 + $0x9a0] sm:$0xff]  ;;  %v500_v55 = vmul.f32 %v3600_v42, %v3600_v42  ;;  %v6612_v50 = vld [vmem:[#allocation30_spill] sm:$0xff]  ;;  %v3607_v60 = vld [vmem:[%s3989_s9 + $0x830] sm:$0xff] }
 0x1e3   : > { %3222 = vst [vmem:[%s3989_s9 + $0x1d8] sm:$0xff] %v6604_v22  ;;  %v573_v31 = vadd.f32 %v565_v27, %v499_v54  ;;  %v6245_v0 = vadd.f32 %v2396_v1, %v967_v49  ;;  %v770_v17 = vadd.f32 %v762_v19, %v704_v10  ;;  %v2403_v49 = vadd.f32 %v2402_v61, %v2401_v18  ;;  %v6611_v56 = vld [vmem:[#allocation19_spill] sm:$0xff]  ;;  %v3604_v61 = vld [vmem:[%s3989_s9 + $0x8e8] sm:$0xff] }
 0x1e4   : > { %3223 = vst [vmem:[%s3989_s9 + $0x1e0] sm:$0xff] %v6605_v48  ;;  %v895_v47 = vmul.f32 %v3599_v16, %v3599_v16  ;;  %v2407_v19 = vrot.slane %v6610_v45, 2  ;;  %v2457_v57 = vmul.f32 %v6215_v12, %v2456_v23  ;;  %v566_v27 = vmul.f32 %v3601_v11, %v3601_v11  ;;  %v3612_v11 = vld [vmem:[%s3989_s9 + $0x9e8] sm:$0xff] }
 0x1e5   : > { %3224 = vst [vmem:[%s3989_s9 + $0x1e8] sm:$0xff] %v6606_v14  ;;  %v639_v53 = vadd.f32 %v631_v34, %v573_v31  ;;  %3526 = vrsqrt.f32 %v6245_v0  ;;  %v836_v6 = vadd.f32 %v828_v63, %v770_v17  ;;  %v2261_v1 = vsel %vm2260_vm4, %v6001_v36, %v2259_v2  ;;  %v6613_v34 = vld [vmem:[#allocation31_spill] sm:$0xff] }
 0x1e6   : > { %3225 = vst [vmem:[%s3989_s9 + $0x1f0] sm:$0xff] %v6607_v21  ;;  %v2462_v10 = vand.u32 2147483648, %v6166_v3  ;;  %v2408_v18 = vadd.f32 %v2407_v19, %v6610_v45  ;;  %v632_v12 = vmul.f32 %v3602_v35, %v3602_v35  ;;  %v2448_v22 = vsel %vm2447_vm0, %v6067_v39, %v2446_v33  ;;  %v3605_v21 = vld [vmem:[%s3989_s9 + $0x928] sm:$0xff]  ;;  %v6615_v33 = vld [vmem:[#allocation34_spill] sm:$0xff] }
 0x1e7   : > { %3226 = vst [vmem:[%s3989_s9 + $0x1f8] sm:$0xff] %v6608_v5  ;;  %v705_v59 = vadd.f32 %v697_v43, %v639_v53  ;;  %v902_v7 = vadd.f32 %v894_v46, %v836_v6  ;;  %v574_v63 = vadd.f32 %v566_v27, %v500_v55  ;;  %v2458_v58 = vmul.f32 %v2457_v57, %v6166_v3  ;;  %v3603_v43 = vld [vmem:[%s3989_s9 + $0x9e0] sm:$0xff]  ;;  %v6614_v53 = vld [vmem:[#allocation32_spill] sm:$0xff]  ;;  %v3613_v27 = vld [vmem:[%s3989_s9 + $0x930] sm:$0xff] }
 0x1e8   : > { %3227 = vst [vmem:[%s3989_s9 + $0x200] sm:$0xff] %v6609_v8  ;;  %v961_v48 = vmul.f32 %v3603_v43, %v3603_v43  ;;  %v2409_v17 = vrot.slane %v2408_v18, 1  ;;  %v698_v14 = vmul.f32 %v3604_v61, %v3604_v61  ;;  %v2264_v15 = vsel %vm2262_vm10, %v2263_v9, %v2261_v1  ;;  %v3610_v55 = vld [vmem:[%s3989_s9 + $0x9a8] sm:$0xff]  ;;  %v3616_v43 = vld [vmem:[%s3989_s9 + $0x838] sm:$0xff] }
 0x1e9   : > { %3228 = vst [vmem:[%s3989_s9 + $0x208] sm:$0xff] %v6611_v56  ;;  %v771_v54 = vadd.f32 %v763_v26, %v705_v59  ;;  %v968_v41 = vadd.f32 %v960_v20, %v902_v7  ;;  %v640_v26 = vadd.f32 %v632_v12, %v574_v63  ;;  %v764_v2 = vmul.f32 %v3605_v21, %v3605_v21  ;;  %v3606_v20 = vld [vmem:[%s3989_s9 + $0x968] sm:$0xff]  ;;  %v3611_v7 = vld [vmem:[%s3989_s9 + $0x8f0] sm:$0xff]  ;;  %v3617_v61 = vld [vmem:[%s3989_s9 + $0x878] sm:$0xff] }
 0x1ea   : > { %3229 = vst [vmem:[%s3989_s9 + $0x210] sm:$0xff] %v6612_v50  ;;  %v2410_v37 = vadd.f32 %v2409_v17, %v2408_v18  ;;  %v2451_v36 = vsel %vm2449_vm1, %v2450_v28, %v2448_v22  ;;  %v830_v5 = vmul.f32 %v3606_v20, %v3606_v20  ;;  %v2460_v23 = vsel %vm2459_vm5, %v6166_v3, %v2458_v58  ;;  %v3614_v12 = vld [vmem:[%s3989_s9 + $0x970] sm:$0xff] }
 0x1eb   : > { %3230 = vst [vmem:[%s3989_s9 + $0x218] sm:$0xff] %v6613_v34  ;;  %v837_v25 = vadd.f32 %v829_v29, %v771_v54  ;;  %v3527_v31 = vpop.eup %3526  ;;  %vm2471_vm15 = vcmp.eq.f32.partialorder %v6245_v0, inf  ;;  %v706_v59 = vadd.f32 %v698_v14, %v640_v26  ;;  %vm2473_vm3 = vcmp.eq.f32.partialorder %v6245_v0, 0.0  ;;  %v3608_v29 = vld [vmem:[%s3989_s9 + $0x870] sm:$0xff]  ;;  %v3619_v26 = vld [vmem:[%s3989_s9 + $0x8f8] sm:$0xff] }
 0x1ec   : > { %3231 = vst [vmem:[%s3989_s9 + $0x220] sm:$0xff] %v5910_v62  ;;  %v2465_v30 = vmul.f32 %v3527_v31, %v6245_v0  ;;  %v6297_v62 = vadd.f32 %v2403_v49, %v968_v41  ;;  %v567_v8 = vmul.f32 %v3608_v29, %v3608_v29  ;;  %v3609_v49 = vld [vmem:[%s3989_s9 + $0x8b0] sm:$0xff]  ;;  %v896_v56 = vmul.f32 %v3610_v55, %v3610_v55 }
 0x1ed   : > { %3232 = vst [vmem:[%s3989_s9 + $0x228] sm:$0xff] %v5924_v13  ;;  %v903_v46 = vadd.f32 %v895_v47, %v837_v25  ;;  %v2414_v13 = vrot.slane %v6615_v33, 2  ;;  %v633_v16 = vmul.f32 %v3609_v49, %v3609_v49  ;;  %v2474_v47 = vand.u32 2147483648, %v6245_v0  ;;  %v3615_v22 = vld [vmem:[%s3989_s9 + $0x9b0] sm:$0xff]  ;;  %v6617_v25 = vld [vmem:[#allocation35_spill] sm:$0xff] }
 0x1ee   : > { %3233 = vst [vmem:[%s3989_s9 + $0x230] sm:$0xff] %v6614_v53  ;;  %v2466_v9 = vmul.f32 %v3527_v31, %v2465_v30  ;;  %3528 = vrsqrt.f32 %v6297_v62  ;;  %v699_v54 = vmul.f32 %v3611_v7, %v3611_v7  ;;  %v765_v50 = vmul.f32 %v3613_v27, %v3613_v27  ;;  %v3618_v30 = vld [vmem:[%s3989_s9 + $0x8b8] sm:$0xff] }
 0x1ef   : > { %3234 = vst [vmem:[%s3989_s9 + $0x238] sm:$0xff] %v6616_v52  ;;  %v969_v6 = vadd.f32 %v961_v48, %v903_v46  ;;  %v2415_v39 = vadd.f32 %v2414_v13, %v6615_v33  ;;  %v831_v34 = vmul.f32 %v3614_v12, %v3614_v12  ;;  %v897_v41 = vmul.f32 %v3615_v22, %v3615_v22 }
 0x1f0   : > { %3235 = vst [vmem:[%s3989_s9 + $0x240] sm:$0xff] %v6130_v32  ;;  %v2467_v28 = vmul.f32 0.5, %v2466_v9  ;;  %v501_v32 = vmul.f32 %v3607_v60, %v3607_v60  ;;  %v2421_v63 = vrot.slane %v6617_v25, 2  ;;  %v502_v48 = vmul.f32 %v3616_v43, %v3616_v43  ;;  %v6618_v9 = vld [vmem:[#allocation28_spill] sm:$0xff] }
 0x1f1   : > { %3236 = vst [vmem:[%s3989_s9 + $0x248] sm:$0xff] %v6138_v40  ;;  %v6327_v45 = vadd.f32 %v2410_v37, %v969_v6  ;;  %v772_v40 = vadd.f32 %v764_v2, %v706_v59  ;;  %v2416_v19 = vrot.slane %v2415_v39, 1  ;;  %v568_v14 = vmul.f32 %v3617_v61, %v3617_v61 }
 0x1f2   : > { %3237 = vst [vmem:[%s3989_s9 + $0x250] sm:$0xff] %v6142_v4  ;;  %v2468_v42 = vsub.f32 1.5, %v2467_v28  ;;  %v575_v57 = vadd.f32 %v567_v8, %v501_v32  ;;  %v2463_v4 = vsel %vm2461_vm11, %v2462_v10, %v2460_v23  ;;  %v634_v46 = vmul.f32 %v3618_v30, %v3618_v30  ;;  %v3620_v28 = vld [vmem:[%s3989_s9 + $0x9f0] sm:$0xff] }
 0x1f3   : > { %3238 = vst [vmem:[%s3989_s9 + $0x258] sm:$0xff] %v6162_v51  ;;  %3530 = vrsqrt.f32 %v6327_v45  ;;  %v962_v51 = vmul.f32 %v3612_v11, %v3612_v11  ;;  %v838_v35 = vadd.f32 %v830_v5, %v772_v40  ;;  %v2417_v10 = vadd.f32 %v2416_v19, %v2415_v39  ;;  %v3622_v19 = vld [vmem:[%s3989_s9 + $0x978] sm:$0xff] }
 0x1f4   : > { %3239 = vst [vmem:[%s3989_s9 + $0x260] sm:$0xff] %v6195_v24  ;;  %v3529_v1 = vpop.eup %3528  ;;  %v2469_v18 = vmul.f32 %v3527_v31, %v2468_v42  ;;  %v641_v24 = vadd.f32 %v633_v16, %v575_v57  ;;  %v700_v21 = vmul.f32 %v3619_v26, %v3619_v26  ;;  %v6619_v20 = vrot.slane %v6618_v9, 4 }
 0x1f5   : > { %3240 = vst [vmem:[%s3989_s9 + $0x268] sm:$0xff] %v6208_v44  ;;  %v2477_v3 = vmul.f32 %v3529_v1, %v6297_v62  ;;  %v904_v31 = vadd.f32 %v896_v56, %v838_v35  ;;  %v963_v60 = vmul.f32 %v3620_v28, %v3620_v28  ;;  %v832_v42 = vmul.f32 %v3622_v19, %v3622_v19 }
 0x1f6   : > { %3241 = vst [vmem:[%s3989_s9 + $0x270] sm:$0xff] %v6243_v38  ;;  %v2470_v44 = vmul.f32 %v2469_v18, %v6245_v0  ;;  %v707_v58 = vadd.f32 %v699_v54, %v641_v24  ;;  %v2422_v38 = vadd.f32 %v2421_v63, %v6617_v25  ;;  %v2427_v5 = vadd.f32 %v6619_v20, %v6618_v9 }
 0x1f7   : > { %3242 = vst [vmem:[%s3989_s9 + $0x278] sm:$0xff] %v2264_v15  ;;  %v2478_v17 = vmul.f32 %v3529_v1, %v2477_v3  ;;  %v970_v53 = vadd.f32 %v962_v51, %v904_v31  ;;  %vm2483_vm6 = vcmp.eq.f32.partialorder %v6297_v62, inf  ;;  %v3623_v51 = vld [vmem:[%s3989_s9 + $0x9b8] sm:$0xff]  ;;  %vm2485_vm7 = vcmp.eq.f32.partialorder %v6297_v62, 0.0 }
 0x1f8   : > { %3315 = vst [vmem:[%s3989_s9 + $0xac0] sm:$0xff] %v2451_v36  ;;  %v2472_v15 = vsel %vm2471_vm15, %v6245_v0, %v2470_v44  ;;  %v773_v37 = vadd.f32 %v765_v50, %v707_v58  ;;  %v2423_v52 = vrot.slane %v2422_v38, 1  ;;  %v576_v36 = vadd.f32 %v568_v14, %v502_v48  ;;  %v3621_v0 = vld [vmem:[%s3989_s9 + $0x938] sm:$0xff] }
 0x1f9   : > { %3316 = vst [vmem:[%s3989_s9 + $0xac8] sm:$0xff] %v2463_v4  ;;  %v3531_v2 = vpop.eup %3530  ;;  %v2475_v33 = vsel %vm2473_vm3, %v2474_v47, %v2472_v15  ;;  %v2479_v13 = vmul.f32 0.5, %v2478_v17  ;;  %v6369_v6 = vadd.f32 %v2417_v10, %v970_v53  ;;  %v766_v29 = vmul.f32 %v3621_v0, %v3621_v0  ;;  %v3624_v3 = vld [vmem:[%s3989_s9 + $0x9f8] sm:$0xff] }
 0x1fa   : > { %3317 = vst [vmem:[%s3989_s9 + $0xad0] sm:$0xff] %v2475_v33  ;;  %v2489_v23 = vmul.f32 %v3531_v2, %v6327_v45  ;;  %v839_v59 = vadd.f32 %v831_v34, %v773_v37  ;;  %v642_v32 = vadd.f32 %v634_v46, %v576_v36  ;;  %v2424_v49 = vadd.f32 %v2423_v52, %v2422_v38 }
 0x1fb   : > { %v2480_v39 = vsub.f32 1.5, %v2479_v13  ;;  %3532 = vrsqrt.f32 %v6369_v6  ;;  %v2428_v56 = vrot.slane %v2427_v5, 2  ;;  %v2486_v4 = vand.u32 2147483648, %v6297_v62 }
 0x1fc   : > { %v2490_v8 = vmul.f32 %v3531_v2, %v2489_v23  ;;  %v905_v47 = vadd.f32 %v897_v41, %v839_v59  ;;  %v708_v40 = vadd.f32 %v700_v21, %v642_v32  ;;  %v898_v27 = vmul.f32 %v3623_v51, %v3623_v51 }
 0x1fd   : > { %v2481_v16 = vmul.f32 %v3529_v1, %v2480_v39  ;;  %v2429_v50 = vadd.f32 %v2428_v56, %v2427_v5  ;;  %v964_v10 = vmul.f32 %v3624_v3, %v3624_v3  ;;  %vm2495_vm8 = vcmp.eq.f32.partialorder %v6327_v45, inf }
 0x1fe   : > { %v2491_v55 = vmul.f32 0.5, %v2490_v8  ;;  %v971_v7 = vadd.f32 %v963_v60, %v905_v47  ;;  %v774_v54 = vadd.f32 %v766_v29, %v708_v40  ;;  %vm2497_vm9 = vcmp.eq.f32.partialorder %v6327_v45, 0.0 }
 0x1ff   : > { %v2482_v57 = vmul.f32 %v2481_v16, %v6297_v62  ;;  %v2430_v22 = vrot.slane %v2429_v50, 1  ;;  %vm2507_vm12 = vcmp.eq.f32.partialorder %v6369_v6, inf  ;;  %v2510_v37 = vand.u32 2147483648, %v6369_v6 }
 0x200   : > { %v2492_v11 = vsub.f32 1.5, %v2491_v55  ;;  %v2438_v18 = vadd.f32 %v2424_v49, %v971_v7  ;;  %v840_v35 = vadd.f32 %v832_v42, %v774_v54  ;;  %vm2509_vm13 = vcmp.eq.f32.partialorder %v6369_v6, 0.0 }
 0x201   : > { %v2484_v1 = vsel %vm2483_vm6, %v6297_v62, %v2482_v57  ;;  %v3533_v24 = vpop.eup %3532  ;;  %v2431_v44 = vadd.f32 %v2430_v22, %v2429_v50  ;;  %v2498_v62 = vand.u32 2147483648, %v6327_v45 }
 0x202   : > { %v2487_v12 = vsel %vm2485_vm7, %v2486_v4, %v2484_v1  ;;  %v2493_v34 = vmul.f32 %v3531_v2, %v2492_v11  ;;  %v2501_v41 = vmul.f32 %v3533_v24, %v6369_v6  ;;  %3534 = vrsqrt.f32 %v2438_v18 }
 0x203   : > { %3318 = vst [vmem:[%s3989_s9 + $0xad8] sm:$0xff] %v2487_v12  ;;  %v906_v63 = vadd.f32 %v898_v27, %v840_v35  ;;  %vm2519_vm14 = vcmp.eq.f32.partialorder %v2438_v18, inf  ;;  %v2522_v20 = vand.u32 2147483648, %v2438_v18  ;;  %vm2521_vm2 = vcmp.eq.f32.partialorder %v2438_v18, 0.0 }
 0x204   : > { %v2494_v25 = vmul.f32 %v2493_v34, %v6327_v45  ;;  %v2502_v31 = vmul.f32 %v3533_v24, %v2501_v41 }
 0x205   : > { %v972_v43 = vadd.f32 %v964_v10, %v906_v63 }
 0x206   : > { %v2496_v58 = vsel %vm2495_vm8, %v6327_v45, %v2494_v25  ;;  %v2503_v17 = vmul.f32 0.5, %v2502_v31 }
 0x207   : > { %v2499_v48 = vsel %vm2497_vm9, %v2498_v62, %v2496_v58  ;;  %v2439_v38 = vadd.f32 %v2431_v44, %v972_v43 }
 0x208   : > { %3319 = vst [vmem:[%s3989_s9 + $0xae0] sm:$0xff] %v2499_v48  ;;  %v3535_v61 = vpop.eup %3534  ;;  %v2504_v14 = vsub.f32 1.5, %v2503_v17 }
 0x209   : > { %v2513_v30 = vmul.f32 %v3535_v61, %v2438_v18  ;;  %3536 = vrsqrt.f32 %v2439_v38  ;;  %vm2531_vm4 = vcmp.eq.f32.partialorder %v2439_v38, inf  ;;  %v2534_v60 = vand.u32 2147483648, %v2439_v38 }
 0x20a   : > { %v2505_v46 = vmul.f32 %v3533_v24, %v2504_v14  ;;  %vm2533_vm10 = vcmp.eq.f32.partialorder %v2439_v38, 0.0 }
 0x20b   : > { %v2514_v15 = vmul.f32 %v3535_v61, %v2513_v30 }
 0x20c   : > { %v2506_v53 = vmul.f32 %v2505_v46, %v6369_v6 }
 0x20d   : > { %v2515_v45 = vmul.f32 0.5, %v2514_v15 }
 0x20e   : > { %v2508_v26 = vsel %vm2507_vm12, %v6369_v6, %v2506_v53 }
 0x20f   : > { %v3537_v21 = vpop.eup %3536  ;;  %v2511_v2 = vsel %vm2509_vm13, %v2510_v37, %v2508_v26  ;;  %v2516_v33 = vsub.f32 1.5, %v2515_v45 }
 0x210   : > { %3320 = vst [vmem:[%s3989_s9 + $0xae8] sm:$0xff] %v2511_v2  ;;  %v2525_v13 = vmul.f32 %v3537_v21, %v2439_v38 }
 0x211   : > { %v2517_v52 = vmul.f32 %v3535_v61, %v2516_v33 }
 0x212   : > { %v2526_v36 = vmul.f32 %v3537_v21, %v2525_v13 }
 0x213   : > { %v2518_v9 = vmul.f32 %v2517_v52, %v2438_v18 }
 0x214   : > { %v2527_v5 = vmul.f32 0.5, %v2526_v36 }
 0x215   : > { %v2520_v23 = vsel %vm2519_vm14, %v2438_v18, %v2518_v9 }
 0x216   : > { %v2523_v6 = vsel %vm2521_vm2, %v2522_v20, %v2520_v23  ;;  %v2528_v59 = vsub.f32 1.5, %v2527_v5 }
 0x217   : > { %3321 = vst [vmem:[%s3989_s9 + $0xaf0] sm:$0xff] %v2523_v6 }
 0x218   : > { %v2529_v39 = vmul.f32 %v3537_v21, %v2528_v59 }
 0x21a   : > { %v2530_v28 = vmul.f32 %v2529_v39, %v2439_v38 }
 0x21c   : > { %v2532_v32 = vsel %vm2531_vm4, %v2439_v38, %v2530_v28 }
 0x21d   : > { %v2535_v0 = vsel %vm2533_vm10, %v2534_v60, %v2532_v32 }
 0x21e   : > { %3322 = vst [vmem:[%s3989_s9 + $0xaf8] sm:$0xff] %v2535_v0 }
 0x21f   : > { %3742 = shalt.err (!%p3739_p0)
}
 0x220   : > { %s3805_s2 = smov 1024   ;;  %s3806_s30 = smov 64  }
 0x221   : > { %3340 = dma.vmem_to_hbm [thread:$0]  (%p3887_p9), %s2823_s11, 45056, %s2825_s18, %s2808_s12, %s3805_s2, %s3805_s2, %s3806_s30  }
 0x222 PF: > { %s6621_s8 = sld [smem:[#allocation12_spill]]  ;;  %p3353_p1 = pnand %p2982_p12, %p3894_p11 }
 0x223   : > { %s6623_s25 = sld [smem:[#allocation14_spill]] }
 0x224   : > { %p3354_p2 = pneg %p3353_p1 }
 0x228   : > { %s2839_s21 = sand.u32 1, %s6621_s8  }
 0x229   : > { %s2840_s26 = scalar_lea.sflag [#allocation4], %s2839_s21 }
 0x22a   : > { %3776 = dma.done.wait (%p3354_p2), %s2840_s26, 45056  }
 0x22b   : > { %3778 = vsyncadd (%p3354_p2), %s2840_s26, 4294922240  ;;  %s23_s20 = sadd.s32 1, %s6623_s25   ;;  %s6624_s7 = sld [smem:[#allocation13_spill]] }
 0x22c   : > { %p20_p3 = scmp.ge.s32.totalorder %s23_s20, 4   ;;  %s6625_s17 = sld [smem:[#allocation17_spill]] }
 0x22d   : > { %s6626_s27 = sld [smem:[#allocation15_spill]]  ;;  %s6627_s15 = smov %s3785_s16 }
 0x22e   : > { %s6629_s18 = smov %s3797_s19 }
 0x22f   :  { %22 = sbr.rel (!%p20_p3) target bundleno = 10 (0xa), region = 148 }
 0x231   : > { %s6628_s16 = smov %s6624_s7 }
 0x233   : > { %s6630_s19 = smov %s6626_s27 }
 0x234   :  { %2846 = vsyncpa [#allocation3], 1 }
 0x235   :  { %2848 = vsyncpa [#allocation3 + $0x1], 1 }
 0x236   :  { %2849 = vsyncpa [#allocation6], 1 }
 0x237   :  { %2851 = vsyncpa [#allocation6 + $0x1], 1 }
 0x238   :  { %2852 = vsyncpa [#allocation4], 1 }
 0x239   :  { %2854 = vsyncpa [#allocation4 + $0x1], 1 }

</bundles_post_ra>
